<compile_context>
chip_gen: v6e
topology: v6e:2x2x1
jax: 0.10.0
libtpu: 0.0.40
codegen_flags: <defaults>
</compile_context>

<pallas_src>
import math
import functools

import jax
import jax.numpy as jnp
from jax.experimental import pallas as pl
from jax.experimental.pallas import tpu as pltpu


# ----------------------------------------------------------------------------
# small math helpers (traceable inside Pallas kernels)
# ----------------------------------------------------------------------------
def _gelu_tanh(x):
    # tanh-based GELU approximation (goes to the EUP slot; error ~1e-3 vs exact
    # erf GELU, far inside the comparison tolerance).
    c = math.sqrt(2.0 / math.pi)
    return 0.5 * x * (1.0 + jnp.tanh(c * (x + 0.044715 * x * x * x)))


def _layernorm(x, w, b, eps=1e-5):
    mu = jnp.mean(x, axis=-1, keepdims=True)
    var = jnp.mean((x - mu) ** 2, axis=-1, keepdims=True)
    return (x - mu) * jax.lax.rsqrt(var + eps) * w + b


def _round_up(v, m):
    return (v + m - 1) // m * m


# ----------------------------------------------------------------------------
# Pallas kernels
# ----------------------------------------------------------------------------
def embed_tokens_kernel(p_ref, w_ref, b_ref, cls_ref, pos_ref, o_ref):
    """Patch projection + [CLS; patches; zero-pad] assembly + pos-emb add.

    p_ref:   (1, P, K) fp32 flattened patches for one batch element
    w_ref:   (K, D)    bf16 projection weight
    b_ref:   (1, D)    fp32 bias
    cls_ref: (1, D)    fp32 CLS token
    pos_ref: (N_pad, D) fp32 positional embedding (zero padded)
    o_ref:   (1, N_pad, D) fp32 tokens
    """
    P = p_ref.shape[1]
    n_pad = o_ref.shape[1]
    emb = jnp.dot(p_ref[0].astype(jnp.bfloat16), w_ref[...],
                  preferred_element_type=jnp.float32) + b_ref[...]      # (P, D)
    parts = [cls_ref[...], emb]
    pad_rows = n_pad - 1 - P
    if pad_rows > 0:
        parts.append(jnp.zeros((pad_rows, emb.shape[1]), jnp.float32))
    tok = jnp.concatenate(parts, axis=0)                                # (N_pad, D)
    o_ref[0] = (tok + pos_ref[...]).astype(o_ref.dtype)


def encoder_block_kernel(x_ref, ln1w, ln1b, wqkv, bqkv, wo, bo,
                         ln2w, ln2b, w1, b1, w2, b2,
                         o_ref, attn_sc,
                         *, num_heads, batch, n_tok, n_valid):
    """One TransformerEncoderBlock over the flattened (B*N_pad, D) tokens.

    All dense matmuls (QKV, MLP) run with M = B*N_pad rows in one shot (bf16
    operands, fp32 accumulation).  Only the (N, N) attention is per batch.
    """
    x = x_ref[...]                                     # (M, D) fp32
    M, D = x.shape
    hd = D // num_heads
    scale = 1.0 / math.sqrt(hd)

    # ---- pre-norm + fused QKV projection over all rows ------------------------
    h = _layernorm(x, ln1w[...], ln1b[...]).astype(jnp.bfloat16)
    qkv = jnp.dot(h, wqkv[...], preferred_element_type=jnp.float32) + bqkv[...]
    q, k, v = qkv[:, :D], qkv[:, D:2 * D], qkv[:, 2 * D:3 * D]

    # additive mask for padded key positions (static n_valid)
    key_ids = jax.lax.broadcasted_iota(jnp.int32, (1, n_tok), 1)
    key_mask = jnp.where(key_ids < n_valid, 0.0, -1e30).astype(jnp.float32)

    # ---- attention: accumulate per-head output through wo slice ---------------
    for b in range(batch):                             # static loop (small B)
        r0 = b * n_tok
        qb, kb, vb = (q[r0:r0 + n_tok], k[r0:r0 + n_tok], v[r0:r0 + n_tok])
        acc = jnp.zeros((n_tok, D), jnp.float32)
        for hi in range(num_heads):                    # static loop over heads
            c0 = hi * hd
            qh = qb[:, c0:c0 + hd].astype(jnp.bfloat16)
            kh = kb[:, c0:c0 + hd].astype(jnp.bfloat16)
            vh = vb[:, c0:c0 + hd].astype(jnp.bfloat16)
            s = jax.lax.dot_general(qh, kh, (((1,), (1,)), ((), ())),
                                    preferred_element_type=jnp.float32)
            s = s * scale + key_mask                   # mask padded keys
            s = s - jnp.max(s, axis=-1, keepdims=True)
            e = jnp.exp(s)
            p = e * pl.reciprocal(jnp.sum(e, axis=-1, keepdims=True), approx=True)
            hv = jnp.dot(p.astype(jnp.bfloat16), vh,
                         preferred_element_type=jnp.float32)            # (N, hd)
            # project this head through its slice of wo -> lane-dense (N, D)
            acc = acc + jnp.dot(hv.astype(jnp.bfloat16), wo[c0:c0 + hd, :],
                                preferred_element_type=jnp.float32)
        attn_sc[r0:r0 + n_tok, :] = acc
    x = x + attn_sc[...] + bo[...]                     # residual 1

    # ---- pre-norm + MLP over all rows -----------------------------------------
    h2 = _layernorm(x, ln2w[...], ln2b[...]).astype(jnp.bfloat16)
    m = jnp.dot(h2, w1[...], preferred_element_type=jnp.float32) + b1[...]
    m = _gelu_tanh(m).astype(jnp.bfloat16)
    m = jnp.dot(m, w2[...], preferred_element_type=jnp.float32) + b2[...]
    o_ref[...] = (x + m).astype(o_ref.dtype)           # residual 2


def head_kernel(cls_ref, lnw, lnb, hw, hb, o_ref):
    """Final LayerNorm on CLS rows + regression head (D -> 1). fp32 (tiny)."""
    h = _layernorm(cls_ref[...], lnw[...], lnb[...])
    o_ref[...] = (jnp.dot(h, hw[...], preferred_element_type=jnp.float32)
                  + hb[...]).astype(o_ref.dtype)


# ----------------------------------------------------------------------------
# wrappers / glue
# ----------------------------------------------------------------------------
_LAYER_KEYS = ("ln1_w", "ln1_b", "w_qkv", "b_qkv", "w_o", "b_o",
               "ln2_w", "ln2_b", "w_mlp1", "b_mlp1", "w_mlp2", "b_mlp2")
_BF16_KEYS = {"w_qkv", "w_o", "w_mlp1", "w_mlp2"}


def prepare_params(params):
    """One-time cast of matmul weights to bf16 (fp32 master copy untouched)."""
    prepped = dict(params)
    prepped["w_pe"] = params["w_pe"].astype(jnp.bfloat16)
    prepped["layers"] = [
        {k: (v.astype(jnp.bfloat16) if k in _BF16_KEYS else v)
         for k, v in lp.items()}
        for lp in params["layers"]
    ]
    return prepped


def extract_patches(x, p):
    """NCHW -> (B, num_patches, C*p*p), flattened in (c, ph, pw) order."""
    B, C, H, W = x.shape
    gh, gw = H // p, W // p
    x = x.reshape(B, C, gh, p, gw, p)
    x = x.transpose(0, 2, 4, 1, 3, 5)                  # (B, gh, gw, C, p, p)
    return x.reshape(B, gh * gw, C * p * p)


def embed_tokens(x, w_pe, b_pe, cls_tok, pos_pad, patch, emb_dim, n_pad):
    patches = extract_patches(x, patch)                # (B, P, K)
    B, P, K = patches.shape
    # TODO(synk): at production sizes, tile rows of the patch matmul (256-512
    # row blocks) instead of whole-array-per-batch DMAs.
    return pl.pallas_call(
        embed_tokens_kernel,
        grid=(B,),
        in_specs=[
            pl.BlockSpec((1, P, K), lambda b: (b, 0, 0)),
            pl.BlockSpec((K, emb_dim), lambda b: (0, 0)),
            pl.BlockSpec((1, emb_dim), lambda b: (0, 0)),
            pl.BlockSpec((1, emb_dim), lambda b: (0, 0)),
            pl.BlockSpec((n_pad, emb_dim), lambda b: (0, 0)),
        ],
        out_specs=pl.BlockSpec((1, n_pad, emb_dim), lambda b: (b, 0, 0)),
        out_shape=jax.ShapeDtypeStruct((B, n_pad, emb_dim), jnp.float32),
        compiler_params=pltpu.CompilerParams(dimension_semantics=("parallel",)),
    )(patches, w_pe, b_pe, cls_tok, pos_pad)


def encoder_block(tok_flat, lp, num_heads, batch, n_tok, n_valid):
    M, D = tok_flat.shape
    weights = [lp[k] for k in _LAYER_KEYS]
    kern = functools.partial(encoder_block_kernel, num_heads=num_heads,
                             batch=batch, n_tok=n_tok, n_valid=n_valid)
    # Whole problem (B*N_pad=48 rows, D=128) fits trivially in VMEM, so a
    # single invocation per layer avoids grid-step overhead.  At production
    # sizes this would be tiled over row blocks with a "parallel" grid axis.
    return pl.pallas_call(
        kern,
        out_shape=jax.ShapeDtypeStruct((M, D), jnp.float32),
        scratch_shapes=[pltpu.VMEM((M, D), jnp.float32)],
    )(tok_flat, *weights)


def vit_forward(x, params, cfg):
    D = cfg["emb_dim"]
    B = x.shape[0]
    patch = cfg["patch"]
    n_patches = (x.shape[2] // patch) * (x.shape[3] // patch)
    n_valid = n_patches + 1                            # CLS + patches
    n_pad = _round_up(n_valid, 8)                      # sublane-multiple tokens

    pos_pad = jnp.pad(params["pos_emb"][0], ((0, n_pad - n_valid), (0, 0)))
    cls_tok = params["cls_token"][0]                   # (1, D)

    tok = embed_tokens(x, params["w_pe"], params["b_pe"], cls_tok, pos_pad,
                       patch, D, n_pad)                # (B, n_pad, D)
    tok = tok.reshape(B * n_pad, D)                    # flatten B into matmul M

    for lp in params["layers"]:
        tok = encoder_block(tok, lp, cfg["num_heads"], B, n_pad, n_valid)

    cls = tok[0::n_pad]                                # only CLS rows -> (B, D)
    out = pl.pallas_call(
        head_kernel,
        out_shape=jax.ShapeDtypeStruct((B, 1), jnp.float32),
    )(cls, params["ln_w"], params["ln_b"], params["head_w"], params["head_b"])
    return out


# ----------------------------------------------------------------------------
# deterministic parameter init (shapes follow the PyTorch module)
# ----------------------------------------------------------------------------
def init_params(key, cfg, n_tokens):
    C, p, D = cfg["in_channels"], cfg["patch"], cfg["emb_dim"]
    MLP, L = cfg["mlp_dim"], cfg["num_layers"]
    keys = iter(jax.random.split(key, 128))
    std = 0.02

    def nrm(shape):
        return jax.random.normal(next(keys), shape, jnp.float32) * std

    params = {
        "w_pe": nrm((C * p * p, D)),                   # Conv2d weight, flattened & transposed
        "b_pe": nrm((1, D)),
        "cls_token": jnp.zeros((1, 1, D), jnp.float32),
        "pos_emb": jax.random.truncated_normal(
            next(keys), -2.0, 2.0, (1, n_tokens, D), jnp.float32) * std,
        "ln_w": jnp.ones((1, D), jnp.float32),
        "ln_b": jnp.zeros((1, D), jnp.float32),
        "head_w": nrm((D, 1)),
        "head_b": jnp.zeros((1, 1), jnp.float32),
        "layers": [],
    }
    for _ in range(L):
        params["layers"].append({
            "ln1_w": jnp.ones((1, D), jnp.float32),
            "ln1_b": jnp.zeros((1, D), jnp.float32),
            "w_qkv": nrm((D, 3 * D)),                  # in_proj_weight.T
            "b_qkv": nrm((1, 3 * D)),
            "w_o": nrm((D, D)),                        # out_proj.weight.T
            "b_o": nrm((1, D)),
            "ln2_w": jnp.ones((1, D), jnp.float32),
            "ln2_b": jnp.zeros((1, D), jnp.float32),
            "w_mlp1": nrm((D, MLP)),
            "b_mlp1": nrm((1, MLP)),
            "w_mlp2": nrm((MLP, D)),
            "b_mlp2": jnp.zeros((1, D), jnp.float32) + nrm((1, D)),
        })
    return params


# ----------------------------------------------------------------------------
# pure-JAX reference (fp32, exact erf GELU) for correctness check
# ----------------------------------------------------------------------------
def reference_forward(x, params, cfg):
    D, Hh = cfg["emb_dim"], cfg["num_heads"]
    hd = D // Hh
    prec = jax.lax.Precision.HIGHEST
    B = x.shape[0]

    patches = extract_patches(x, cfg["patch"])
    emb = jnp.einsum("bpk,kd->bpd", patches, params["w_pe"], precision=prec) + params["b_pe"]
    tok = jnp.concatenate([jnp.broadcast_to(params["cls_token"], (B, 1, D)), emb], axis=1)
    tok = tok + params["pos_emb"]

    for lp in params["layers"]:
        h = _layernorm(tok, lp["ln1_w"], lp["ln1_b"])
        qkv = jnp.einsum("bnd,de->bne", h, lp["w_qkv"], precision=prec) + lp["b_qkv"]
        q, k, v = jnp.split(qkv, 3, axis=-1)
        sh = lambda t: t.reshape(B, -1, Hh, hd).transpose(0, 2, 1, 3)
        qh, kh, vh = sh(q), sh(k), sh(v)
        s = jnp.einsum("bhqd,bhkd->bhqk", qh, kh, precision=prec) / math.sqrt(hd)
        a = jax.nn.softmax(s, axis=-1)
        o = jnp.einsum("bhqk,bhkd->bhqd", a, vh, precision=prec)
        o = o.transpose(0, 2, 1, 3).reshape(B, -1, D)
        o = jnp.einsum("bnd,de->bne", o, lp["w_o"], precision=prec) + lp["b_o"]
        tok = tok + o

        h2 = _layernorm(tok, lp["ln2_w"], lp["ln2_b"])
        m = jnp.einsum("bnd,de->bne", h2, lp["w_mlp1"], precision=prec) + lp["b_mlp1"]
        m = 0.5 * m * (1.0 + jax.lax.erf(m / math.sqrt(2.0)))
        m = jnp.einsum("bne,ed->bnd", m, lp["w_mlp2"], precision=prec) + lp["b_mlp2"]
        tok = tok + m

    tok = _layernorm(tok, params["ln_w"], params["ln_b"])
    clsv = tok[:, 0]
    return jnp.einsum("bd,do->bo", clsv, params["head_w"], precision=prec) + params["head_b"]


# ----------------------------------------------------------------------------
if __name__ == "__main__":
    cfg = dict(in_channels=4, patch=4, emb_dim=128, num_heads=4,
               mlp_dim=256, num_layers=2, img=16)
    B = 2
    n_patches = (cfg["img"] // cfg["patch"]) ** 2
    n_tokens = n_patches + 1                           # CLS + patches

    key = jax.random.PRNGKey(0)
    kx, kp = jax.random.split(key)
    x = jax.random.normal(kx, (B, cfg["in_channels"], cfg["img"], cfg["img"]),
                          jnp.float32)
    params = init_params(kp, cfg, n_tokens)            # fp32 master params
    kparams = prepare_params(params)                   # bf16 matmul weights

    fwd = jax.jit(functools.partial(vit_forward, cfg=cfg))
    out = fwd(x, kparams)
    out = jax.block_until_ready(out)

    ref = reference_forward(x, params, cfg)
    assert out.shape == (B, 1), out.shape
    assert bool(jnp.all(jnp.isfinite(out)))
    assert jnp.allclose(out, ref, atol=2e-2, rtol=2e-2), (out, ref)

    print("KERNEL_OK")
</pallas_src>

<mosaic_0001>
module attributes {stable_mosaic.version = 11 : i64} {
  func.func @encoder_block_kernel(%arg0: memref<48x128xf32, #tpu.memory_space<vmem>>, %arg1: memref<1x128xf32, #tpu.memory_space<vmem>>, %arg2: memref<1x128xf32, #tpu.memory_space<vmem>>, %arg3: memref<128x384xbf16, #tpu.memory_space<vmem>>, %arg4: memref<1x384xf32, #tpu.memory_space<vmem>>, %arg5: memref<128x128xbf16, #tpu.memory_space<vmem>>, %arg6: memref<1x128xf32, #tpu.memory_space<vmem>>, %arg7: memref<1x128xf32, #tpu.memory_space<vmem>>, %arg8: memref<1x128xf32, #tpu.memory_space<vmem>>, %arg9: memref<128x256xbf16, #tpu.memory_space<vmem>>, %arg10: memref<1x256xf32, #tpu.memory_space<vmem>>, %arg11: memref<256x128xbf16, #tpu.memory_space<vmem>>, %arg12: memref<1x128xf32, #tpu.memory_space<vmem>>, %arg13: memref<48x128xf32, #tpu.memory_space<vmem>>, %arg14: memref<48x128xf32, #tpu.memory_space<vmem>>) attributes {dimension_semantics = [], scalar_prefetch = 0 : i64, scratch_operands = 1 : i64, tpu.core_type = #tpu.core_type<tc>} {
    %c0 = arith.constant 0 : index
    %c0_0 = arith.constant 0 : index
    %0 = vector.load %arg0[%c0, %c0_0] : memref<48x128xf32, #tpu.memory_space<vmem>>, vector<48x128xf32>
    %c0_1 = arith.constant 0 : index
    %c0_2 = arith.constant 0 : index
    %1 = vector.load %arg1[%c0_1, %c0_2] : memref<1x128xf32, #tpu.memory_space<vmem>>, vector<1x128xf32>
    %c0_3 = arith.constant 0 : index
    %c0_4 = arith.constant 0 : index
    %2 = vector.load %arg2[%c0_3, %c0_4] : memref<1x128xf32, #tpu.memory_space<vmem>>, vector<1x128xf32>
    %cst = arith.constant dense<0.000000e+00> : vector<48xf32>
    %3 = vector.multi_reduction <add>, %0, %cst [1] : vector<48x128xf32> to vector<48xf32>
    %4 = vector.shape_cast %3 : vector<48xf32> to vector<48x1xf32>
    %cst_5 = arith.constant 1.280000e+02 : f32
    %5 = vector.broadcast %cst_5 : f32 to vector<48x1xf32>
    %6 = arith.divf %4, %5 : vector<48x1xf32>
    %7 = vector.broadcast %6 : vector<48x1xf32> to vector<48x128xf32>
    %8 = arith.subf %0, %7 : vector<48x128xf32>
    %9 = arith.mulf %8, %8 : vector<48x128xf32>
    %cst_6 = arith.constant dense<0.000000e+00> : vector<48xf32>
    %10 = vector.multi_reduction <add>, %9, %cst_6 [1] : vector<48x128xf32> to vector<48xf32>
    %11 = vector.shape_cast %10 : vector<48xf32> to vector<48x1xf32>
    %cst_7 = arith.constant 1.280000e+02 : f32
    %12 = vector.broadcast %cst_7 : f32 to vector<48x1xf32>
    %13 = arith.divf %11, %12 : vector<48x1xf32>
    %14 = vector.broadcast %6 : vector<48x1xf32> to vector<48x128xf32>
    %15 = arith.subf %0, %14 : vector<48x128xf32>
    %cst_8 = arith.constant 9.99999974E-6 : f32
    %16 = vector.broadcast %cst_8 : f32 to vector<48x1xf32>
    %17 = arith.addf %13, %16 : vector<48x1xf32>
    %18 = math.rsqrt %17 : vector<48x1xf32>
    %19 = vector.broadcast %18 : vector<48x1xf32> to vector<48x128xf32>
    %20 = arith.mulf %15, %19 : vector<48x128xf32>
    %21 = vector.broadcast %1 : vector<1x128xf32> to vector<48x128xf32>
    %22 = arith.mulf %20, %21 : vector<48x128xf32>
    %23 = vector.broadcast %2 : vector<1x128xf32> to vector<48x128xf32>
    %24 = arith.addf %22, %23 : vector<48x128xf32>
    %25 = arith.truncf %24 : vector<48x128xf32> to vector<48x128xbf16>
    %c0_9 = arith.constant 0 : index
    %c0_10 = arith.constant 0 : index
    %26 = vector.load %arg3[%c0_9, %c0_10] : memref<128x384xbf16, #tpu.memory_space<vmem>>, vector<128x384xbf16>
    %cst_11 = arith.constant dense<0.000000e+00> : vector<48x384xf32>
    %27 = tpu.matmul %25, %26, %cst_11 {dimension_numbers = #tpu.dot_dimension_numbers<[1], [0], [0], [1], [0, 0, 1, 1], [], []>} : vector<48x128xbf16>, vector<128x384xbf16>, vector<48x384xf32> -> vector<48x384xf32>
    %c0_12 = arith.constant 0 : index
    %c0_13 = arith.constant 0 : index
    %28 = vector.load %arg4[%c0_12, %c0_13] : memref<1x384xf32, #tpu.memory_space<vmem>>, vector<1x384xf32>
    %29 = vector.broadcast %28 : vector<1x384xf32> to vector<48x384xf32>
    %30 = arith.addf %27, %29 : vector<48x384xf32>
    %31 = vector.extract_strided_slice %30 {offsets = [0, 0], sizes = [48, 128], strides = [1, 1]} : vector<48x384xf32> to vector<48x128xf32>
    %32 = vector.extract_strided_slice %30 {offsets = [0, 128], sizes = [48, 128], strides = [1, 1]} : vector<48x384xf32> to vector<48x128xf32>
    %33 = vector.extract_strided_slice %30 {offsets = [0, 256], sizes = [48, 128], strides = [1, 1]} : vector<48x384xf32> to vector<48x128xf32>
    %34 = tpu.iota {dimensions = array<i32: 1>} : vector<1x24xi32>
    %c17_i32 = arith.constant 17 : i32
    %35 = vector.broadcast %c17_i32 : i32 to vector<1x24xi32>
    %36 = arith.cmpi slt, %34, %35 : vector<1x24xi32>
    %cst_14 = arith.constant 0.000000e+00 : f32
    %cst_15 = arith.constant -1.000000e+30 : f32
    %37 = vector.broadcast %cst_14 : f32 to vector<1x24xf32>
    %38 = vector.broadcast %cst_15 : f32 to vector<1x24xf32>
    %39 = arith.select %36, %37, %38 : vector<1x24xi1>, vector<1x24xf32>
    %40 = vector.extract_strided_slice %31 {offsets = [0, 0], sizes = [24, 128], strides = [1, 1]} : vector<48x128xf32> to vector<24x128xf32>
    %41 = vector.extract_strided_slice %32 {offsets = [0, 0], sizes = [24, 128], strides = [1, 1]} : vector<48x128xf32> to vector<24x128xf32>
    %42 = vector.extract_strided_slice %33 {offsets = [0, 0], sizes = [24, 128], strides = [1, 1]} : vector<48x128xf32> to vector<24x128xf32>
    %cst_16 = arith.constant 0.000000e+00 : f32
    %43 = vector.broadcast %cst_16 : f32 to vector<24x128xf32>
    %44 = vector.extract_strided_slice %40 {offsets = [0, 0], sizes = [24, 32], strides = [1, 1]} : vector<24x128xf32> to vector<24x32xf32>
    %45 = arith.truncf %44 : vector<24x32xf32> to vector<24x32xbf16>
    %46 = vector.extract_strided_slice %41 {offsets = [0, 0], sizes = [24, 32], strides = [1, 1]} : vector<24x128xf32> to vector<24x32xf32>
    %47 = arith.truncf %46 : vector<24x32xf32> to vector<24x32xbf16>
    %48 = vector.extract_strided_slice %42 {offsets = [0, 0], sizes = [24, 32], strides = [1, 1]} : vector<24x128xf32> to vector<24x32xf32>
    %49 = arith.truncf %48 : vector<24x32xf32> to vector<24x32xbf16>
    %cst_17 = arith.constant dense<0.000000e+00> : vector<24x24xf32>
    %50 = tpu.matmul %45, %47, %cst_17 {dimension_numbers = #tpu.dot_dimension_numbers<[1], [1], [0], [0], [0, 0, 1, 0], [], []>} : vector<24x32xbf16>, vector<24x32xbf16>, vector<24x24xf32> -> vector<24x24xf32>
    %cst_18 = arith.constant 0.176776692 : f32
    %51 = vector.broadcast %cst_18 : f32 to vector<24x24xf32>
    %52 = arith.mulf %50, %51 : vector<24x24xf32>
    %53 = vector.broadcast %39 : vector<1x24xf32> to vector<24x24xf32>
    %54 = arith.addf %52, %53 : vector<24x24xf32>
    %cst_19 = arith.constant dense<0xFF800000> : vector<24xf32>
    %55 = vector.multi_reduction <maximumf>, %54, %cst_19 [1] : vector<24x24xf32> to vector<24xf32>
    %56 = vector.shape_cast %55 : vector<24xf32> to vector<24x1xf32>
    %57 = vector.broadcast %56 : vector<24x1xf32> to vector<24x24xf32>
    %58 = arith.subf %54, %57 : vector<24x24xf32>
    %59 = math.exp %58 : vector<24x24xf32>
    %cst_20 = arith.constant dense<0.000000e+00> : vector<24xf32>
    %60 = vector.multi_reduction <add>, %59, %cst_20 [1] : vector<24x24xf32> to vector<24xf32>
    %61 = vector.shape_cast %60 : vector<24xf32> to vector<24x1xf32>
    %62 = tpu.reciprocal %61 {approx = true} : vector<24x1xf32> -> vector<24x1xf32>
    %63 = vector.broadcast %62 : vector<24x1xf32> to vector<24x24xf32>
    %64 = arith.mulf %59, %63 : vector<24x24xf32>
    %65 = arith.truncf %64 : vector<24x24xf32> to vector<24x24xbf16>
    %cst_21 = arith.constant dense<0.000000e+00> : vector<24x32xf32>
    %66 = tpu.matmul %65, %49, %cst_21 {dimension_numbers = #tpu.dot_dimension_numbers<[1], [0], [0], [1], [0, 0, 1, 1], [], []>} : vector<24x24xbf16>, vector<24x32xbf16>, vector<24x32xf32> -> vector<24x32xf32>
    %67 = arith.truncf %66 : vector<24x32xf32> to vector<24x32xbf16>
    %c0_22 = arith.constant 0 : index
    %c0_23 = arith.constant 0 : index
    %68 = vector.load %arg5[%c0_22, %c0_23] : memref<128x128xbf16, #tpu.memory_space<vmem>>, vector<32x128xbf16>
    %cst_24 = arith.constant dense<0.000000e+00> : vector<24x128xf32>
    %69 = tpu.matmul %67, %68, %cst_24 {dimension_numbers = #tpu.dot_dimension_numbers<[1], [0], [0], [1], [0, 0, 1, 1], [], []>} : vector<24x32xbf16>, vector<32x128xbf16>, vector<24x128xf32> -> vector<24x128xf32>
    %70 = arith.addf %43, %69 : vector<24x128xf32>
    %71 = vector.extract_strided_slice %40 {offsets = [0, 32], sizes = [24, 32], strides = [1, 1]} : vector<24x128xf32> to vector<24x32xf32>
    %72 = arith.truncf %71 : vector<24x32xf32> to vector<24x32xbf16>
    %73 = vector.extract_strided_slice %41 {offsets = [0, 32], sizes = [24, 32], strides = [1, 1]} : vector<24x128xf32> to vector<24x32xf32>
    %74 = arith.truncf %73 : vector<24x32xf32> to vector<24x32xbf16>
    %75 = vector.extract_strided_slice %42 {offsets = [0, 32], sizes = [24, 32], strides = [1, 1]} : vector<24x128xf32> to vector<24x32xf32>
    %76 = arith.truncf %75 : vector<24x32xf32> to vector<24x32xbf16>
    %cst_25 = arith.constant dense<0.000000e+00> : vector<24x24xf32>
    %77 = tpu.matmul %72, %74, %cst_25 {dimension_numbers = #tpu.dot_dimension_numbers<[1], [1], [0], [0], [0, 0, 1, 0], [], []>} : vector<24x32xbf16>, vector<24x32xbf16>, vector<24x24xf32> -> vector<24x24xf32>
    %cst_26 = arith.constant 0.176776692 : f32
    %78 = vector.broadcast %cst_26 : f32 to vector<24x24xf32>
    %79 = arith.mulf %77, %78 : vector<24x24xf32>
    %80 = vector.broadcast %39 : vector<1x24xf32> to vector<24x24xf32>
    %81 = arith.addf %79, %80 : vector<24x24xf32>
    %cst_27 = arith.constant dense<0xFF800000> : vector<24xf32>
    %82 = vector.multi_reduction <maximumf>, %81, %cst_27 [1] : vector<24x24xf32> to vector<24xf32>
    %83 = vector.shape_cast %82 : vector<24xf32> to vector<24x1xf32>
    %84 = vector.broadcast %83 : vector<24x1xf32> to vector<24x24xf32>
    %85 = arith.subf %81, %84 : vector<24x24xf32>
    %86 = math.exp %85 : vector<24x24xf32>
    %cst_28 = arith.constant dense<0.000000e+00> : vector<24xf32>
    %87 = vector.multi_reduction <add>, %86, %cst_28 [1] : vector<24x24xf32> to vector<24xf32>
    %88 = vector.shape_cast %87 : vector<24xf32> to vector<24x1xf32>
    %89 = tpu.reciprocal %88 {approx = true} : vector<24x1xf32> -> vector<24x1xf32>
    %90 = vector.broadcast %89 : vector<24x1xf32> to vector<24x24xf32>
    %91 = arith.mulf %86, %90 : vector<24x24xf32>
    %92 = arith.truncf %91 : vector<24x24xf32> to vector<24x24xbf16>
    %cst_29 = arith.constant dense<0.000000e+00> : vector<24x32xf32>
    %93 = tpu.matmul %92, %76, %cst_29 {dimension_numbers = #tpu.dot_dimension_numbers<[1], [0], [0], [1], [0, 0, 1, 1], [], []>} : vector<24x24xbf16>, vector<24x32xbf16>, vector<24x32xf32> -> vector<24x32xf32>
    %94 = arith.truncf %93 : vector<24x32xf32> to vector<24x32xbf16>
    %c32 = arith.constant 32 : index
    %c0_30 = arith.constant 0 : index
    %95 = vector.load %arg5[%c32, %c0_30] : memref<128x128xbf16, #tpu.memory_space<vmem>>, vector<32x128xbf16>
    %cst_31 = arith.constant dense<0.000000e+00> : vector<24x128xf32>
    %96 = tpu.matmul %94, %95, %cst_31 {dimension_numbers = #tpu.dot_dimension_numbers<[1], [0], [0], [1], [0, 0, 1, 1], [], []>} : vector<24x32xbf16>, vector<32x128xbf16>, vector<24x128xf32> -> vector<24x128xf32>
    %97 = arith.addf %70, %96 : vector<24x128xf32>
    %98 = vector.extract_strided_slice %40 {offsets = [0, 64], sizes = [24, 32], strides = [1, 1]} : vector<24x128xf32> to vector<24x32xf32>
    %99 = arith.truncf %98 : vector<24x32xf32> to vector<24x32xbf16>
    %100 = vector.extract_strided_slice %41 {offsets = [0, 64], sizes = [24, 32], strides = [1, 1]} : vector<24x128xf32> to vector<24x32xf32>
    %101 = arith.truncf %100 : vector<24x32xf32> to vector<24x32xbf16>
    %102 = vector.extract_strided_slice %42 {offsets = [0, 64], sizes = [24, 32], strides = [1, 1]} : vector<24x128xf32> to vector<24x32xf32>
    %103 = arith.truncf %102 : vector<24x32xf32> to vector<24x32xbf16>
    %cst_32 = arith.constant dense<0.000000e+00> : vector<24x24xf32>
    %104 = tpu.matmul %99, %101, %cst_32 {dimension_numbers = #tpu.dot_dimension_numbers<[1], [1], [0], [0], [0, 0, 1, 0], [], []>} : vector<24x32xbf16>, vector<24x32xbf16>, vector<24x24xf32> -> vector<24x24xf32>
    %cst_33 = arith.constant 0.176776692 : f32
    %105 = vector.broadcast %cst_33 : f32 to vector<24x24xf32>
    %106 = arith.mulf %104, %105 : vector<24x24xf32>
    %107 = vector.broadcast %39 : vector<1x24xf32> to vector<24x24xf32>
    %108 = arith.addf %106, %107 : vector<24x24xf32>
    %cst_34 = arith.constant dense<0xFF800000> : vector<24xf32>
    %109 = vector.multi_reduction <maximumf>, %108, %cst_34 [1] : vector<24x24xf32> to vector<24xf32>
    %110 = vector.shape_cast %109 : vector<24xf32> to vector<24x1xf32>
    %111 = vector.broadcast %110 : vector<24x1xf32> to vector<24x24xf32>
    %112 = arith.subf %108, %111 : vector<24x24xf32>
    %113 = math.exp %112 : vector<24x24xf32>
    %cst_35 = arith.constant dense<0.000000e+00> : vector<24xf32>
    %114 = vector.multi_reduction <add>, %113, %cst_35 [1] : vector<24x24xf32> to vector<24xf32>
    %115 = vector.shape_cast %114 : vector<24xf32> to vector<24x1xf32>
    %116 = tpu.reciprocal %115 {approx = true} : vector<24x1xf32> -> vector<24x1xf32>
    %117 = vector.broadcast %116 : vector<24x1xf32> to vector<24x24xf32>
    %118 = arith.mulf %113, %117 : vector<24x24xf32>
    %119 = arith.truncf %118 : vector<24x24xf32> to vector<24x24xbf16>
    %cst_36 = arith.constant dense<0.000000e+00> : vector<24x32xf32>
    %120 = tpu.matmul %119, %103, %cst_36 {dimension_numbers = #tpu.dot_dimension_numbers<[1], [0], [0], [1], [0, 0, 1, 1], [], []>} : vector<24x24xbf16>, vector<24x32xbf16>, vector<24x32xf32> -> vector<24x32xf32>
    %121 = arith.truncf %120 : vector<24x32xf32> to vector<24x32xbf16>
    %c64 = arith.constant 64 : index
    %c0_37 = arith.constant 0 : index
    %122 = vector.load %arg5[%c64, %c0_37] : memref<128x128xbf16, #tpu.memory_space<vmem>>, vector<32x128xbf16>
    %cst_38 = arith.constant dense<0.000000e+00> : vector<24x128xf32>
    %123 = tpu.matmul %121, %122, %cst_38 {dimension_numbers = #tpu.dot_dimension_numbers<[1], [0], [0], [1], [0, 0, 1, 1], [], []>} : vector<24x32xbf16>, vector<32x128xbf16>, vector<24x128xf32> -> vector<24x128xf32>
    %124 = arith.addf %97, %123 : vector<24x128xf32>
    %125 = vector.extract_strided_slice %40 {offsets = [0, 96], sizes = [24, 32], strides = [1, 1]} : vector<24x128xf32> to vector<24x32xf32>
    %126 = arith.truncf %125 : vector<24x32xf32> to vector<24x32xbf16>
    %127 = vector.extract_strided_slice %41 {offsets = [0, 96], sizes = [24, 32], strides = [1, 1]} : vector<24x128xf32> to vector<24x32xf32>
    %128 = arith.truncf %127 : vector<24x32xf32> to vector<24x32xbf16>
    %129 = vector.extract_strided_slice %42 {offsets = [0, 96], sizes = [24, 32], strides = [1, 1]} : vector<24x128xf32> to vector<24x32xf32>
    %130 = arith.truncf %129 : vector<24x32xf32> to vector<24x32xbf16>
    %cst_39 = arith.constant dense<0.000000e+00> : vector<24x24xf32>
    %131 = tpu.matmul %126, %128, %cst_39 {dimension_numbers = #tpu.dot_dimension_numbers<[1], [1], [0], [0], [0, 0, 1, 0], [], []>} : vector<24x32xbf16>, vector<24x32xbf16>, vector<24x24xf32> -> vector<24x24xf32>
    %cst_40 = arith.constant 0.176776692 : f32
    %132 = vector.broadcast %cst_40 : f32 to vector<24x24xf32>
    %133 = arith.mulf %131, %132 : vector<24x24xf32>
    %134 = vector.broadcast %39 : vector<1x24xf32> to vector<24x24xf32>
    %135 = arith.addf %133, %134 : vector<24x24xf32>
    %cst_41 = arith.constant dense<0xFF800000> : vector<24xf32>
    %136 = vector.multi_reduction <maximumf>, %135, %cst_41 [1] : vector<24x24xf32> to vector<24xf32>
    %137 = vector.shape_cast %136 : vector<24xf32> to vector<24x1xf32>
    %138 = vector.broadcast %137 : vector<24x1xf32> to vector<24x24xf32>
    %139 = arith.subf %135, %138 : vector<24x24xf32>
    %140 = math.exp %139 : vector<24x24xf32>
    %cst_42 = arith.constant dense<0.000000e+00> : vector<24xf32>
    %141 = vector.multi_reduction <add>, %140, %cst_42 [1] : vector<24x24xf32> to vector<24xf32>
    %142 = vector.shape_cast %141 : vector<24xf32> to vector<24x1xf32>
    %143 = tpu.reciprocal %142 {approx = true} : vector<24x1xf32> -> vector<24x1xf32>
    %144 = vector.broadcast %143 : vector<24x1xf32> to vector<24x24xf32>
    %145 = arith.mulf %140, %144 : vector<24x24xf32>
    %146 = arith.truncf %145 : vector<24x24xf32> to vector<24x24xbf16>
    %cst_43 = arith.constant dense<0.000000e+00> : vector<24x32xf32>
    %147 = tpu.matmul %146, %130, %cst_43 {dimension_numbers = #tpu.dot_dimension_numbers<[1], [0], [0], [1], [0, 0, 1, 1], [], []>} : vector<24x24xbf16>, vector<24x32xbf16>, vector<24x32xf32> -> vector<24x32xf32>
    %148 = arith.truncf %147 : vector<24x32xf32> to vector<24x32xbf16>
    %c96 = arith.constant 96 : index
    %c0_44 = arith.constant 0 : index
    %149 = vector.load %arg5[%c96, %c0_44] : memref<128x128xbf16, #tpu.memory_space<vmem>>, vector<32x128xbf16>
    %cst_45 = arith.constant dense<0.000000e+00> : vector<24x128xf32>
    %150 = tpu.matmul %148, %149, %cst_45 {dimension_numbers = #tpu.dot_dimension_numbers<[1], [0], [0], [1], [0, 0, 1, 1], [], []>} : vector<24x32xbf16>, vector<32x128xbf16>, vector<24x128xf32> -> vector<24x128xf32>
    %151 = arith.addf %124, %150 : vector<24x128xf32>
    %c0_46 = arith.constant 0 : index
    %c0_47 = arith.constant 0 : index
    %152 = vector.load %arg14[%c0_46, %c0_47] : memref<48x128xf32, #tpu.memory_space<vmem>>, vector<24x128xf32>
    tpu.vector_store %arg14[%c0_46, %c0_47], %151 {strides = array<i32>} : memref<48x128xf32, #tpu.memory_space<vmem>>, vector<24x128xf32>,
    %153 = vector.extract_strided_slice %31 {offsets = [24, 0], sizes = [24, 128], strides = [1, 1]} : vector<48x128xf32> to vector<24x128xf32>
    %154 = vector.extract_strided_slice %32 {offsets = [24, 0], sizes = [24, 128], strides = [1, 1]} : vector<48x128xf32> to vector<24x128xf32>
    %155 = vector.extract_strided_slice %33 {offsets = [24, 0], sizes = [24, 128], strides = [1, 1]} : vector<48x128xf32> to vector<24x128xf32>
    %cst_48 = arith.constant 0.000000e+00 : f32
    %156 = vector.broadcast %cst_48 : f32 to vector<24x128xf32>
    %157 = vector.extract_strided_slice %153 {offsets = [0, 0], sizes = [24, 32], strides = [1, 1]} : vector<24x128xf32> to vector<24x32xf32>
    %158 = arith.truncf %157 : vector<24x32xf32> to vector<24x32xbf16>
    %159 = vector.extract_strided_slice %154 {offsets = [0, 0], sizes = [24, 32], strides = [1, 1]} : vector<24x128xf32> to vector<24x32xf32>
    %160 = arith.truncf %159 : vector<24x32xf32> to vector<24x32xbf16>
    %161 = vector.extract_strided_slice %155 {offsets = [0, 0], sizes = [24, 32], strides = [1, 1]} : vector<24x128xf32> to vector<24x32xf32>
    %162 = arith.truncf %161 : vector<24x32xf32> to vector<24x32xbf16>
    %cst_49 = arith.constant dense<0.000000e+00> : vector<24x24xf32>
    %163 = tpu.matmul %158, %160, %cst_49 {dimension_numbers = #tpu.dot_dimension_numbers<[1], [1], [0], [0], [0, 0, 1, 0], [], []>} : vector<24x32xbf16>, vector<24x32xbf16>, vector<24x24xf32> -> vector<24x24xf32>
    %cst_50 = arith.constant 0.176776692 : f32
    %164 = vector.broadcast %cst_50 : f32 to vector<24x24xf32>
    %165 = arith.mulf %163, %164 : vector<24x24xf32>
    %166 = vector.broadcast %39 : vector<1x24xf32> to vector<24x24xf32>
    %167 = arith.addf %165, %166 : vector<24x24xf32>
    %cst_51 = arith.constant dense<0xFF800000> : vector<24xf32>
    %168 = vector.multi_reduction <maximumf>, %167, %cst_51 [1] : vector<24x24xf32> to vector<24xf32>
    %169 = vector.shape_cast %168 : vector<24xf32> to vector<24x1xf32>
    %170 = vector.broadcast %169 : vector<24x1xf32> to vector<24x24xf32>
    %171 = arith.subf %167, %170 : vector<24x24xf32>
    %172 = math.exp %171 : vector<24x24xf32>
    %cst_52 = arith.constant dense<0.000000e+00> : vector<24xf32>
    %173 = vector.multi_reduction <add>, %172, %cst_52 [1] : vector<24x24xf32> to vector<24xf32>
    %174 = vector.shape_cast %173 : vector<24xf32> to vector<24x1xf32>
    %175 = tpu.reciprocal %174 {approx = true} : vector<24x1xf32> -> vector<24x1xf32>
    %176 = vector.broadcast %175 : vector<24x1xf32> to vector<24x24xf32>
    %177 = arith.mulf %172, %176 : vector<24x24xf32>
    %178 = arith.truncf %177 : vector<24x24xf32> to vector<24x24xbf16>
    %cst_53 = arith.constant dense<0.000000e+00> : vector<24x32xf32>
    %179 = tpu.matmul %178, %162, %cst_53 {dimension_numbers = #tpu.dot_dimension_numbers<[1], [0], [0], [1], [0, 0, 1, 1], [], []>} : vector<24x24xbf16>, vector<24x32xbf16>, vector<24x32xf32> -> vector<24x32xf32>
    %180 = arith.truncf %179 : vector<24x32xf32> to vector<24x32xbf16>
    %c0_54 = arith.constant 0 : index
    %c0_55 = arith.constant 0 : index
    %181 = vector.load %arg5[%c0_54, %c0_55] : memref<128x128xbf16, #tpu.memory_space<vmem>>, vector<32x128xbf16>
    %cst_56 = arith.constant dense<0.000000e+00> : vector<24x128xf32>
    %182 = tpu.matmul %180, %181, %cst_56 {dimension_numbers = #tpu.dot_dimension_numbers<[1], [0], [0], [1], [0, 0, 1, 1], [], []>} : vector<24x32xbf16>, vector<32x128xbf16>, vector<24x128xf32> -> vector<24x128xf32>
    %183 = arith.addf %156, %182 : vector<24x128xf32>
    %184 = vector.extract_strided_slice %153 {offsets = [0, 32], sizes = [24, 32], strides = [1, 1]} : vector<24x128xf32> to vector<24x32xf32>
    %185 = arith.truncf %184 : vector<24x32xf32> to vector<24x32xbf16>
    %186 = vector.extract_strided_slice %154 {offsets = [0, 32], sizes = [24, 32], strides = [1, 1]} : vector<24x128xf32> to vector<24x32xf32>
    %187 = arith.truncf %186 : vector<24x32xf32> to vector<24x32xbf16>
    %188 = vector.extract_strided_slice %155 {offsets = [0, 32], sizes = [24, 32], strides = [1, 1]} : vector<24x128xf32> to vector<24x32xf32>
    %189 = arith.truncf %188 : vector<24x32xf32> to vector<24x32xbf16>
    %cst_57 = arith.constant dense<0.000000e+00> : vector<24x24xf32>
    %190 = tpu.matmul %185, %187, %cst_57 {dimension_numbers = #tpu.dot_dimension_numbers<[1], [1], [0], [0], [0, 0, 1, 0], [], []>} : vector<24x32xbf16>, vector<24x32xbf16>, vector<24x24xf32> -> vector<24x24xf32>
    %cst_58 = arith.constant 0.176776692 : f32
    %191 = vector.broadcast %cst_58 : f32 to vector<24x24xf32>
    %192 = arith.mulf %190, %191 : vector<24x24xf32>
    %193 = vector.broadcast %39 : vector<1x24xf32> to vector<24x24xf32>
    %194 = arith.addf %192, %193 : vector<24x24xf32>
    %cst_59 = arith.constant dense<0xFF800000> : vector<24xf32>
    %195 = vector.multi_reduction <maximumf>, %194, %cst_59 [1] : vector<24x24xf32> to vector<24xf32>
    %196 = vector.shape_cast %195 : vector<24xf32> to vector<24x1xf32>
    %197 = vector.broadcast %196 : vector<24x1xf32> to vector<24x24xf32>
    %198 = arith.subf %194, %197 : vector<24x24xf32>
    %199 = math.exp %198 : vector<24x24xf32>
    %cst_60 = arith.constant dense<0.000000e+00> : vector<24xf32>
    %200 = vector.multi_reduction <add>, %199, %cst_60 [1] : vector<24x24xf32> to vector<24xf32>
    %201 = vector.shape_cast %200 : vector<24xf32> to vector<24x1xf32>
    %202 = tpu.reciprocal %201 {approx = true} : vector<24x1xf32> -> vector<24x1xf32>
    %203 = vector.broadcast %202 : vector<24x1xf32> to vector<24x24xf32>
    %204 = arith.mulf %199, %203 : vector<24x24xf32>
    %205 = arith.truncf %204 : vector<24x24xf32> to vector<24x24xbf16>
    %cst_61 = arith.constant dense<0.000000e+00> : vector<24x32xf32>
    %206 = tpu.matmul %205, %189, %cst_61 {dimension_numbers = #tpu.dot_dimension_numbers<[1], [0], [0], [1], [0, 0, 1, 1], [], []>} : vector<24x24xbf16>, vector<24x32xbf16>, vector<24x32xf32> -> vector<24x32xf32>
    %207 = arith.truncf %206 : vector<24x32xf32> to vector<24x32xbf16>
    %c32_62 = arith.constant 32 : index
    %c0_63 = arith.constant 0 : index
    %208 = vector.load %arg5[%c32_62, %c0_63] : memref<128x128xbf16, #tpu.memory_space<vmem>>, vector<32x128xbf16>
    %cst_64 = arith.constant dense<0.000000e+00> : vector<24x128xf32>
    %209 = tpu.matmul %207, %208, %cst_64 {dimension_numbers = #tpu.dot_dimension_numbers<[1], [0], [0], [1], [0, 0, 1, 1], [], []>} : vector<24x32xbf16>, vector<32x128xbf16>, vector<24x128xf32> -> vector<24x128xf32>
    %210 = arith.addf %183, %209 : vector<24x128xf32>
    %211 = vector.extract_strided_slice %153 {offsets = [0, 64], sizes = [24, 32], strides = [1, 1]} : vector<24x128xf32> to vector<24x32xf32>
    %212 = arith.truncf %211 : vector<24x32xf32> to vector<24x32xbf16>
    %213 = vector.extract_strided_slice %154 {offsets = [0, 64], sizes = [24, 32], strides = [1, 1]} : vector<24x128xf32> to vector<24x32xf32>
    %214 = arith.truncf %213 : vector<24x32xf32> to vector<24x32xbf16>
    %215 = vector.extract_strided_slice %155 {offsets = [0, 64], sizes = [24, 32], strides = [1, 1]} : vector<24x128xf32> to vector<24x32xf32>
    %216 = arith.truncf %215 : vector<24x32xf32> to vector<24x32xbf16>
    %cst_65 = arith.constant dense<0.000000e+00> : vector<24x24xf32>
    %217 = tpu.matmul %212, %214, %cst_65 {dimension_numbers = #tpu.dot_dimension_numbers<[1], [1], [0], [0], [0, 0, 1, 0], [], []>} : vector<24x32xbf16>, vector<24x32xbf16>, vector<24x24xf32> -> vector<24x24xf32>
    %cst_66 = arith.constant 0.176776692 : f32
    %218 = vector.broadcast %cst_66 : f32 to vector<24x24xf32>
    %219 = arith.mulf %217, %218 : vector<24x24xf32>
    %220 = vector.broadcast %39 : vector<1x24xf32> to vector<24x24xf32>
    %221 = arith.addf %219, %220 : vector<24x24xf32>
    %cst_67 = arith.constant dense<0xFF800000> : vector<24xf32>
    %222 = vector.multi_reduction <maximumf>, %221, %cst_67 [1] : vector<24x24xf32> to vector<24xf32>
    %223 = vector.shape_cast %222 : vector<24xf32> to vector<24x1xf32>
    %224 = vector.broadcast %223 : vector<24x1xf32> to vector<24x24xf32>
    %225 = arith.subf %221, %224 : vector<24x24xf32>
    %226 = math.exp %225 : vector<24x24xf32>
    %cst_68 = arith.constant dense<0.000000e+00> : vector<24xf32>
    %227 = vector.multi_reduction <add>, %226, %cst_68 [1] : vector<24x24xf32> to vector<24xf32>
    %228 = vector.shape_cast %227 : vector<24xf32> to vector<24x1xf32>
    %229 = tpu.reciprocal %228 {approx = true} : vector<24x1xf32> -> vector<24x1xf32>
    %230 = vector.broadcast %229 : vector<24x1xf32> to vector<24x24xf32>
    %231 = arith.mulf %226, %230 : vector<24x24xf32>
    %232 = arith.truncf %231 : vector<24x24xf32> to vector<24x24xbf16>
    %cst_69 = arith.constant dense<0.000000e+00> : vector<24x32xf32>
    %233 = tpu.matmul %232, %216, %cst_69 {dimension_numbers = #tpu.dot_dimension_numbers<[1], [0], [0], [1], [0, 0, 1, 1], [], []>} : vector<24x24xbf16>, vector<24x32xbf16>, vector<24x32xf32> -> vector<24x32xf32>
    %234 = arith.truncf %233 : vector<24x32xf32> to vector<24x32xbf16>
    %c64_70 = arith.constant 64 : index
    %c0_71 = arith.constant 0 : index
    %235 = vector.load %arg5[%c64_70, %c0_71] : memref<128x128xbf16, #tpu.memory_space<vmem>>, vector<32x128xbf16>
    %cst_72 = arith.constant dense<0.000000e+00> : vector<24x128xf32>
    %236 = tpu.matmul %234, %235, %cst_72 {dimension_numbers = #tpu.dot_dimension_numbers<[1], [0], [0], [1], [0, 0, 1, 1], [], []>} : vector<24x32xbf16>, vector<32x128xbf16>, vector<24x128xf32> -> vector<24x128xf32>
    %237 = arith.addf %210, %236 : vector<24x128xf32>
    %238 = vector.extract_strided_slice %153 {offsets = [0, 96], sizes = [24, 32], strides = [1, 1]} : vector<24x128xf32> to vector<24x32xf32>
    %239 = arith.truncf %238 : vector<24x32xf32> to vector<24x32xbf16>
    %240 = vector.extract_strided_slice %154 {offsets = [0, 96], sizes = [24, 32], strides = [1, 1]} : vector<24x128xf32> to vector<24x32xf32>
    %241 = arith.truncf %240 : vector<24x32xf32> to vector<24x32xbf16>
    %242 = vector.extract_strided_slice %155 {offsets = [0, 96], sizes = [24, 32], strides = [1, 1]} : vector<24x128xf32> to vector<24x32xf32>
    %243 = arith.truncf %242 : vector<24x32xf32> to vector<24x32xbf16>
    %cst_73 = arith.constant dense<0.000000e+00> : vector<24x24xf32>
    %244 = tpu.matmul %239, %241, %cst_73 {dimension_numbers = #tpu.dot_dimension_numbers<[1], [1], [0], [0], [0, 0, 1, 0], [], []>} : vector<24x32xbf16>, vector<24x32xbf16>, vector<24x24xf32> -> vector<24x24xf32>
    %cst_74 = arith.constant 0.176776692 : f32
    %245 = vector.broadcast %cst_74 : f32 to vector<24x24xf32>
    %246 = arith.mulf %244, %245 : vector<24x24xf32>
    %247 = vector.broadcast %39 : vector<1x24xf32> to vector<24x24xf32>
    %248 = arith.addf %246, %247 : vector<24x24xf32>
    %cst_75 = arith.constant dense<0xFF800000> : vector<24xf32>
    %249 = vector.multi_reduction <maximumf>, %248, %cst_75 [1] : vector<24x24xf32> to vector<24xf32>
    %250 = vector.shape_cast %249 : vector<24xf32> to vector<24x1xf32>
    %251 = vector.broadcast %250 : vector<24x1xf32> to vector<24x24xf32>
    %252 = arith.subf %248, %251 : vector<24x24xf32>
    %253 = math.exp %252 : vector<24x24xf32>
    %cst_76 = arith.constant dense<0.000000e+00> : vector<24xf32>
    %254 = vector.multi_reduction <add>, %253, %cst_76 [1] : vector<24x24xf32> to vector<24xf32>
    %255 = vector.shape_cast %254 : vector<24xf32> to vector<24x1xf32>
    %256 = tpu.reciprocal %255 {approx = true} : vector<24x1xf32> -> vector<24x1xf32>
    %257 = vector.broadcast %256 : vector<24x1xf32> to vector<24x24xf32>
    %258 = arith.mulf %253, %257 : vector<24x24xf32>
    %259 = arith.truncf %258 : vector<24x24xf32> to vector<24x24xbf16>
    %cst_77 = arith.constant dense<0.000000e+00> : vector<24x32xf32>
    %260 = tpu.matmul %259, %243, %cst_77 {dimension_numbers = #tpu.dot_dimension_numbers<[1], [0], [0], [1], [0, 0, 1, 1], [], []>} : vector<24x24xbf16>, vector<24x32xbf16>, vector<24x32xf32> -> vector<24x32xf32>
    %261 = arith.truncf %260 : vector<24x32xf32> to vector<24x32xbf16>
    %c96_78 = arith.constant 96 : index
    %c0_79 = arith.constant 0 : index
    %262 = vector.load %arg5[%c96_78, %c0_79] : memref<128x128xbf16, #tpu.memory_space<vmem>>, vector<32x128xbf16>
    %cst_80 = arith.constant dense<0.000000e+00> : vector<24x128xf32>
    %263 = tpu.matmul %261, %262, %cst_80 {dimension_numbers = #tpu.dot_dimension_numbers<[1], [0], [0], [1], [0, 0, 1, 1], [], []>} : vector<24x32xbf16>, vector<32x128xbf16>, vector<24x128xf32> -> vector<24x128xf32>
    %264 = arith.addf %237, %263 : vector<24x128xf32>
    %c24 = arith.constant 24 : index
    %c0_81 = arith.constant 0 : index
    %265 = vector.load %arg14[%c24, %c0_81] : memref<48x128xf32, #tpu.memory_space<vmem>>, vector<24x128xf32>
    tpu.vector_store %arg14[%c24, %c0_81], %264 {strides = array<i32>} : memref<48x128xf32, #tpu.memory_space<vmem>>, vector<24x128xf32>,
    %c0_82 = arith.constant 0 : index
    %c0_83 = arith.constant 0 : index
    %266 = vector.load %arg14[%c0_82, %c0_83] : memref<48x128xf32, #tpu.memory_space<vmem>>, vector<48x128xf32>
    %267 = arith.addf %0, %266 : vector<48x128xf32>
    %c0_84 = arith.constant 0 : index
    %c0_85 = arith.constant 0 : index
    %268 = vector.load %arg6[%c0_84, %c0_85] : memref<1x128xf32, #tpu.memory_space<vmem>>, vector<1x128xf32>
    %269 = vector.broadcast %268 : vector<1x128xf32> to vector<48x128xf32>
    %270 = arith.addf %267, %269 : vector<48x128xf32>
    %c0_86 = arith.constant 0 : index
    %c0_87 = arith.constant 0 : index
    %271 = vector.load %arg7[%c0_86, %c0_87] : memref<1x128xf32, #tpu.memory_space<vmem>>, vector<1x128xf32>
    %c0_88 = arith.constant 0 : index
    %c0_89 = arith.constant 0 : index
    %272 = vector.load %arg8[%c0_88, %c0_89] : memref<1x128xf32, #tpu.memory_space<vmem>>, vector<1x128xf32>
    %cst_90 = arith.constant dense<0.000000e+00> : vector<48xf32>
    %273 = vector.multi_reduction <add>, %270, %cst_90 [1] : vector<48x128xf32> to vector<48xf32>
    %274 = vector.shape_cast %273 : vector<48xf32> to vector<48x1xf32>
    %cst_91 = arith.constant 1.280000e+02 : f32
    %275 = vector.broadcast %cst_91 : f32 to vector<48x1xf32>
    %276 = arith.divf %274, %275 : vector<48x1xf32>
    %277 = vector.broadcast %276 : vector<48x1xf32> to vector<48x128xf32>
    %278 = arith.subf %270, %277 : vector<48x128xf32>
    %279 = arith.mulf %278, %278 : vector<48x128xf32>
    %cst_92 = arith.constant dense<0.000000e+00> : vector<48xf32>
    %280 = vector.multi_reduction <add>, %279, %cst_92 [1] : vector<48x128xf32> to vector<48xf32>
    %281 = vector.shape_cast %280 : vector<48xf32> to vector<48x1xf32>
    %cst_93 = arith.constant 1.280000e+02 : f32
    %282 = vector.broadcast %cst_93 : f32 to vector<48x1xf32>
    %283 = arith.divf %281, %282 : vector<48x1xf32>
    %284 = vector.broadcast %276 : vector<48x1xf32> to vector<48x128xf32>
    %285 = arith.subf %270, %284 : vector<48x128xf32>
    %cst_94 = arith.constant 9.99999974E-6 : f32
    %286 = vector.broadcast %cst_94 : f32 to vector<48x1xf32>
    %287 = arith.addf %283, %286 : vector<48x1xf32>
    %288 = math.rsqrt %287 : vector<48x1xf32>
    %289 = vector.broadcast %288 : vector<48x1xf32> to vector<48x128xf32>
    %290 = arith.mulf %285, %289 : vector<48x128xf32>
    %291 = vector.broadcast %271 : vector<1x128xf32> to vector<48x128xf32>
    %292 = arith.mulf %290, %291 : vector<48x128xf32>
    %293 = vector.broadcast %272 : vector<1x128xf32> to vector<48x128xf32>
    %294 = arith.addf %292, %293 : vector<48x128xf32>
    %295 = arith.truncf %294 : vector<48x128xf32> to vector<48x128xbf16>
    %c0_95 = arith.constant 0 : index
    %c0_96 = arith.constant 0 : index
    %296 = vector.load %arg9[%c0_95, %c0_96] : memref<128x256xbf16, #tpu.memory_space<vmem>>, vector<128x256xbf16>
    %cst_97 = arith.constant dense<0.000000e+00> : vector<48x256xf32>
    %297 = tpu.matmul %295, %296, %cst_97 {dimension_numbers = #tpu.dot_dimension_numbers<[1], [0], [0], [1], [0, 0, 1, 1], [], []>} : vector<48x128xbf16>, vector<128x256xbf16>, vector<48x256xf32> -> vector<48x256xf32>
    %c0_98 = arith.constant 0 : index
    %c0_99 = arith.constant 0 : index
    %298 = vector.load %arg10[%c0_98, %c0_99] : memref<1x256xf32, #tpu.memory_space<vmem>>, vector<1x256xf32>
    %299 = vector.broadcast %298 : vector<1x256xf32> to vector<48x256xf32>
    %300 = arith.addf %297, %299 : vector<48x256xf32>
    %cst_100 = arith.constant 5.000000e-01 : f32
    %301 = vector.broadcast %cst_100 : f32 to vector<48x256xf32>
    %302 = arith.mulf %301, %300 : vector<48x256xf32>
    %cst_101 = arith.constant 4.471500e-02 : f32
    %303 = vector.broadcast %cst_101 : f32 to vector<48x256xf32>
    %304 = arith.mulf %303, %300 : vector<48x256xf32>
    %305 = arith.mulf %304, %300 : vector<48x256xf32>
    %306 = arith.mulf %305, %300 : vector<48x256xf32>
    %307 = arith.addf %300, %306 : vector<48x256xf32>
    %cst_102 = arith.constant 0.797884583 : f32
    %308 = vector.broadcast %cst_102 : f32 to vector<48x256xf32>
    %309 = arith.mulf %308, %307 : vector<48x256xf32>
    %310 = math.tanh %309 : vector<48x256xf32>
    %cst_103 = arith.constant 1.000000e+00 : f32
    %311 = vector.broadcast %cst_103 : f32 to vector<48x256xf32>
    %312 = arith.addf %311, %310 : vector<48x256xf32>
    %313 = arith.mulf %302, %312 : vector<48x256xf32>
    %314 = arith.truncf %313 : vector<48x256xf32> to vector<48x256xbf16>
    %c0_104 = arith.constant 0 : index
    %c0_105 = arith.constant 0 : index
    %315 = vector.load %arg11[%c0_104, %c0_105] : memref<256x128xbf16, #tpu.memory_space<vmem>>, vector<256x128xbf16>
    %cst_106 = arith.constant dense<0.000000e+00> : vector<48x128xf32>
    %316 = tpu.matmul %314, %315, %cst_106 {dimension_numbers = #tpu.dot_dimension_numbers<[1], [0], [0], [1], [0, 0, 1, 1], [], []>} : vector<48x256xbf16>, vector<256x128xbf16>, vector<48x128xf32> -> vector<48x128xf32>
    %c0_107 = arith.constant 0 : index
    %c0_108 = arith.constant 0 : index
    %317 = vector.load %arg12[%c0_107, %c0_108] : memref<1x128xf32, #tpu.memory_space<vmem>>, vector<1x128xf32>
    %318 = vector.broadcast %317 : vector<1x128xf32> to vector<48x128xf32>
    %319 = arith.addf %316, %318 : vector<48x128xf32>
    %320 = arith.addf %270, %319 : vector<48x128xf32>
    %c0_109 = arith.constant 0 : index
    %c0_110 = arith.constant 0 : index
    %321 = vector.load %arg13[%c0_109, %c0_110] : memref<48x128xf32, #tpu.memory_space<vmem>>, vector<48x128xf32>
    tpu.vector_store %arg13[%c0_109, %c0_110], %320 {strides = array<i32>} : memref<48x128xf32, #tpu.memory_space<vmem>>, vector<48x128xf32>,
    return
  }
}

module attributes {stable_mosaic.version = 11 : i64} {
  func.func @embed_tokens_kernel(%arg0: i32, %arg1: memref<1x16x64xf32, #tpu.memory_space<vmem>>, %arg2: memref<64x128xbf16, #tpu.memory_space<vmem>>, %arg3: memref<1x128xf32, #tpu.memory_space<vmem>>, %arg4: memref<1x128xf32, #tpu.memory_space<vmem>>, %arg5: memref<24x128xf32, #tpu.memory_space<vmem>>, %arg6: memref<1x24x128xf32, #tpu.memory_space<vmem>>) attributes {dimension_semantics = [#tpu.dimension_semantics<parallel>], iteration_bounds = array<i64: 2>, scalar_prefetch = 0 : i64, scratch_operands = 0 : i64, tpu.core_type = #tpu.core_type<tc>, window_params = [{transform_indices = @transform_0, window_bounds = array<i64: 1, 16, 64>}, {pipeline_mode = #tpu.pipeline_mode<synchronous>, transform_indices = @transform_1, window_bounds = array<i64: 64, 128>}, {pipeline_mode = #tpu.pipeline_mode<synchronous>, transform_indices = @transform_2, window_bounds = array<i64: 1, 128>}, {pipeline_mode = #tpu.pipeline_mode<synchronous>, transform_indices = @transform_3, window_bounds = array<i64: 1, 128>}, {pipeline_mode = #tpu.pipeline_mode<synchronous>, transform_indices = @transform_4, window_bounds = array<i64: 24, 128>}, {transform_indices = @transform_5, window_bounds = array<i64: 1, 24, 128>}]} {
    %c0 = arith.constant 0 : index
    %c0_0 = arith.constant 0 : index
    %c0_1 = arith.constant 0 : index
    %0 = vector.load %arg1[%c0, %c0_0, %c0_1] : memref<1x16x64xf32, #tpu.memory_space<vmem>>, vector<1x16x64xf32>
    %1 = vector.shape_cast %0 : vector<1x16x64xf32> to vector<16x64xf32>
    %2 = arith.truncf %1 : vector<16x64xf32> to vector<16x64xbf16>
    %c0_2 = arith.constant 0 : index
    %c0_3 = arith.constant 0 : index
    %3 = vector.load %arg2[%c0_2, %c0_3] : memref<64x128xbf16, #tpu.memory_space<vmem>>, vector<64x128xbf16>
    %cst = arith.constant dense<0.000000e+00> : vector<16x128xf32>
    %4 = tpu.matmul %2, %3, %cst {dimension_numbers = #tpu.dot_dimension_numbers<[1], [0], [0], [1], [0, 0, 1, 1], [], []>} : vector<16x64xbf16>, vector<64x128xbf16>, vector<16x128xf32> -> vector<16x128xf32>
    %c0_4 = arith.constant 0 : index
    %c0_5 = arith.constant 0 : index
    %5 = vector.load %arg3[%c0_4, %c0_5] : memref<1x128xf32, #tpu.memory_space<vmem>>, vector<1x128xf32>
    %6 = vector.broadcast %5 : vector<1x128xf32> to vector<16x128xf32>
    %7 = arith.addf %4, %6 : vector<16x128xf32>
    %c0_6 = arith.constant 0 : index
    %c0_7 = arith.constant 0 : index
    %8 = vector.load %arg4[%c0_6, %c0_7] : memref<1x128xf32, #tpu.memory_space<vmem>>, vector<1x128xf32>
    %cst_8 = arith.constant 0.000000e+00 : f32
    %9 = vector.broadcast %cst_8 : f32 to vector<7x128xf32>
    %10 = tpu.concatenate %8, %7, %9 in 0 : vector<1x128xf32>, vector<16x128xf32>, vector<7x128xf32> -> vector<24x128xf32>
    %c0_9 = arith.constant 0 : index
    %c0_10 = arith.constant 0 : index
    %11 = vector.load %arg5[%c0_9, %c0_10] : memref<24x128xf32, #tpu.memory_space<vmem>>, vector<24x128xf32>
    %12 = arith.addf %10, %11 : vector<24x128xf32>
    %c0_11 = arith.constant 0 : index
    %c0_12 = arith.constant 0 : index
    %c0_13 = arith.constant 0 : index
    %13 = vector.load %arg6[%c0_11, %c0_12, %c0_13] : memref<1x24x128xf32, #tpu.memory_space<vmem>>, vector<1x24x128xf32>
    %14 = vector.shape_cast %13 : vector<1x24x128xf32> to vector<24x128xf32>
    %15 = vector.shape_cast %12 : vector<24x128xf32> to vector<1x24x128xf32>
    tpu.vector_store %arg6[%c0_11, %c0_12, %c0_13], %15 {strides = array<i32>} : memref<1x24x128xf32, #tpu.memory_space<vmem>>, vector<1x24x128xf32>,
    return
  }
  func.func @transform_0(%arg0: i32) -> (i32, i32, i32) {
    %c0_i32 = arith.constant 0 : i32
    %c0_i32_0 = arith.constant 0 : i32
    %c0_i32_1 = arith.constant 0 : i32
    return %arg0, %c0_i32, %c0_i32_0 : i32, i32, i32
  }
  func.func @transform_1(%arg0: i32) -> (i32, i32) {
    %c0_i32 = arith.constant 0 : i32
    %c0_i32_0 = arith.constant 0 : i32
    %c0_i32_1 = arith.constant 0 : i32
    return %c0_i32, %c0_i32_0 : i32, i32
  }
  func.func @transform_2(%arg0: i32) -> (i32, i32) {
    %c0_i32 = arith.constant 0 : i32
    %c0_i32_0 = arith.constant 0 : i32
    %c0_i32_1 = arith.constant 0 : i32
    return %c0_i32, %c0_i32_0 : i32, i32
  }
  func.func @transform_3(%arg0: i32) -> (i32, i32) {
    %c0_i32 = arith.constant 0 : i32
    %c0_i32_0 = arith.constant 0 : i32
    %c0_i32_1 = arith.constant 0 : i32
    return %c0_i32, %c0_i32_0 : i32, i32
  }
  func.func @transform_4(%arg0: i32) -> (i32, i32) {
    %c0_i32 = arith.constant 0 : i32
    %c0_i32_0 = arith.constant 0 : i32
    %c0_i32_1 = arith.constant 0 : i32
    return %c0_i32, %c0_i32_0 : i32, i32
  }
  func.func @transform_5(%arg0: i32) -> (i32, i32, i32) {
    %c0_i32 = arith.constant 0 : i32
    %c0_i32_0 = arith.constant 0 : i32
    %c0_i32_1 = arith.constant 0 : i32
    return %arg0, %c0_i32, %c0_i32_0 : i32, i32, i32
  }
}

module attributes {stable_mosaic.version = 11 : i64} {
  func.func @head_kernel(%arg0: memref<2x128xf32, #tpu.memory_space<vmem>>, %arg1: memref<1x128xf32, #tpu.memory_space<vmem>>, %arg2: memref<1x128xf32, #tpu.memory_space<vmem>>, %arg3: memref<128x1xf32, #tpu.memory_space<vmem>>, %arg4: memref<1x1xf32, #tpu.memory_space<vmem>>, %arg5: memref<2x1xf32, #tpu.memory_space<vmem>>) attributes {dimension_semantics = [], scalar_prefetch = 0 : i64, scratch_operands = 0 : i64, tpu.core_type = #tpu.core_type<tc>} {
    %c0 = arith.constant 0 : index
    %c0_0 = arith.constant 0 : index
    %0 = vector.load %arg0[%c0, %c0_0] : memref<2x128xf32, #tpu.memory_space<vmem>>, vector<2x128xf32>
    %c0_1 = arith.constant 0 : index
    %c0_2 = arith.constant 0 : index
    %1 = vector.load %arg1[%c0_1, %c0_2] : memref<1x128xf32, #tpu.memory_space<vmem>>, vector<1x128xf32>
    %c0_3 = arith.constant 0 : index
    %c0_4 = arith.constant 0 : index
    %2 = vector.load %arg2[%c0_3, %c0_4] : memref<1x128xf32, #tpu.memory_space<vmem>>, vector<1x128xf32>
    %cst = arith.constant dense<0.000000e+00> : vector<2xf32>
    %3 = vector.multi_reduction <add>, %0, %cst [1] : vector<2x128xf32> to vector<2xf32>
    %4 = vector.shape_cast %3 : vector<2xf32> to vector<2x1xf32>
    %cst_5 = arith.constant 1.280000e+02 : f32
    %5 = vector.broadcast %cst_5 : f32 to vector<2x1xf32>
    %6 = arith.divf %4, %5 : vector<2x1xf32>
    %7 = vector.broadcast %6 : vector<2x1xf32> to vector<2x128xf32>
    %8 = arith.subf %0, %7 : vector<2x128xf32>
    %9 = arith.mulf %8, %8 : vector<2x128xf32>
    %cst_6 = arith.constant dense<0.000000e+00> : vector<2xf32>
    %10 = vector.multi_reduction <add>, %9, %cst_6 [1] : vector<2x128xf32> to vector<2xf32>
    %11 = vector.shape_cast %10 : vector<2xf32> to vector<2x1xf32>
    %cst_7 = arith.constant 1.280000e+02 : f32
    %12 = vector.broadcast %cst_7 : f32 to vector<2x1xf32>
    %13 = arith.divf %11, %12 : vector<2x1xf32>
    %14 = vector.broadcast %6 : vector<2x1xf32> to vector<2x128xf32>
    %15 = arith.subf %0, %14 : vector<2x128xf32>
    %cst_8 = arith.constant 9.99999974E-6 : f32
    %16 = vector.broadcast %cst_8 : f32 to vector<2x1xf32>
    %17 = arith.addf %13, %16 : vector<2x1xf32>
    %18 = math.rsqrt %17 : vector<2x1xf32>
    %19 = vector.broadcast %18 : vector<2x1xf32> to vector<2x128xf32>
    %20 = arith.mulf %15, %19 : vector<2x128xf32>
    %21 = vector.broadcast %1 : vector<1x128xf32> to vector<2x128xf32>
    %22 = arith.mulf %20, %21 : vector<2x128xf32>
    %23 = vector.broadcast %2 : vector<1x128xf32> to vector<2x128xf32>
    %24 = arith.addf %22, %23 : vector<2x128xf32>
    %c0_9 = arith.constant 0 : index
    %c0_10 = arith.constant 0 : index
    %25 = vector.load %arg3[%c0_9, %c0_10] : memref<128x1xf32, #tpu.memory_space<vmem>>, vector<128x1xf32>
    %cst_11 = arith.constant dense<0.000000e+00> : vector<2x1xf32>
    %26 = tpu.matmul %24, %25, %cst_11 {dimension_numbers = #tpu.dot_dimension_numbers<[1], [0], [0], [1], [0, 0, 1, 1], [], []>} : vector<2x128xf32>, vector<128x1xf32>, vector<2x1xf32> -> vector<2x1xf32>
    %c0_12 = arith.constant 0 : index
    %c0_13 = arith.constant 0 : index
    %27 = vector.load %arg4[%c0_12, %c0_13] : memref<1x1xf32, #tpu.memory_space<vmem>>, vector<1x1xf32>
    %28 = vector.broadcast %27 : vector<1x1xf32> to vector<2x1xf32>
    %29 = arith.addf %26, %28 : vector<2x1xf32>
    %c0_14 = arith.constant 0 : index
    %c0_15 = arith.constant 0 : index
    %30 = vector.load %arg5[%c0_14, %c0_15] : memref<2x1xf32, #tpu.memory_space<vmem>>, vector<2x1xf32>
    tpu.vector_store %arg5[%c0_14, %c0_15], %29 {strides = array<i32>} : memref<2x1xf32, #tpu.memory_space<vmem>>, vector<2x1xf32>,
    return
  }
}

</mosaic_0001>

<bundles_post_ra>
// kernel: vit_forward.4
= control target key start
LH: loop header
LB: loop body
LE: loop exit
PB: predicated region body
PF: predicated region fallthrough
CT: control target
= control target key end

     0   :  { %s478_s18 = smov 0   ;;  %s522_s0 = inlined_call_operand.vmem [shape: f32[2,16,64], index: 0, kind: input, shape index: {}]   ;;  %s523_s1 = inlined_call_operand.vmem [shape: bf16[64,128], index: 1, kind: input, shape index: {}]   ;;  %s524_s2 = inlined_call_operand.vmem [shape: f32[1,128], index: 2, kind: input, shape index: {}]   ;;  %s525_s3 = inlined_call_operand.vmem [shape: f32[1,128], index: 3, kind: input, shape index: {}]   ;;  %s526_s4 = inlined_call_operand.vmem [shape: f32[24,128], index: 4, kind: input, shape index: {}]   ;;  %s527_s5 = inlined_call_operand.vmem [shape: f32[2,24,128], index: 5, kind: output, shape index: {}]  }
   0x1 LB: > { %s389_s19 = sadd.s32 4294967295, %s444_s18   ;;  %p393_p0 = scmp.ge.s32.totalorder %s444_s18, 1  ;;  %s444_s18 = sphi %s478_s18, %s15_s18  }
   0x2   : > { %p187_p1 = scmp.lt.s32.totalorder %s444_s18, 3 }
   0x4   : > { %p188_p2 = pnand %p393_p0, %p187_p1 }
   0x5   : > { %p215_p3 = scmp.lt.s32.totalorder (!%p188_p2), %s389_s19, 1 }
   0x6   : > { %191 = sbr.rel (%p188_p2) target bundleno = 233 (0xe9), region = 40 }
   0xb   : > { %v434_v0 = vld [vmem:[%s523_s1 + $0x18] sm:$0xff]   ;;  %v446_v1 = vmov 0.0   ;;  %v435_v2 = vld [vmem:[%s523_s1 + $0x10] sm:$0xff]   ;;  %vm447_vm0 = vmmov 0   ;;  %s529_s19 = smov (!%p215_p3, %s389_s19), 1  ;;  %v436_v3 = vld [vmem:[%s523_s1 + $0x8] sm:$0xff]  }
   0xc   : > { %411 = vmatprep.subr.bf16.mxu0 %v446_v1  ;;  %419 = vmatprep.mubr.msk.bf16.mxu0 %vm447_vm0, %v446_v1  ;;  %s405_s26 = sshll.u32 %s529_s19, 4  ;;  %v437_v4 = vld [vmem:[%s523_s1] sm:$0xff]   ;;  %vm268_vm1 = vcmask 523264   ;;  %s423_s9 = smul.u32 24, %s529_s19  ;;  %vm316_vm2 = vcmask 1040384   ;;  %v326_v21 = vld [vmem:[%s526_s4 + $0x8] sm:$0xff] }
   0xd   : > { %412 = vmatpush3.bf16.msra.mxu0 %v434_v0  ;;  %s219_s29 = scalar_lea.vmem %s522_s0, %s405_s26  ;;  %v397_v8 = vld [vmem:[%s524_s2] ss:$0 sm:$0xff]  ;;  %v327_v22 = vld [vmem:[%s526_s4 + $0x10] sm:$0xff] }
   0xe   : > { %413 = vmatprep.subr.bf16.mxu0 %v446_v1  ;;  %v226_v5 = vld [vmem:[%s219_s29] sm:$0xff]  ;;  %v227_v6 = vld [vmem:[%s219_s29 + $0x8] sm:$0xff]  ;;  %s224_s16 = scalar_lea.vmem %s527_s5, %s423_s9 }
   0xf   : > { %v228_v7 = vpack.c.bf16 %v227_v6, %v226_v5  ;;  %v313_v12 = vld [vmem:[%s525_s3] sm:$0x1] }
  0x10   : > { %v325_v14 = vld [vmem:[%s526_s4] sm:$0xff] }
  0x11   : > { %414 = vmatpush3.bf16.msra.mxu0 %v435_v2 }
  0x12   : > { %415 = vmatprep.subr.bf16.mxu0 %v446_v1 }
  0x15   : > { %416 = vmatpush3.bf16.msra.mxu0 %v436_v3 }
  0x16   : > { %417 = vmatprep.subr.bf16.mxu0 %v446_v1 }
  0x19   : > { %418 = vmatpush3.bf16.msra.mxu0 %v437_v4 }
  0x1c   : > { %420 = vmatmul.mubr.msk.bf16.vlgmr.msra.gmra.mxu0 %vm268_vm1, %v228_v7 }
  0xdc   : > { %v306_v9 = vpop.f32.mrf.mxu0 }
  0xdd   : > { %v307_v10 = vadd.f32 %v397_v8, %v306_v9 }
  0xde   : > { %v421_v11 = vpop.f32.mrf.mxu0 }
  0xdf   : > { %v317_v13 = vrot.slane %v307_v10, 7 }
  0xe0   : > { %v309_v15 = vpop.f32.mrf.mxu0 }
  0xe1   : > { %v310_v16 = vadd.f32 %v397_v8, %v309_v15  ;;  %v323_v17 = vsel %vm316_vm2, %v313_v12, %v317_v13 }
  0xe2   : > { %v328_v18 = vadd.f32 %v325_v14, %v323_v17  ;;  %v422_v19 = vpop.f32.mrf.mxu0 }
  0xe3   : > { %v318_v20 = vrot.slane %v310_v16, 7 }
  0xe4   : > { %331 = vst [vmem:[%s224_s16] sm:$0xff] %v328_v18 }
  0xe5   : > { %v319_v23 = vsel %vm316_vm2, %v317_v13, %v318_v20  ;;  %v324_v24 = vsel %vm316_vm2, %v318_v20, 0.0 }
  0xe6   : > { %v329_v25 = vadd.f32 %v326_v21, %v319_v23  ;;  %v330_v26 = vadd.f32 %v327_v22, %v324_v24 }
  0xe8   : > { %332 = vst [vmem:[%s224_s16 + $0x8] sm:$0xff] %v329_v25  ;;  %333 = vst [vmem:[%s224_s16 + $0x10] sm:$0xff] %v330_v26 }
  0xe9 PF: > { %s15_s18 = sadd.s32 1, %s444_s18  }
  0xea   : > { %p12_p4 = scmp.ge.s32.totalorder %s15_s18, 4  }
  0xec   :  { %14 = sbr.rel (!%p12_p4) target bundleno = 1 (0x1), region = 70 }

// kernel: vit_forward.7
= control target key start
LH: loop header
LB: loop body
LE: loop exit
PB: predicated region body
PF: predicated region fallthrough
CT: control target
= control target key end

     0   :  { %vm25_vm0 = vcmask 1041408   ;;  %v212_v2 = vmov 0.0   ;;  %vm213_vm1 = vmmov 0   ;;  %vm147_vm2 = vcmask 1024   ;;  %s309_s0 = inlined_call_operand.vmem [shape: f32[2,128], index: 0, kind: input, shape index: {}]   ;;  %s310_s3 = inlined_call_operand.vmem [shape: f32[128,1], index: 3, kind: input, shape index: {}]   ;;  %s311_s4 = inlined_call_operand.<no memory space> [shape: f32[1,1], index: 4, kind: input, shape index: {}]   ;;  %s312_s1 = inlined_call_operand.vmem [shape: f32[1,128], index: 1, kind: input, shape index: {}]   ;;  %s313_s2 = inlined_call_operand.vmem [shape: f32[1,128], index: 2, kind: input, shape index: {}]   ;;  %s314_s5 = inlined_call_operand.vmem [shape: f32[2,1], index: 5, kind: output, shape index: {}]  }
   0x1   :  { %v22_v0 = vld [vmem:[%s309_s0] sm:$0x3]  ;;  %173 = vmatprep.subr.mxu0 %v212_v2  ;;  %v69_v3 = vld [vmem:[%s310_s3 + $0x78] sm:$0xff]  ;;  %v68_v4 = vld [vmem:[%s310_s3 + $0x70] sm:$0xff]  ;;  %205 = vmatprep.mubr.msk.f32.mxu0 %vm213_vm1, %v212_v2  ;;  %v10_v24 = vstv %s311_s4 }
   0x2   :  { %v26_v1 = vsel %vm25_vm0, %v22_v0, 0.0  ;;  %174 = vmatpush3.msra.mxu0 %v69_v3  ;;  %v67_v5 = vld [vmem:[%s310_s3 + $0x68] sm:$0xff]  ;;  %v66_v6 = vld [vmem:[%s310_s3 + $0x60] sm:$0xff]  ;;  %v65_v12 = vld [vmem:[%s310_s3 + $0x58] sm:$0xff]  ;;  %11 = vst [vmem:[#allocation2] sm:$0x1] %v10_v24 }
   0x3   :  { %27 = vadd.xlane.f32.xlu0 %v26_v1  ;;  %175 = vmatprep.subr.mxu0 %v212_v2  ;;  %v64_v13 = vld [vmem:[%s310_s3 + $0x50] sm:$0xff]  ;;  %v63_v14 = vld [vmem:[%s310_s3 + $0x48] sm:$0xff]  ;;  %v62_v15 = vld [vmem:[%s310_s3 + $0x40] sm:$0xff] }
   0x4   :  { %176 = vmatpush3.msra.mxu0 %v68_v4  ;;  %v61_v16 = vld [vmem:[%s310_s3 + $0x38] sm:$0xff]  ;;  %v60_v17 = vld [vmem:[%s310_s3 + $0x30] sm:$0xff]  ;;  %v59_v18 = vld [vmem:[%s310_s3 + $0x28] sm:$0xff] }
   0x5   :  { %177 = vmatprep.subr.mxu0 %v212_v2  ;;  %v58_v19 = vld [vmem:[%s310_s3 + $0x20] sm:$0xff]  ;;  %v57_v20 = vld [vmem:[%s310_s3 + $0x18] sm:$0xff]  ;;  %v56_v21 = vld [vmem:[%s310_s3 + $0x10] sm:$0xff] }
   0x6   :  { %178 = vmatpush3.msra.mxu0 %v67_v5  ;;  %v55_v22 = vld [vmem:[%s310_s3 + $0x8] sm:$0xff]  ;;  %v54_v23 = vld [vmem:[%s310_s3] sm:$0xff] }
   0x7   :  { %179 = vmatprep.subr.mxu0 %v212_v2  ;;  %v153_v29 = vld [vmem:[%s312_s1] ss:$0 sm:$0xff] }
   0x8   :  { %180 = vmatpush3.msra.mxu0 %v66_v6  ;;  %v154_v31 = vld [vmem:[%s313_s2] ss:$0 sm:$0xff] }
   0x9   :  { %181 = vmatprep.subr.mxu0 %v212_v2  ;;  %v155_v34 = vld [vmem:[#allocation2] ss:$0 sm:$0xff] }
   0xa   :  { %182 = vmatpush3.msra.mxu0 %v65_v12 }
   0xb   :  { %183 = vmatprep.subr.mxu0 %v212_v2 }
   0xc   :  { %184 = vmatpush3.msra.mxu0 %v64_v13 }
   0xd   :  { %185 = vmatprep.subr.mxu0 %v212_v2 }
   0xe   :  { %186 = vmatpush3.msra.mxu0 %v63_v14 }
   0xf   :  { %187 = vmatprep.subr.mxu0 %v212_v2 }
  0x10   :  { %188 = vmatpush3.msra.mxu0 %v62_v15 }
  0x11   :  { %189 = vmatprep.subr.mxu0 %v212_v2 }
  0x12   :  { %190 = vmatpush3.msra.mxu0 %v61_v16 }
  0x13   :  { %191 = vmatprep.subr.mxu0 %v212_v2 }
  0x14   :  { %192 = vmatpush3.msra.mxu0 %v60_v17 }
  0x15   :  { %193 = vmatprep.subr.mxu0 %v212_v2 }
  0x16   :  { %194 = vmatpush3.msra.mxu0 %v59_v18 }
  0x17   :  { %195 = vmatprep.subr.mxu0 %v212_v2 }
  0x18   :  { %196 = vmatpush3.msra.mxu0 %v58_v19 }
  0x19   :  { %197 = vmatprep.subr.mxu0 %v212_v2 }
  0x1a   :  { %198 = vmatpush3.msra.mxu0 %v57_v20 }
  0x1b   :  { %199 = vmatprep.subr.mxu0 %v212_v2 }
  0x1c   :  { %200 = vmatpush3.msra.mxu0 %v56_v21 }
  0x1d   :  { %201 = vmatprep.subr.mxu0 %v212_v2 }
  0x1e   :  { %202 = vmatpush3.msra.mxu0 %v55_v22 }
  0x1f   :  { %203 = vmatprep.subr.mxu0 %v212_v2 }
  0x20   :  { %204 = vmatpush3.msra.mxu0 %v54_v23 }
  0x8c   :  { %v28_v7 = vpop.xlane.xlu0 %27 }
  0x8d   :  { %v30_v8 = vmul.f32 0.0078125, %v28_v7 }
  0x8f   :  { %v31_v9 = vsub.f32 %v22_v0, %v30_v8 }
  0x91   :  { %v32_v10 = vmul.f32 %v31_v9, %v31_v9 }
  0x93   :  { %v33_v11 = vsel %vm25_vm0, %v32_v10, 0.0 }
  0x94   :  { %34 = vadd.xlane.f32.xlu0 %v33_v11 }
 0x11d   :  { %v35_v25 = vpop.xlane.xlu0 %34 }
 0x11e   :  { %v36_v26 = vmul.f32 0.0078125, %v35_v25 }
 0x120   :  { %v37_v27 = vadd.f32 1e-05, %v36_v26 }
 0x122   :  { %210 = vrsqrt.f32 %v37_v27 }
 0x12f   :  { %v211_v28 = vpop.eup %210 }
 0x130   :  { %v39_v30 = vmul.f32 %v211_v28, %v31_v9 }
 0x132   :  { %v46_v32 = vmul.f32 %v153_v29, %v39_v30 }
 0x134   :  { %v53_v33 = vadd.f32 %v154_v31, %v46_v32 }
 0x136   :  { %206 = vmatmul.mubr.f32.vlgmr.msra.gmra.mxu0 %v53_v33 }
 0x1f6   :  { %v143_v35 = vpop.f32.mrf.mxu0 }
 0x1f7   :  { %v144_v36 = vadd.f32 %v155_v34, %v143_v35 }
 0x1f8   :  { %v207_v37 = vpop.f32.mrf.mxu0 }
 0x1f9   :  { %148 = vst.msk [vmem:[%s314_s5] sm:$0x3] %vm147_vm2, %v144_v36 }

// kernel: vit_forward.5
= control target key start
LH: loop header
LB: loop body
LE: loop exit
PB: predicated region body
PF: predicated region fallthrough
CT: control target
= control target key end

     0   :  { %v3780_v5 = vmov 0.0   ;;  %v3781_v45 = vmov 0   ;;  %vm3782_vm0 = vmmov 0   ;;  %vm454_vm1 = vcmask 261120   ;;  %s3785_s20 = smov 64   ;;  %s3786_s21 = smov 32   ;;  %s4715_s0 = inlined_call_operand.vmem [shape: f32[48,128], index: 0, kind: input, shape index: {}]   ;;  %s4716_s3 = inlined_call_operand.vmem [shape: bf16[128,384], index: 3, kind: input, shape index: {}]   ;;  %s4717_s1 = inlined_call_operand.vmem [shape: f32[1,128], index: 1, kind: input, shape index: {}]   ;;  %s4718_s2 = inlined_call_operand.vmem [shape: f32[1,128], index: 2, kind: input, shape index: {}]   ;;  %s4719_s4 = inlined_call_operand.vmem [shape: f32[1,384], index: 4, kind: input, shape index: {}]   ;;  %s4720_s5 = inlined_call_operand.vmem [shape: bf16[128,128], index: 5, kind: input, shape index: {}]   ;;  %s4721_s6 = inlined_call_operand.vmem [shape: f32[1,128], index: 6, kind: input, shape index: {}]   ;;  %s4722_s9 = inlined_call_operand.vmem [shape: bf16[128,256], index: 9, kind: input, shape index: {}]   ;;  %s4723_s7 = inlined_call_operand.vmem [shape: f32[1,128], index: 7, kind: input, shape index: {}]   ;;  %s4724_s8 = inlined_call_operand.vmem [shape: f32[1,128], index: 8, kind: input, shape index: {}]   ;;  %s4725_s11 = inlined_call_operand.vmem [shape: bf16[256,128], index: 11, kind: input, shape index: {}]   ;;  %s4726_s10 = inlined_call_operand.vmem [shape: f32[1,256], index: 10, kind: input, shape index: {}]   ;;  %s4727_s12 = inlined_call_operand.vmem [shape: f32[1,128], index: 12, kind: input, shape index: {}]   ;;  %s4728_s13 = inlined_call_operand.vmem [shape: f32[48,128], index: 13, kind: output, shape index: {}]  }
   0x1   :  { %v45_v0 = vld [vmem:[%s4715_s0] sm:$0xff]  ;;  %v47_v1 = vld [vmem:[%s4715_s0 + $0x10] sm:$0xff]  ;;  %v46_v2 = vld [vmem:[%s4715_s0 + $0x8] sm:$0xff]  ;;  %3291 = vmatprep.subr.bf16.mxu1 %v3780_v5  ;;  %356 = vmatprep.mubr.bf16.mxu0 %v3781_v45  ;;  %vm563_vm2 = vcmask 1043456   ;;  %vm521_vm4 = vcmask 195584  }
   0x2   :  { %53 = vadd.xlane.f32.xlu0 %v45_v0  ;;  %57 = vadd.xlane.f32.xlu1 %v47_v1  ;;  %v48_v3 = vld [vmem:[%s4715_s0 + $0x18] sm:$0xff]  ;;  %v3544_v6 = vld [vmem:[%s4716_s3 + $0xa8] ss:$12 sps:$4 sm:$0xff]   ;;  %v3899_v24 = vld [vmem:[%s4715_s0 + $0x20] sm:$0xff] }
   0x3   :  { %v3542_v4 = vld [vmem:[%s4716_s3 + $0xac] ss:$12 sps:$4 sm:$0xff]   ;;  %v3545_v7 = vld [vmem:[%s4716_s3 + $0xb0] ss:$12 sps:$4 sm:$0xff]   ;;  %v3546_v26 = vld [vmem:[%s4716_s3 + $0x94] ss:$12 sps:$4 sm:$0xff]   ;;  %3307 = vmatprep.mubr.msk.bf16.mxu1 %vm3782_vm0, %v3780_v5 }
   0x4   :  { %324 = vmatprep.subr.bf16.mxu0 %v3542_v4  ;;  %3292 = vmatpush3.bf16.msra.mxu1 %v3545_v7  ;;  %v3905_v25 = vld [vmem:[%s4715_s0 + $0x28] sm:$0xff]  ;;  %v3548_v27 = vld [vmem:[%s4716_s3 + $0x90] ss:$12 sps:$4 sm:$0xff]   ;;  %v3549_v28 = vld [vmem:[%s4716_s3 + $0x98] ss:$12 sps:$4 sm:$0xff]  }
   0x5   :  { %325 = vmatpush1.bf16.msra.mxu0 %v3544_v6  ;;  %3293 = vmatprep.subr.bf16.mxu1 %v3780_v5  ;;  %v3550_v29 = vld [vmem:[%s4716_s3 + $0x7c] ss:$12 sps:$4 sm:$0xff]   ;;  %v3552_v30 = vld [vmem:[%s4716_s3 + $0x78] ss:$12 sps:$4 sm:$0xff]   ;;  %v3553_v31 = vld [vmem:[%s4716_s3 + $0x80] ss:$12 sps:$4 sm:$0xff]  }
   0x6   :  { %55 = vadd.xlane.f32.xlu0 %v46_v2  ;;  %59 = vadd.xlane.f32.xlu1 %v48_v3  ;;  %v3554_v32 = vld [vmem:[%s4716_s3 + $0x64] ss:$12 sps:$4 sm:$0xff]   ;;  %v3556_v33 = vld [vmem:[%s4716_s3 + $0x60] ss:$12 sps:$4 sm:$0xff]   ;;  %v3557_v34 = vld [vmem:[%s4716_s3 + $0x68] ss:$12 sps:$4 sm:$0xff]  }
   0x7   :  { %326 = vmatprep.subr.bf16.mxu0 %v3546_v26  ;;  %v3558_v35 = vld [vmem:[%s4716_s3 + $0x4c] ss:$12 sps:$4 sm:$0xff]   ;;  %v3560_v36 = vld [vmem:[%s4716_s3 + $0x48] ss:$12 sps:$4 sm:$0xff]   ;;  %v3561_v37 = vld [vmem:[%s4716_s3 + $0x50] ss:$12 sps:$4 sm:$0xff]  }
   0x8   :  { %3294 = vmatpush3.bf16.msra.mxu1 %v3549_v28  ;;  %v3562_v38 = vld [vmem:[%s4716_s3 + $0x34] ss:$12 sps:$4 sm:$0xff]   ;;  %v3564_v39 = vld [vmem:[%s4716_s3 + $0x30] ss:$12 sps:$4 sm:$0xff]   ;;  %v3565_v40 = vld [vmem:[%s4716_s3 + $0x38] ss:$12 sps:$4 sm:$0xff]  }
   0x9   :  { %327 = vmatpush1.bf16.msra.mxu0 %v3548_v27  ;;  %3295 = vmatprep.subr.bf16.mxu1 %v3780_v5  ;;  %v3566_v41 = vld [vmem:[%s4716_s3 + $0x1c] ss:$12 sps:$4 sm:$0xff]   ;;  %v3568_v42 = vld [vmem:[%s4716_s3 + $0x18] ss:$12 sps:$4 sm:$0xff]   ;;  %v3569_v43 = vld [vmem:[%s4716_s3 + $0x20] ss:$12 sps:$4 sm:$0xff]  }
   0xa   :  { %328 = vmatprep.subr.bf16.mxu0 %v3550_v29  ;;  %v3570_v44 = vld [vmem:[%s4716_s3 + $0x4] ss:$12 sps:$4 sm:$0xff]   ;;  %v3572_v46 = vld [vmem:[%s4716_s3] ss:$12 sps:$4 sm:$0xff]   ;;  %v3573_v47 = vld [vmem:[%s4716_s3 + $0x8] ss:$12 sps:$4 sm:$0xff]  }
   0xb   :  { %v3024_v7 = vld [vmem:[%s4717_s1] ss:$0 sm:$0xff] }
   0xc   :  { %3296 = vmatpush3.bf16.msra.mxu1 %v3553_v31 }
   0xd   :  { %329 = vmatpush1.bf16.msra.mxu0 %v3552_v30  ;;  %3297 = vmatprep.subr.bf16.mxu1 %v3780_v5 }
   0xe   :  { %330 = vmatprep.subr.bf16.mxu0 %v3554_v32 }
  0x10   :  { %3298 = vmatpush3.bf16.msra.mxu1 %v3557_v34 }
  0x11   :  { %331 = vmatpush1.bf16.msra.mxu0 %v3556_v33  ;;  %3299 = vmatprep.subr.bf16.mxu1 %v3780_v5 }
  0x12   :  { %332 = vmatprep.subr.bf16.mxu0 %v3558_v35 }
  0x14   :  { %3300 = vmatpush3.bf16.msra.mxu1 %v3561_v37 }
  0x15   :  { %333 = vmatpush1.bf16.msra.mxu0 %v3560_v36  ;;  %3301 = vmatprep.subr.bf16.mxu1 %v3780_v5 }
  0x16   :  { %334 = vmatprep.subr.bf16.mxu0 %v3562_v38 }
  0x18   :  { %3302 = vmatpush3.bf16.msra.mxu1 %v3565_v40 }
  0x19   :  { %335 = vmatpush1.bf16.msra.mxu0 %v3564_v39  ;;  %3303 = vmatprep.subr.bf16.mxu1 %v3780_v5 }
  0x1a   :  { %336 = vmatprep.subr.bf16.mxu0 %v3566_v41 }
  0x1c   :  { %3304 = vmatpush3.bf16.msra.mxu1 %v3569_v43 }
  0x1d   :  { %337 = vmatpush1.bf16.msra.mxu0 %v3568_v42  ;;  %3305 = vmatprep.subr.bf16.mxu1 %v3780_v5  ;;  %v179_v42 = vld [vmem:[%s4719_s4] sm:$0x7]  ;;  %s3783_s4 = smov 96  }
  0x1e   :  { %338 = vmatprep.subr.bf16.mxu0 %v3570_v44 }
  0x20   :  { %3306 = vmatpush3.bf16.msra.mxu1 %v3573_v47 }
  0x21   :  { %339 = vmatpush1.bf16.msra.mxu0 %v3572_v46 }
  0x8b   :  { %v54_v8 = vpop.xlane.xlu0 %53  ;;  %v58_v9 = vpop.xlane.xlu1 %57 }
  0x8c   :  { %v66_v10 = vmul.f32 0.0078125, %v54_v8  ;;  %v68_v11 = vmul.f32 0.0078125, %v58_v9 }
  0x8e   :  { %v3880_v12 = vsub.f32 %v45_v0, %v66_v10  ;;  %v3882_v13 = vsub.f32 %v47_v1, %v68_v11 }
  0x8f   :  { %v56_v14 = vpop.xlane.xlu0 %55  ;;  %v60_v15 = vpop.xlane.xlu1 %59 }
  0x90   :  { %v67_v16 = vmul.f32 0.0078125, %v56_v14  ;;  %v78_v17 = vmul.f32 %v3880_v12, %v3880_v12  ;;  %v69_v18 = vmul.f32 0.0078125, %v60_v15  ;;  %v80_v19 = vmul.f32 %v3882_v13, %v3882_v13  ;;  %v3025_v14 = vld [vmem:[%s4718_s2] ss:$0 sm:$0xff] }
  0x92   :  { %84 = vadd.xlane.f32.xlu0 %v78_v17  ;;  %v3888_v20 = vsub.f32 %v46_v2, %v67_v16  ;;  %v3890_v21 = vsub.f32 %v48_v3, %v69_v18 }
  0x94   :  { %v79_v22 = vmul.f32 %v3888_v20, %v3888_v20  ;;  %v81_v23 = vmul.f32 %v3890_v21, %v3890_v21 }
  0x96   :  { %88 = vadd.xlane.f32.xlu0 %v80_v19  ;;  %86 = vadd.xlane.f32.xlu1 %v79_v22 }
  0x9a   :  { %90 = vadd.xlane.f32.xlu1 %v81_v23  ;;  %61 = vadd.xlane.f32.xlu0 %v3899_v24 }
  0x9e   :  { %63 = vadd.xlane.f32.xlu1 %v3905_v25 }
 0x11b   :  { %v85_v48 = vpop.xlane.xlu0 %84 }
 0x11c   :  { %v96_v49 = vmul.f32 0.0078125, %v85_v48 }
 0x11e   :  { %v102_v50 = vadd.f32 1e-05, %v96_v49 }
 0x11f   :  { %v87_v51 = vpop.xlane.xlu1 %86  ;;  %v89_v52 = vpop.xlane.xlu0 %88 }
 0x120   :  { %3630 = vrsqrt.f32 %v102_v50  ;;  %v97_v53 = vmul.f32 0.0078125, %v87_v51  ;;  %v98_v54 = vmul.f32 0.0078125, %v89_v52 }
 0x122   :  { %v103_v55 = vadd.f32 1e-05, %v97_v53  ;;  %v104_v56 = vadd.f32 1e-05, %v98_v54 }
 0x123   :  { %v91_v57 = vpop.xlane.xlu1 %90  ;;  %v62_v58 = vpop.xlane.xlu0 %61 }
 0x124   :  { %3632 = vrsqrt.f32 %v103_v55  ;;  %v99_v59 = vmul.f32 0.0078125, %v91_v57  ;;  %v70_v60 = vmul.f32 0.0078125, %v62_v58 }
 0x125   :  { %3634 = vrsqrt.f32 %v104_v56 }
 0x126   :  { %v105_v61 = vadd.f32 1e-05, %v99_v59  ;;  %v76_v62 = vsub.f32 %v3899_v24, %v70_v60 }
 0x127   :  { %v64_v63 = vpop.xlane.xlu1 %63 }
 0x128   :  { %3636 = vrsqrt.f32 %v105_v61  ;;  %v71_v0 = vmul.f32 0.0078125, %v64_v63  ;;  %v82_v1 = vmul.f32 %v76_v62, %v76_v62 }
 0x12a   :  { %v77_v2 = vsub.f32 %v3905_v25, %v71_v0  ;;  %92 = vadd.xlane.f32.xlu0 %v82_v1 }
 0x12c   :  { %v83_v3 = vmul.f32 %v77_v2, %v77_v2 }
 0x12d   :  { %v3631_v4 = vpop.eup %3630 }
 0x12e   :  { %94 = vadd.xlane.f32.xlu1 %v83_v3  ;;  %v114_v6 = vmul.f32 %v3631_v4, %v3880_v12 }
 0x130   :  { %v126_v10 = vmul.f32 %v3024_v7, %v114_v6 }
 0x131   :  { %v3633_v8 = vpop.eup %3632 }
 0x132   :  { %v115_v9 = vmul.f32 %v3633_v8, %v3888_v20  ;;  %v3635_v11 = vpop.eup %3634  ;;  %v138_v17 = vadd.f32 %v3025_v14, %v126_v10 }
 0x133   :  { %v116_v19 = vmul.f32 %v3635_v11, %v3882_v13 }
 0x134   :  { %v127_v15 = vmul.f32 %v3024_v7, %v115_v9 }
 0x135   :  { %v3637_v16 = vpop.eup %3636  ;;  %v128_v24 = vmul.f32 %v3024_v7, %v116_v19 }
 0x136   :  { %v139_v18 = vadd.f32 %v3025_v14, %v127_v15  ;;  %v117_v12 = vmul.f32 %v3637_v16, %v3890_v21 }
 0x137   :  { %v140_v25 = vadd.f32 %v3025_v14, %v128_v24 }
 0x138   :  { %v144_v22 = vpack.c.bf16 %v139_v18, %v138_v17  ;;  %v129_v23 = vmul.f32 %v3024_v7, %v117_v12 }
 0x13a   :  { %357 = vmatmul.mubr.bf16.vlgmr.msra.gmra.mxu0 %v144_v22  ;;  %3308 = vmatmul.mubr.bf16.vlgmr.msra.gmra.mxu1 %v144_v22  ;;  %v141_v20 = vadd.f32 %v3025_v14, %v129_v23 }
 0x13b   :  { %366 = vmatprep.mubr.bf16.mxu0 %v3781_v45  ;;  %3311 = vmatprep.mubr.msk.bf16.mxu1 %vm3782_vm0, %v3780_v5 }
 0x13c   :  { %v145_v26 = vpack.c.bf16 %v141_v20, %v140_v25 }
 0x142   :  { %367 = vmatmul.mubr.bf16.gmra.mxu0 %v145_v26  ;;  %3312 = vmatmul.mubr.bf16.gmra.mxu1 %v145_v26 }
 0x143   :  { %376 = vmatprep.mubr.bf16.mxu0 %v3781_v45  ;;  %3315 = vmatprep.mubr.msk.bf16.mxu1 %vm3782_vm0, %v3780_v5  ;;  %v181_v5 = vlaneseq }
 0x145   :  { %v3999_v40 = vshrl.u32 %v181_v5, 7 }
 0x147   :  { %v183_v41 = vsub.s32 0, %v3999_v40  ;;  %v187_v43 = vsub.s32 1, %v3999_v40  ;;  %v191_v50 = vsub.s32 2, %v3999_v40 }
 0x149   :  { %v4008_v47 = vrot.slane %v179_v42, %v183_v41  ;;  %v4013_v51 = vrot.slane %v179_v42, %v187_v43  ;;  %v4017_v58 = vrot.slane %v179_v42, %v191_v50  ;;  %v3784_v50 = vmov -1e+30  }
 0x1b3   :  { %v93_v13 = vpop.xlane.xlu0 %92 }
 0x1b4   :  { %v100_v21 = vmul.f32 0.0078125, %v93_v13 }
 0x1b6   :  { %v106_v27 = vadd.f32 1e-05, %v100_v21 }
 0x1b7   :  { %v95_v28 = vpop.xlane.xlu1 %94 }
 0x1b8   :  { %v101_v29 = vmul.f32 0.0078125, %v95_v28  ;;  %3638 = vrsqrt.f32 %v106_v27 }
 0x1ba   :  { %v107_v30 = vadd.f32 1e-05, %v101_v29 }
 0x1bc   :  { %3640 = vrsqrt.f32 %v107_v30 }
 0x1c5   :  { %v3639_v31 = vpop.eup %3638 }
 0x1c6   :  { %v118_v32 = vmul.f32 %v3639_v31, %v76_v62 }
 0x1c8   :  { %v130_v33 = vmul.f32 %v3024_v7, %v118_v32 }
 0x1c9   :  { %v3641_v34 = vpop.eup %3640 }
 0x1ca   :  { %v119_v35 = vmul.f32 %v3641_v34, %v77_v2  ;;  %v142_v37 = vadd.f32 %v3025_v14, %v130_v33 }
 0x1cc   :  { %v131_v36 = vmul.f32 %v3024_v7, %v119_v35 }
 0x1ce   :  { %v143_v38 = vadd.f32 %v3025_v14, %v131_v36 }
 0x1d0   :  { %v146_v39 = vpack.c.bf16 %v143_v38, %v142_v37 }
 0x1d2   :  { %377 = vmatmul.mubr.bf16.gmra.mxu0 %v146_v39  ;;  %3316 = vmatmul.mubr.bf16.gmra.mxu1 %v146_v39  ;;  %v445_v39 = vand.u32 127, %v181_v5 }
 0x1d4   :  { %vm446_vm3 = vcmp.lt.s32.totalorder %v445_v39, 17 }
 0x1fa   :  { %v358_v44 = vpop.f32.mrf.mxu0  ;;  %v421_v46 = vpop.f32.mrf.mxu1 }
 0x1fb   :  { %v359_v54 = vadd.f32 %v358_v44, %v4008_v47  ;;  %v422_v8 = vadd.f32 %v421_v46, %v4017_v58 }
 0x1fc   :  { %v360_v48 = vpop.f32.mrf.mxu0  ;;  %v3309_v49 = vpop.f32.mrf.mxu1 }
 0x1fd   :  { %v361_v59 = vadd.f32 %v360_v48, %v4013_v51 }
 0x1fe   :  { %v362_v52 = vpop.f32.mrf.mxu0  ;;  %v424_v53 = vpop.f32.mrf.mxu1 }
 0x1ff   :  { %v363_v55 = vadd.f32 %v362_v52, %v4008_v47  ;;  %v425_v2 = vadd.f32 %v424_v53, %v4017_v58  ;;  %v4089_v52 = vsel %vm446_vm3, 0.0, %v3784_v50 }
 0x200   :  { %v364_v56 = vpop.f32.mrf.mxu0  ;;  %v3310_v57 = vpop.f32.mrf.mxu1 }
 0x201   :  { %v4020_v60 = vpack.c.bf16 %v363_v55, %v359_v54  ;;  %v365_v61 = vadd.f32 %v364_v56, %v4013_v51  ;;  %v4042_v15 = vpack.c.bf16 %v425_v2, %v422_v8 }
 0x202   :  { %v368_v62 = vpop.f32.mrf.mxu0  ;;  %v429_v63 = vpop.f32.mrf.mxu1 }
 0x203   :  { %v4023_v0 = vpack.c.bf16 %v365_v61, %v361_v59  ;;  %v430_v1 = vadd.f32 %v429_v63, %v4017_v58  ;;  %3323 = vmatprep.mubr.msk.bf16.mxu0 %vm454_vm1, %v4020_v60  ;;  %v369_v10 = vadd.f32 %v368_v62, %v4008_v47 }
 0x204   :  { %v370_v3 = vpop.f32.mrf.mxu0  ;;  %v3313_v4 = vpop.f32.mrf.mxu1 }
 0x205   :  { %v4029_v6 = vpack.c.bf16 %v430_v1, %v430_v1  ;;  %v371_v7 = vadd.f32 %v370_v3, %v4013_v51  ;;  %629 = vrot.lane.b32.xlu1 %v4023_v0, %s3783_s4  ;;  %v4053_v18 = vpack.c.bf16 %v369_v10, %v369_v10  ;;  %v462_v19 = vsel %vm454_vm1, %v4023_v0, 0 }
 0x206   :  { %v432_v9 = vpop.f32.mrf.mxu1  ;;  %v372_v25 = vpop.f32.mrf.mxu0 }
 0x207   :  { %v4036_v11 = vpack.c.bf16 %v371_v7, %v371_v7  ;;  %3513 = vmatprep.subr.msk.bf16.mxu1 %vm563_vm2, %v4029_v6  ;;  %v565_v14 = vsel %vm563_vm2, %v4029_v6, 0  ;;  %v373_v28 = vadd.f32 %v372_v25, %v4008_v47  ;;  %v433_v29 = vadd.f32 %v432_v9, %v4017_v58 }
 0x208   :  { %v3314_v16 = vpop.f32.mrf.mxu1  ;;  %3328 = vmatpush3.bf16.msra.mxu1 %v565_v14  ;;  %v4070_v13 = vpop.f32.mrf.mxu0 }
 0x209   :  { %623 = vrot.lane.b32.xlu1 %v4020_v60, %s3783_s4  ;;  %3511 = vmatprep.subr.msk.bf16.mxu0 %vm454_vm1, %v4036_v11  ;;  %v465_v17 = vsel %vm454_vm1, %v4036_v11, 0 }
 0x20a   :  { %3329 = vmatprep.subr.bf16.mxu1 %v4042_v15  ;;  %631 = vrot.lane.b32.xlu0 %v4036_v11, %s3783_s4 }
 0x20b   :  { %3320 = vmatpush3.bf16.xpose.msra.mxu0 %v465_v17 }
 0x20c   :  { %3512 = vmatprep.subr.msk.bf16.mxu0 %vm454_vm1, %v4023_v0  ;;  %3330 = vmatpush3.bf16.msra.mxu1 %v4042_v15 }
 0x20d   :  { %625 = vrot.lane.b32.xlu1 %v4053_v18, %s3783_s4 }
 0x213   :  { %3322 = vmatpush3.bf16.xpose.msra.mxu0 %v462_v19 }
 0x21a   :  { %3324 = vmatmul.mubr.msk.bf16.vlgmr.msra.gmra.mxu0 %vm454_vm1, %v4053_v18 }
 0x277   :  { %v630_v12 = vpop.permute.xlu1 %629 }
 0x278   :  { %v640_v20 = vsel %vm454_vm1, %v630_v12, 0 }
 0x27b   :  { %v624_v22 = vpop.permute.xlu1 %623 }
 0x27c   :  { %v632_v23 = vpop.permute.xlu0 %631  ;;  %3339 = vmatprep.mubr.msk.bf16.mxu0 %vm454_vm1, %v624_v22 }
 0x27d   :  { %v643_v24 = vsel %vm454_vm1, %v632_v23, 0  ;;  %3514 = vmatprep.subr.msk.bf16.mxu0 %vm454_vm1, %v632_v23 }
 0x27e   :  { %3336 = vmatpush3.bf16.xpose.msra.mxu0 %v643_v24 }
 0x27f   :  { %3515 = vmatprep.subr.msk.bf16.mxu0 %vm454_vm1, %v630_v12  ;;  %v626_v26 = vpop.permute.xlu1 %625 }
 0x286   :  { %3338 = vmatpush3.bf16.xpose.msra.mxu0 %v640_v20 }
 0x28d   :  { %3340 = vmatmul.mubr.msk.bf16.vlgmr.msra.gmra.mxu0 %vm454_vm1, %v626_v26 }
 0x292   :  { %v378_v21 = vpop.f32.mrf.mxu0  ;;  %v437_v27 = vpop.f32.mrf.mxu1 }
 0x293   :  { %v379_v30 = vadd.f32 %v378_v21, %v4008_v47  ;;  %v438_v31 = vadd.f32 %v437_v27, %v4017_v58 }
 0x294   :  { %v3317_v32 = vpop.f32.mrf.mxu1  ;;  %v4082_v37 = vpop.f32.mrf.mxu0 }
 0x295   :  { %v4076_v33 = vpack.c.bf16 %v379_v30, %v373_v28  ;;  %v4078_v34 = vpack.c.bf16 %v438_v31, %v433_v29 }
 0x296   :  { %v4080_v35 = vpop.f32.mrf.mxu1  ;;  %v4084_v38 = vpop.f32.mrf.mxu0 }
 0x298   :  { %v3318_v36 = vpop.f32.mrf.mxu1  ;;  %v4087_v42 = vpop.f32.mrf.mxu0 }
 0x2da   :  { %v3325_v44 = vpop.f32.mrf.mxu0 }
 0x2db   :  { %v517_v48 = vmul.f32 0.17677669, %v3325_v44 }
 0x2dc   :  { %v501_v46 = vpop.f32.mrf.mxu0 }
 0x2dd   :  { %v515_v49 = vmul.f32 0.17677669, %v501_v46  ;;  %v520_v5 = vadd.f32 %v517_v48, %v4089_v52 }
 0x2de   :  { %v3326_v53 = vpop.f32.mrf.mxu0 }
 0x2df   :  { %v518_v54 = vadd.f32 %v515_v49, %v4089_v52  ;;  %v528_v61 = vsel %vm521_vm4, %v520_v5, -inf }
 0x2e0   :  { %v504_v55 = vpop.f32.mrf.mxu0 }
 0x2e1   :  { %v516_v56 = vmul.f32 0.17677669, %v504_v55  ;;  %v522_v57 = vsel %vm521_vm4, %v518_v54, -inf }
 0x2e2   :  { %523 = vmax.xlane.f32.xlu0 %v522_v57 }
 0x2e3   :  { %v519_v59 = vadd.f32 %v516_v56, %v4089_v52 }
 0x2e5   :  { %v525_v62 = vsel %vm521_vm4, %v519_v59, -inf }
 0x2e6   :  { %529 = vmax.xlane.f32.xlu0 %v528_v61  ;;  %526 = vmax.xlane.f32.xlu1 %v525_v62 }
 0x34d   :  { %v3341_v63 = vpop.f32.mrf.mxu0 }
 0x34e   :  { %v695_v1 = vmul.f32 0.17677669, %v3341_v63 }
 0x34f   :  { %v679_v2 = vpop.f32.mrf.mxu0 }
 0x350   :  { %v693_v3 = vmul.f32 0.17677669, %v679_v2  ;;  %v698_v4 = vadd.f32 %v695_v1, %v4089_v52 }
 0x351   :  { %v3342_v7 = vpop.f32.mrf.mxu0 }
 0x352   :  { %v705_v8 = vsel %vm521_vm4, %v698_v4, -inf  ;;  %v696_v9 = vadd.f32 %v693_v3, %v4089_v52 }
 0x353   :  { %706 = vmax.xlane.f32.xlu1 %v705_v8  ;;  %v682_v10 = vpop.f32.mrf.mxu0 }
 0x354   :  { %v694_v14 = vmul.f32 0.17677669, %v682_v10  ;;  %v699_v16 = vsel %vm521_vm4, %v696_v9, -inf }
 0x355   :  { %700 = vmax.xlane.f32.xlu0 %v699_v16 }
 0x356   :  { %v697_v17 = vadd.f32 %v694_v14, %v4089_v52 }
 0x358   :  { %v702_v19 = vsel %vm521_vm4, %v697_v17, -inf }
 0x359   :  { %703 = vmax.xlane.f32.xlu0 %v702_v19 }
 0x36b   :  { %v524_v12 = vpop.xlane.xlu0 %523 }
 0x36c   :  { %v531_v22 = vsub.f32 %v518_v54, %v524_v12 }
 0x36e   :  { %v534_v27 = vmul.f32 1.442695, %v531_v22 }
 0x36f   :  { %v527_v23 = vpop.xlane.xlu1 %526  ;;  %v530_v24 = vpop.xlane.xlu0 %529 }
 0x370   :  { %v532_v20 = vsub.f32 %v519_v59, %v527_v23  ;;  %v533_v25 = vsub.f32 %v520_v5, %v530_v24  ;;  %v3574_v23 = vld [vmem:[%s4720_s5 + $0x18] sm:$0xff]  }
 0x372   :  { %v536_v26 = vmul.f32 1.442695, %v532_v20  ;;  %v538_v21 = vmul.f32 1.442695, %v533_v25 }
 0x374   :  { %3642 = vpow2.f32 %v536_v26 }
 0x375   :  { %3644 = vpow2.f32 %v538_v21 }
 0x376   :  { %3646 = vpow2.f32 %v534_v27 }
 0x381   :  { %v3643_v28 = vpop.eup %3642 }
 0x382   :  { %v3645_v29 = vpop.eup %3644  ;;  %v543_v30 = vsel %vm521_vm4, %v3643_v28, 0.0 }
 0x383   :  { %544 = vadd.xlane.f32.xlu1 %v543_v30  ;;  %v546_v31 = vsel %vm521_vm4, %v3645_v29, 0.0  ;;  %v3647_v32 = vpop.eup %3646  ;;  %v3575_v30 = vld [vmem:[%s4720_s5 + $0x10] sm:$0xff]  }
 0x384   :  { %547 = vadd.xlane.f32.xlu0 %v546_v31  ;;  %v540_v36 = vsel %vm521_vm4, %v3647_v32, 0.0 }
 0x388   :  { %541 = vadd.xlane.f32.xlu0 %v540_v36 }
 0x3dc   :  { %v707_v39 = vpop.xlane.xlu1 %706 }
 0x3dd   :  { %v710_v44 = vsub.f32 %v698_v4, %v707_v39 }
 0x3de   :  { %v701_v46 = vpop.xlane.xlu0 %700 }
 0x3df   :  { %v715_v48 = vmul.f32 1.442695, %v710_v44  ;;  %v708_v49 = vsub.f32 %v696_v9, %v701_v46 }
 0x3e1   :  { %3648 = vpow2.f32 %v715_v48  ;;  %v711_v50 = vmul.f32 1.442695, %v708_v49 }
 0x3e2   :  { %v704_v53 = vpop.xlane.xlu0 %703 }
 0x3e3   :  { %3650 = vpow2.f32 %v711_v50  ;;  %v709_v54 = vsub.f32 %v697_v17, %v704_v53 }
 0x3e5   :  { %v713_v55 = vmul.f32 1.442695, %v709_v54 }
 0x3e7   :  { %3652 = vpow2.f32 %v713_v55 }
 0x3ee   :  { %v3649_v56 = vpop.eup %3648 }
 0x3ef   :  { %v723_v57 = vsel %vm521_vm4, %v3649_v56, 0.0 }
 0x3f0   :  { %v3651_v5 = vpop.eup %3650  ;;  %724 = vadd.xlane.f32.xlu1 %v723_v57 }
 0x3f1   :  { %v717_v59 = vsel %vm521_vm4, %v3651_v5, 0.0 }
 0x3f4   :  { %v3653_v61 = vpop.eup %3652  ;;  %718 = vadd.xlane.f32.xlu1 %v717_v59 }
 0x3f5   :  { %v720_v62 = vsel %vm521_vm4, %v3653_v61, 0.0 }
 0x3f6   :  { %721 = vadd.xlane.f32.xlu0 %v720_v62 }
 0x405   :  { %736 = vrot.lane.b32.xlu1 %v4042_v15, %s3783_s4 }
 0x409   :  { %942 = vrot.lane.b32.xlu1 %v4036_v11, %s3785_s20 }
 0x40c   :  { %738 = vrot.lane.b32.xlu0 %v4029_v6, %s3783_s4  ;;  %v545_v63 = vpop.xlane.xlu1 %544 }
 0x40d   :  { %v548_v1 = vpop.xlane.xlu0 %547  ;;  %940 = vrot.lane.b32.xlu1 %v4023_v0, %s3785_s20 }
 0x40e   :  { %3654 = vrcp.f32 %v548_v1 }
 0x40f   :  { %3656 = vrcp.f32 %v545_v63 }
 0x410   :  { %936 = vrot.lane.b32.xlu0 %v4020_v60, %s3785_s20 }
 0x411   :  { %v542_v2 = vpop.xlane.xlu0 %541  ;;  %938 = vrot.lane.b32.xlu1 %v4053_v18, %s3785_s20 }
 0x412   :  { %3658 = vrcp.f32 %v542_v2 }
 0x414   :  { %1188 = vrot.lane.b32.xlu0 %v4036_v11, %s3786_s21 }
 0x415   :  { %1186 = vrot.lane.b32.xlu1 %v4023_v0, %s3786_s21  ;;  %v3576_v0 = vld [vmem:[%s4720_s5 + $0x8] sm:$0xff]  }
 0x416   :  { %3359 = vmatprep.subr.bf16.mxu0 %v3576_v0 }
 0x417   :  { %3360 = vmatpush3.bf16.msra.mxu0 %v3576_v0 }
 0x418   :  { %1182 = vrot.lane.b32.xlu0 %v4020_v60, %s3786_s21  ;;  %v3577_v60 = vld [vmem:[%s4720_s5] sm:$0xff]  }
 0x419   :  { %1184 = vrot.lane.b32.xlu1 %v4053_v18, %s3786_s21  ;;  %3361 = vmatprep.subr.bf16.mxu0 %v3577_v60 }
 0x41b   :  { %v3655_v3 = vpop.eup %3654  ;;  %3362 = vmatpush3.bf16.msra.mxu0 %v3577_v60 }
 0x41c   :  { %v3657_v4 = vpop.eup %3656  ;;  %v554_v8 = vmul.f32 %v3655_v3, %v3645_v29 }
 0x41d   :  { %v553_v10 = vmul.f32 %v3657_v4, %v3643_v28  ;;  %v385_v4 = vadd.f32 %v4087_v42, %v4013_v51 }
 0x41e   :  { %v556_v16 = vpack.c.bf16 %v554_v8, %v554_v8 }
 0x41f   :  { %v3659_v7 = vpop.eup %3658 }
 0x420   :  { %v552_v9 = vmul.f32 %v3659_v7, %v3647_v32  ;;  %v4163_v7 = vpack.c.bf16 %v385_v4, %v385_v4 }
 0x422   :  { %v555_v14 = vpack.c.bf16 %v553_v10, %v552_v9  ;;  %v381_v9 = vadd.f32 %v4082_v37, %v4013_v51  ;;  %v375_v10 = vadd.f32 %v4070_v13, %v4013_v51  ;;  %v1447_v42 = vsel %vm454_vm1, %v4163_v7, 0 }
 0x423   :  { %v383_v51 = vadd.f32 %v4084_v38, %v4008_v47 }
 0x424   :  { %3331 = vmatprep.mubr.msk.bf16.mxu1 %vm521_vm4, %v555_v14 }
 0x425   :  { %3332 = vmatmul.mubr.msk.bf16.vlgmr.msra.gmra.mxu1 %vm521_vm4, %v556_v16  ;;  %v4172_v16 = vpack.c.bf16 %v381_v9, %v375_v10  ;;  %v4185_v13 = vpack.c.bf16 %v383_v51, %v383_v51 }
 0x427   :  { %v1444_v37 = vsel %vm454_vm1, %v4172_v16, 0 }
 0x479   :  { %v725_v11 = vpop.xlane.xlu1 %724 }
 0x47a   :  { %3660 = vrcp.f32 %v725_v11 }
 0x47d   :  { %v719_v18 = vpop.xlane.xlu1 %718 }
 0x47e   :  { %3662 = vrcp.f32 %v719_v18 }
 0x47f   :  { %v722_v17 = vpop.xlane.xlu0 %721 }
 0x480   :  { %3664 = vrcp.f32 %v722_v17 }
 0x481   :  { %v737_v22 = vpop.permute.xlu1 %736 }
 0x483   :  { %v739_v19 = vpop.permute.xlu0 %738 }
 0x484   :  { %v748_v12 = vsel %vm563_vm2, %v739_v19, 0  ;;  %3516 = vmatprep.subr.msk.bf16.mxu1 %vm563_vm2, %v739_v19 }
 0x485   :  { %3344 = vmatpush3.bf16.msra.mxu1 %v748_v12  ;;  %v943_v31 = vpop.permute.xlu1 %942 }
 0x486   :  { %3345 = vmatprep.subr.bf16.mxu1 %v737_v22  ;;  %v954_v57 = vsel %vm454_vm1, %v943_v31, 0 }
 0x487   :  { %v3661_v24 = vpop.eup %3660 }
 0x488   :  { %v731_v26 = vmul.f32 %v3661_v24, %v3649_v56 }
 0x489   :  { %3346 = vmatpush3.bf16.msra.mxu1 %v737_v22  ;;  %v941_v59 = vpop.permute.xlu1 %940 }
 0x48a   :  { %3351 = vmatprep.subr.bf16.mxu1 %v3574_v23  ;;  %v733_v29 = vpack.c.bf16 %v731_v26, %v731_v26 }
 0x48b   :  { %v3663_v20 = vpop.eup %3662 }
 0x48c   :  { %v729_v21 = vmul.f32 %v3663_v20, %v3651_v5  ;;  %v937_v5 = vpop.permute.xlu0 %936 }
 0x48d   :  { %v3665_v25 = vpop.eup %3664  ;;  %v939_v63 = vpop.permute.xlu1 %938 }
 0x48e   :  { %v730_v27 = vmul.f32 %v3665_v25, %v3653_v61  ;;  %v951_v61 = vsel %vm454_vm1, %v941_v59, 0 }
 0x490   :  { %v732_v28 = vpack.c.bf16 %v730_v27, %v729_v21  ;;  %v1189_v62 = vpop.permute.xlu0 %1188 }
 0x491   :  { %v1200_v1 = vsel %vm454_vm1, %v1189_v62, 0  ;;  %v1187_v3 = vpop.permute.xlu1 %1186 }
 0x492   :  { %3347 = vmatprep.mubr.msk.bf16.mxu1 %vm521_vm4, %v732_v28  ;;  %v1197_v8 = vsel %vm454_vm1, %v1187_v3, 0 }
 0x493   :  { %3348 = vmatmul.mubr.msk.bf16.vlgmr.msra.gmra.mxu1 %vm521_vm4, %v733_v29 }
 0x494   :  { %3352 = vmatpush3.bf16.msra.mxu1 %v3574_v23  ;;  %v1183_v2 = vpop.permute.xlu0 %1182 }
 0x495   :  { %3353 = vmatprep.subr.bf16.mxu1 %v3575_v30  ;;  %v1185_v14 = vpop.permute.xlu1 %1184 }
 0x498   :  { %3354 = vmatpush3.bf16.msra.mxu1 %v3575_v30 }
 0x499   :  { %3517 = vmatprep.subr.msk.bf16.mxu1 %vm454_vm1, %v943_v31 }
 0x4e5   :  { %v3333_v32 = vpop.f32.mrf.mxu1 }
 0x4e6   :  { %v616_v48 = vpack.c.bf16 %v3333_v32, %v3333_v32 }
 0x4e7   :  { %v601_v36 = vpop.f32.mrf.mxu1 }
 0x4e9   :  { %v3334_v39 = vpop.f32.mrf.mxu1 }
 0x4eb   :  { %v604_v44 = vpop.f32.mrf.mxu1 }
 0x4ec   :  { %v615_v46 = vpack.c.bf16 %v604_v44, %v601_v36 }
 0x4ee   :  { %3363 = vmatprep.mubr.msk.bf16.mxu0 %vm454_vm1, %v615_v46 }
 0x4ef   :  { %3364 = vmatmul.mubr.msk.bf16.vlgmr.msra.gmra.mxu0 %vm454_vm1, %v616_v48 }
 0x553   :  { %v3349_v49 = vpop.f32.mrf.mxu1 }
 0x554   :  { %v799_v56 = vpack.c.bf16 %v3349_v49, %v3349_v49 }
 0x555   :  { %v784_v50 = vpop.f32.mrf.mxu1 }
 0x557   :  { %v3350_v53 = vpop.f32.mrf.mxu1 }
 0x559   :  { %v787_v54 = vpop.f32.mrf.mxu1 }
 0x55a   :  { %v798_v55 = vpack.c.bf16 %v787_v54, %v784_v50 }
 0x55c   :  { %3355 = vmatprep.mubr.msk.bf16.mxu1 %vm454_vm1, %v798_v55 }
 0x55d   :  { %3356 = vmatmul.mubr.msk.bf16.vlgmr.msra.gmra.mxu1 %vm454_vm1, %v799_v56 }
 0x55e   :  { %3368 = vmatpush3.bf16.xpose.msra.mxu1 %v954_v57  ;;  %3371 = vmatprep.mubr.msk.bf16.mxu1 %vm454_vm1, %v937_v5 }
 0x55f   :  { %3518 = vmatprep.subr.msk.bf16.mxu1 %vm454_vm1, %v941_v59 }
 0x566   :  { %3370 = vmatpush3.bf16.xpose.msra.mxu1 %v951_v61 }
 0x567   :  { %3520 = vmatprep.subr.msk.bf16.mxu1 %vm454_vm1, %v1189_v62 }
 0x56d   :  { %3372 = vmatmul.mubr.msk.bf16.vlgmr.msra.gmra.mxu1 %vm454_vm1, %v939_v63 }
 0x56e   :  { %3392 = vmatpush3.bf16.xpose.msra.mxu1 %v1200_v1  ;;  %3395 = vmatprep.mubr.msk.bf16.mxu1 %vm454_vm1, %v1183_v2 }
 0x56f   :  { %3521 = vmatprep.subr.msk.bf16.mxu1 %vm454_vm1, %v1187_v3 }
 0x576   :  { %3394 = vmatpush3.bf16.xpose.msra.mxu1 %v1197_v8 }
 0x577   :  { %3523 = vmatprep.subr.msk.bf16.mxu1 %vm454_vm1, %v4163_v7 }
 0x57d   :  { %3396 = vmatmul.mubr.msk.bf16.vlgmr.msra.gmra.mxu1 %vm454_vm1, %v1185_v14 }
 0x57e   :  { %3416 = vmatpush3.bf16.xpose.msra.mxu1 %v1447_v42  ;;  %3419 = vmatprep.mubr.msk.bf16.mxu1 %vm454_vm1, %v4076_v33 }
 0x57f   :  { %3524 = vmatprep.subr.msk.bf16.mxu1 %vm454_vm1, %v4172_v16 }
 0x586   :  { %3418 = vmatpush3.bf16.xpose.msra.mxu1 %v1444_v37 }
 0x58d   :  { %3420 = vmatmul.mubr.msk.bf16.vlgmr.msra.gmra.mxu1 %vm454_vm1, %v4185_v13 }
 0x5af   :  { %v4189_v0 = vpop.f32.mrf.mxu0 }
 0x5b1   :  { %v4191_v60 = vpop.f32.mrf.mxu0 }
 0x5b3   :  { %v3366_v11 = vpop.f32.mrf.mxu0 }
 0x61d   :  { %v4193_v18 = vpop.f32.mrf.mxu1 }
 0x61f   :  { %v4195_v17 = vpop.f32.mrf.mxu1 }
 0x621   :  { %v3358_v19 = vpop.f32.mrf.mxu1 }
 0x623   :  { %v4197_v12 = vpop.f32.mrf.mxu1 }
 0x62d   :  { %v3373_v22 = vpop.f32.mrf.mxu1 }
 0x62e   :  { %v1006_v47 = vmul.f32 0.17677669, %v3373_v22 }
 0x62f   :  { %v990_v23 = vpop.f32.mrf.mxu1 }
 0x630   :  { %v1004_v38 = vmul.f32 0.17677669, %v990_v23  ;;  %v1009_v27 = vadd.f32 %v1006_v47, %v4089_v52 }
 0x631   :  { %v3374_v24 = vpop.f32.mrf.mxu1 }
 0x632   :  { %v1007_v20 = vadd.f32 %v1004_v38, %v4089_v52  ;;  %v1016_v29 = vsel %vm521_vm4, %v1009_v27, -inf }
 0x633   :  { %v993_v25 = vpop.f32.mrf.mxu1 }
 0x634   :  { %v1005_v26 = vmul.f32 0.17677669, %v993_v25  ;;  %v1010_v21 = vsel %vm521_vm4, %v1007_v20, -inf }
 0x635   :  { %1011 = vmax.xlane.f32.xlu0 %v1010_v21 }
 0x636   :  { %v1008_v28 = vadd.f32 %v1005_v26, %v4089_v52 }
 0x638   :  { %v1013_v30 = vsel %vm521_vm4, %v1008_v28, -inf }
 0x639   :  { %1017 = vmax.xlane.f32.xlu0 %v1016_v29  ;;  %1014 = vmax.xlane.f32.xlu1 %v1013_v30 }
 0x63d   :  { %v3397_v31 = vpop.f32.mrf.mxu1 }
 0x63e   :  { %v1252_v9 = vmul.f32 0.17677669, %v3397_v31 }
 0x63f   :  { %v1236_v32 = vpop.f32.mrf.mxu1 }
 0x640   :  { %v1250_v8 = vmul.f32 0.17677669, %v1236_v32  ;;  %v1255_v37 = vadd.f32 %v1252_v9, %v4089_v52 }
 0x641   :  { %v3398_v36 = vpop.f32.mrf.mxu1 }
 0x642   :  { %v1253_v14 = vadd.f32 %v1250_v8, %v4089_v52  ;;  %v1262_v11 = vsel %vm521_vm4, %v1255_v37, -inf }
 0x643   :  { %v1239_v39 = vpop.f32.mrf.mxu1 }
 0x644   :  { %v1251_v4 = vmul.f32 0.17677669, %v1239_v39  ;;  %v1256_v51 = vsel %vm521_vm4, %v1253_v14, -inf }
 0x646   :  { %v1254_v10 = vadd.f32 %v1251_v4, %v4089_v52 }
 0x648   :  { %v1259_v42 = vsel %vm521_vm4, %v1254_v10, -inf }
 0x64d   :  { %v4205_v44 = vpop.f32.mrf.mxu1 }
 0x64f   :  { %v4207_v46 = vpop.f32.mrf.mxu1 }
 0x650   :  { %v1497_v8 = vmul.f32 0.17677669, %v4207_v46 }
 0x651   :  { %v3422_v48 = vpop.f32.mrf.mxu1 }
 0x6be   :  { %v1012_v49 = vpop.xlane.xlu0 %1011 }
 0x6bf   :  { %v1019_v50 = vsub.f32 %v1007_v20, %v1012_v49  ;;  %v3578_v20 = vld [vmem:[%s4720_s5 + $0x28] sm:$0xff]  }
 0x6c1   :  { %v1022_v53 = vmul.f32 1.442695, %v1019_v50 }
 0x6c2   :  { %v1015_v54 = vpop.xlane.xlu1 %1014  ;;  %v1018_v55 = vpop.xlane.xlu0 %1017 }
 0x6c3   :  { %3666 = vpow2.f32 %v1022_v53  ;;  %v1020_v56 = vsub.f32 %v1008_v28, %v1015_v54  ;;  %v1021_v57 = vsub.f32 %v1009_v27, %v1018_v55 }
 0x6c5   :  { %v1024_v5 = vmul.f32 1.442695, %v1020_v56  ;;  %v1026_v59 = vmul.f32 1.442695, %v1021_v57 }
 0x6c7   :  { %3668 = vpow2.f32 %v1024_v5 }
 0x6c8   :  { %3670 = vpow2.f32 %v1026_v59 }
 0x6d0   :  { %v3667_v61 = vpop.eup %3666 }
 0x6d1   :  { %v1028_v62 = vsel %vm521_vm4, %v3667_v61, 0.0 }
 0x6d2   :  { %1029 = vadd.xlane.f32.xlu0 %v1028_v62 }
 0x6d4   :  { %v3669_v63 = vpop.eup %3668 }
 0x6d5   :  { %v3671_v1 = vpop.eup %3670  ;;  %v1031_v2 = vsel %vm521_vm4, %v3669_v63, 0.0 }
 0x6d6   :  { %1032 = vadd.xlane.f32.xlu0 %v1031_v2  ;;  %v1034_v3 = vsel %vm521_vm4, %v3671_v1, 0.0 }
 0x6d7   :  { %1035 = vadd.xlane.f32.xlu1 %v1034_v3  ;;  %v1499_v3 = vmul.f32 0.17677669, %v4205_v44 }
 0x6e8   :  { %1045 = vrot.lane.b32.xlu1 %v4042_v15, %s3785_s20 }
 0x6ec   :  { %1047 = vrot.lane.b32.xlu0 %v4029_v6, %s3785_s20 }
 0x70b   :  { %1260 = vmax.xlane.f32.xlu0 %v1259_v42  ;;  %v4247_v42 = vpop.f32.mrf.mxu0 }
 0x70c   :  { %1257 = vmax.xlane.f32.xlu1 %v1256_v51 }
 0x70f   :  { %1263 = vmax.xlane.f32.xlu0 %v1262_v11 }
 0x75b   :  { %v1030_v19 = vpop.xlane.xlu0 %1029 }
 0x75c   :  { %3672 = vrcp.f32 %v1030_v19 }
 0x75f   :  { %v1033_v22 = vpop.xlane.xlu0 %1032 }
 0x760   :  { %v1036_v23 = vpop.xlane.xlu1 %1035  ;;  %3674 = vrcp.f32 %v1033_v22 }
 0x761   :  { %3676 = vrcp.f32 %v1036_v23 }
 0x763   :  { %v1048_v47 = vpop.permute.xlu0 %1047 }
 0x764   :  { %v1057_v38 = vsel %vm563_vm2, %v1048_v47, 0  ;;  %3519 = vmatprep.subr.msk.bf16.mxu0 %vm563_vm2, %v1048_v47  ;;  %v1046_v24 = vpop.permute.xlu1 %1045 }
 0x765   :  { %3376 = vmatpush3.bf16.msra.mxu0 %v1057_v38 }
 0x766   :  { %3377 = vmatprep.subr.bf16.mxu0 %v1046_v24 }
 0x769   :  { %3378 = vmatpush3.bf16.msra.mxu0 %v1046_v24  ;;  %v3673_v25 = vpop.eup %3672 }
 0x76a   :  { %3383 = vmatprep.subr.bf16.mxu0 %v3578_v20  ;;  %v1040_v27 = vmul.f32 %v3673_v25, %v3667_v61  ;;  %v3580_v25 = vld [vmem:[%s4720_s5 + $0x38] sm:$0xff]  }
 0x76d   :  { %v3675_v26 = vpop.eup %3674 }
 0x76e   :  { %v3677_v21 = vpop.eup %3676  ;;  %v1041_v28 = vmul.f32 %v3675_v26, %v3669_v63  ;;  %v3579_v63 = vld [vmem:[%s4720_s5 + $0x20] sm:$0xff]  }
 0x76f   :  { %v1042_v29 = vmul.f32 %v3677_v21, %v3671_v1  ;;  %v1486_v1 = vpop.f32.mrf.mxu1 }
 0x770   :  { %v1043_v30 = vpack.c.bf16 %v1041_v28, %v1040_v27  ;;  %v1498_v2 = vmul.f32 0.17677669, %v1486_v1 }
 0x771   :  { %v1044_v31 = vpack.c.bf16 %v1042_v29, %v1042_v29 }
 0x772   :  { %3379 = vmatprep.mubr.msk.bf16.mxu0 %vm521_vm4, %v1043_v30  ;;  %v1501_v4 = vadd.f32 %v1498_v2, %v4089_v52  ;;  %v931_v2 = vadd.f32 %v4189_v0, %v4193_v18 }
 0x773   :  { %3380 = vmatmul.mubr.msk.bf16.vlgmr.msra.gmra.mxu0 %vm521_vm4, %v1044_v31 }
 0x774   :  { %3384 = vmatpush3.bf16.msra.mxu0 %v3578_v20  ;;  %v1506_v9 = vsel %vm521_vm4, %v1501_v4, -inf }
 0x775   :  { %3385 = vmatprep.subr.bf16.mxu0 %v3579_v63 }
 0x778   :  { %3386 = vmatpush3.bf16.msra.mxu0 %v3579_v63 }
 0x794   :  { %v1261_v32 = vpop.xlane.xlu0 %1260 }
 0x795   :  { %v1258_v36 = vpop.xlane.xlu1 %1257  ;;  %v1266_v39 = vsub.f32 %v1254_v10, %v1261_v32  ;;  %v1502_v10 = vadd.f32 %v1499_v3, %v4089_v52 }
 0x796   :  { %v1265_v48 = vsub.f32 %v1253_v14, %v1258_v36  ;;  %v3581_v36 = vld [vmem:[%s4720_s5 + $0x30] sm:$0xff]  }
 0x797   :  { %v1270_v49 = vmul.f32 1.442695, %v1266_v39  ;;  %v1509_v14 = vsel %vm521_vm4, %v1502_v10, -inf  ;;  %v441_v39 = vadd.f32 %v4080_v35, %v4017_v58 }
 0x798   :  { %v1264_v50 = vpop.xlane.xlu0 %1263  ;;  %v1268_v54 = vmul.f32 1.442695, %v1265_v48 }
 0x799   :  { %3678 = vpow2.f32 %v1270_v49  ;;  %v1267_v53 = vsub.f32 %v1255_v37, %v1264_v50  ;;  %v4263_v48 = vpack.c.bf16 %v441_v39, %v441_v39 }
 0x79b   :  { %v1272_v55 = vmul.f32 1.442695, %v1267_v53 }
 0x79d   :  { %3680 = vpow2.f32 %v1272_v55 }
 0x79e   :  { %3682 = vpow2.f32 %v1268_v54 }
 0x7a6   :  { %v3679_v56 = vpop.eup %3678 }
 0x7a7   :  { %v1277_v57 = vsel %vm521_vm4, %v3679_v56, 0.0 }
 0x7a8   :  { %1278 = vadd.xlane.f32.xlu0 %v1277_v57 }
 0x7aa   :  { %v3681_v5 = vpop.eup %3680 }
 0x7ab   :  { %v1280_v59 = vsel %vm521_vm4, %v3681_v5, 0.0  ;;  %v3683_v61 = vpop.eup %3682 }
 0x7ac   :  { %1281 = vadd.xlane.f32.xlu1 %v1280_v59  ;;  %v1274_v62 = vsel %vm521_vm4, %v3683_v61, 0.0 }
 0x7b0   :  { %1275 = vadd.xlane.f32.xlu1 %v1274_v62 }
 0x7be   :  { %1293 = vrot.lane.b32.xlu0 %v4029_v6, %s3786_s21  ;;  %v1500_v6 = vadd.f32 %v1497_v8, %v4089_v52 }
 0x7c1   :  { %1291 = vrot.lane.b32.xlu1 %v4042_v15, %s3786_s21  ;;  %v1503_v15 = vsel %vm521_vm4, %v1500_v6, -inf }
 0x7dd   :  { %1507 = vmax.xlane.f32.xlu0 %v1506_v9 }
 0x7e1   :  { %1510 = vmax.xlane.f32.xlu0 %v1509_v14 }
 0x7e5   :  { %1504 = vmax.xlane.f32.xlu1 %v1503_v15 }
 0x831   :  { %v1279_v44 = vpop.xlane.xlu0 %1278 }
 0x833   :  { %v3381_v37 = vpop.f32.mrf.mxu0 }
 0x834   :  { %v1108_v38 = vpack.c.bf16 %v3381_v37, %v3381_v37 }
 0x835   :  { %v1093_v51 = vpop.f32.mrf.mxu0  ;;  %v1282_v11 = vpop.xlane.xlu1 %1281 }
 0x836   :  { %v1294_v46 = vpop.permute.xlu0 %1293  ;;  %3684 = vrcp.f32 %v1282_v11 }
 0x837   :  { %3522 = vmatprep.subr.msk.bf16.mxu0 %vm563_vm2, %v1294_v46  ;;  %v3382_v19 = vpop.f32.mrf.mxu0  ;;  %3686 = vrcp.f32 %v1279_v44  ;;  %v1303_v24 = vsel %vm563_vm2, %v1294_v46, 0 }
 0x839   :  { %v1096_v22 = vpop.f32.mrf.mxu0  ;;  %v1276_v23 = vpop.xlane.xlu1 %1275 }
 0x83a   :  { %v1107_v47 = vpack.c.bf16 %v1096_v22, %v1093_v51  ;;  %3688 = vrcp.f32 %v1276_v23 }
 0x83c   :  { %3387 = vmatprep.mubr.msk.bf16.mxu0 %vm454_vm1, %v1107_v47 }
 0x83d   :  { %3388 = vmatmul.mubr.msk.bf16.vlgmr.msra.gmra.mxu0 %vm454_vm1, %v1108_v38  ;;  %v1292_v20 = vpop.permute.xlu1 %1291 }
 0x83e   :  { %3400 = vmatpush3.bf16.msra.mxu0 %v1303_v24 }
 0x83f   :  { %3401 = vmatprep.subr.bf16.mxu0 %v1292_v20 }
 0x842   :  { %3402 = vmatpush3.bf16.msra.mxu0 %v1292_v20 }
 0x843   :  { %3407 = vmatprep.subr.bf16.mxu0 %v3580_v25  ;;  %v3685_v26 = vpop.eup %3684 }
 0x844   :  { %v3687_v21 = vpop.eup %3686  ;;  %v1288_v28 = vmul.f32 %v3685_v26, %v3681_v5 }
 0x845   :  { %v1287_v30 = vmul.f32 %v3687_v21, %v3679_v56 }
 0x846   :  { %v1290_v32 = vpack.c.bf16 %v1288_v28, %v1288_v28 }
 0x847   :  { %v3689_v27 = vpop.eup %3688 }
 0x848   :  { %v1286_v29 = vmul.f32 %v3689_v27, %v3683_v61 }
 0x84a   :  { %v1289_v31 = vpack.c.bf16 %v1287_v30, %v1286_v29 }
 0x84c   :  { %3403 = vmatprep.mubr.msk.bf16.mxu0 %vm521_vm4, %v1289_v31  ;;  %v3582_v31 = vld [vmem:[%s4720_s5 + $0x8] sm:$0xff]  }
 0x84d   :  { %3404 = vmatmul.mubr.msk.bf16.vlgmr.msra.gmra.mxu0 %vm521_vm4, %v1290_v32  ;;  %v3583_v32 = vld [vmem:[%s4720_s5] sm:$0xff]  }
 0x84e   :  { %3408 = vmatpush3.bf16.msra.mxu0 %v3580_v25 }
 0x84f   :  { %3409 = vmatprep.subr.bf16.mxu0 %v3581_v36 }
 0x852   :  { %3410 = vmatpush3.bf16.msra.mxu0 %v3581_v36 }
 0x853   :  { %3525 = vmatprep.subr.msk.bf16.mxu0 %vm563_vm2, %v4263_v48 }
 0x866   :  { %v1508_v49 = vpop.xlane.xlu0 %1507 }
 0x867   :  { %v1513_v50 = vsub.f32 %v1501_v4, %v1508_v49  ;;  %v923_v4 = vadd.f32 %v4191_v60, %v4195_v17 }
 0x869   :  { %v1517_v53 = vmul.f32 1.442695, %v1513_v50 }
 0x86a   :  { %v1511_v54 = vpop.xlane.xlu0 %1510 }
 0x86b   :  { %3690 = vpow2.f32 %v1517_v53  ;;  %v1514_v55 = vsub.f32 %v1502_v10, %v1511_v54 }
 0x86d   :  { %v1519_v5 = vmul.f32 1.442695, %v1514_v55 }
 0x86e   :  { %v1505_v56 = vpop.xlane.xlu1 %1504 }
 0x86f   :  { %v1512_v57 = vsub.f32 %v1500_v6, %v1505_v56  ;;  %v926_v6 = vadd.f32 %v4247_v42, %v4197_v12  ;;  %v1545_v12 = vsel %vm563_vm2, %v4263_v48, 0 }
 0x871   :  { %v1515_v58 = vmul.f32 1.442695, %v1512_v57 }
 0x873   :  { %3692 = vpow2.f32 %v1515_v58 }
 0x874   :  { %3694 = vpow2.f32 %v1519_v5 }
 0x878   :  { %v3691_v35 = vpop.eup %3690 }
 0x879   :  { %v1524_v59 = vsel %vm521_vm4, %v3691_v35, 0.0 }
 0x87a   :  { %1525 = vadd.xlane.f32.xlu0 %v1524_v59 }
 0x880   :  { %v3693_v61 = vpop.eup %3692 }
 0x881   :  { %v1521_v62 = vsel %vm521_vm4, %v3693_v61, 0.0  ;;  %v3695_v63 = vpop.eup %3694 }
 0x882   :  { %1522 = vadd.xlane.f32.xlu1 %v1521_v62  ;;  %v1527_v1 = vsel %vm521_vm4, %v3695_v63, 0.0 }
 0x886   :  { %1528 = vadd.xlane.f32.xlu1 %v1527_v1 }
 0x890   :  { %1611 = vrot.lane.b32.xlu0 %v4163_v7, %s3783_s4 }
 0x897   :  { %1609 = vrot.lane.b32.xlu1 %v4172_v16, %s3783_s4 }
 0x89b   :  { %1603 = vrot.lane.b32.xlu1 %v4076_v33, %s3783_s4 }
 0x89f   :  { %1605 = vrot.lane.b32.xlu1 %v4185_v13, %s3783_s4 }
 0x8fd   :  { %v3389_v3 = vpop.f32.mrf.mxu0 }
 0x8fe   :  { %v1181_v8 = vadd.f32 %v3389_v3, %v931_v2 }
 0x8ff   :  { %v1165_v9 = vpop.f32.mrf.mxu0 }
 0x900   :  { %v1179_v10 = vadd.f32 %v1165_v9, %v923_v4 }
 0x901   :  { %v3390_v14 = vpop.f32.mrf.mxu0 }
 0x903   :  { %v1168_v15 = vpop.f32.mrf.mxu0  ;;  %v1526_v37 = vpop.xlane.xlu0 %1525 }
 0x904   :  { %v1180_v44 = vadd.f32 %v1168_v15, %v926_v6  ;;  %3696 = vrcp.f32 %v1526_v37 }
 0x907   :  { %v1612_v38 = vpop.permute.xlu0 %1611 }
 0x908   :  { %v1623_v27 = vsel %vm454_vm1, %v1612_v38, 0 }
 0x90b   :  { %v1523_v51 = vpop.xlane.xlu1 %1522 }
 0x90c   :  { %3698 = vrcp.f32 %v1523_v51 }
 0x90d   :  { %v3405_v11 = vpop.f32.mrf.mxu0 }
 0x90e   :  { %v1354_v17 = vpack.c.bf16 %v3405_v11, %v3405_v11 }
 0x90f   :  { %v1339_v46 = vpop.f32.mrf.mxu0  ;;  %v1529_v0 = vpop.xlane.xlu1 %1528 }
 0x910   :  { %3700 = vrcp.f32 %v1529_v0 }
 0x911   :  { %v3406_v18 = vpop.f32.mrf.mxu0  ;;  %v3697_v22 = vpop.eup %3696 }
 0x912   :  { %v1534_v47 = vmul.f32 %v3697_v22, %v3691_v35 }
 0x913   :  { %v1342_v19 = vpop.f32.mrf.mxu0  ;;  %v1610_v24 = vpop.permute.xlu1 %1609 }
 0x914   :  { %v1353_v60 = vpack.c.bf16 %v1342_v19, %v1339_v46  ;;  %v1620_v29 = vsel %vm454_vm1, %v1610_v24, 0 }
 0x916   :  { %3411 = vmatprep.mubr.msk.bf16.mxu0 %vm454_vm1, %v1353_v60 }
 0x917   :  { %3412 = vmatmul.mubr.msk.bf16.vlgmr.msra.gmra.mxu0 %vm454_vm1, %v1354_v17  ;;  %v1604_v28 = vpop.permute.xlu1 %1603 }
 0x918   :  { %3424 = vmatpush3.bf16.msra.mxu0 %v1545_v12 }
 0x919   :  { %v3699_v42 = vpop.eup %3698  ;;  %3425 = vmatprep.subr.bf16.mxu0 %v4078_v34 }
 0x91a   :  { %v1533_v23 = vmul.f32 %v3699_v42, %v3693_v61 }
 0x91b   :  { %v1606_v30 = vpop.permute.xlu1 %1605 }
 0x91c   :  { %3426 = vmatpush3.bf16.msra.mxu0 %v4078_v34  ;;  %v1536_v20 = vpack.c.bf16 %v1534_v47, %v1533_v23 }
 0x91d   :  { %v3701_v25 = vpop.eup %3700  ;;  %3526 = vmatprep.subr.msk.bf16.mxu0 %vm454_vm1, %v1612_v38 }
 0x91e   :  { %3427 = vmatprep.mubr.msk.bf16.mxu0 %vm521_vm4, %v1536_v20  ;;  %v1535_v26 = vmul.f32 %v3701_v25, %v3695_v63 }
 0x920   :  { %v1537_v21 = vpack.c.bf16 %v1535_v26, %v1535_v26 }
 0x922   :  { %3428 = vmatmul.mubr.msk.bf16.vlgmr.msra.gmra.mxu0 %vm521_vm4, %v1537_v21 }
 0x923   :  { %3432 = vmatpush3.bf16.xpose.msra.mxu0 %v1623_v27  ;;  %3435 = vmatprep.mubr.msk.bf16.mxu0 %vm454_vm1, %v1604_v28 }
 0x924   :  { %3527 = vmatprep.subr.msk.bf16.mxu0 %vm454_vm1, %v1610_v24 }
 0x92b   :  { %3434 = vmatpush3.bf16.xpose.msra.mxu0 %v1620_v29 }
 0x92c   :  { %3455 = vmatprep.subr.bf16.mxu0 %v3582_v31 }
 0x932   :  { %3436 = vmatmul.mubr.msk.bf16.vlgmr.msra.gmra.mxu0 %vm454_vm1, %v1606_v30 }
 0x933   :  { %3456 = vmatpush3.bf16.msra.mxu0 %v3582_v31 }
 0x934   :  { %3457 = vmatprep.subr.bf16.mxu0 %v3583_v32 }
 0x937   :  { %3458 = vmatpush3.bf16.msra.mxu0 %v3583_v32 }
 0x9d7   :  { %v3413_v36 = vpop.f32.mrf.mxu0 }
 0x9d8   :  { %v4304_v39 = vadd.f32 %v3413_v36, %v1181_v8 }
 0x9d9   :  { %v1411_v49 = vpop.f32.mrf.mxu0 }
 0x9da   :  { %v4306_v50 = vadd.f32 %v1411_v49, %v1179_v10 }
 0x9db   :  { %v3414_v53 = vpop.f32.mrf.mxu0 }
 0x9dc   :  { %v3585_v53 = vld [vmem:[%s4720_s5 + $0x10] sm:$0xff]  }
 0x9dd   :  { %v1414_v54 = vpop.f32.mrf.mxu0 }
 0x9de   :  { %v4308_v55 = vadd.f32 %v1414_v54, %v1180_v44 }
 0x9e2   :  { %v3429_v56 = vpop.f32.mrf.mxu0 }
 0x9e3   :  { %v1596_v59 = vpack.c.bf16 %v3429_v56, %v3429_v56 }
 0x9e4   :  { %v1581_v57 = vpop.f32.mrf.mxu0 }
 0x9e6   :  { %v3430_v5 = vpop.f32.mrf.mxu0 }
 0x9e8   :  { %v1584_v58 = vpop.f32.mrf.mxu0 }
 0x9e9   :  { %v1595_v35 = vpack.c.bf16 %v1584_v58, %v1581_v57 }
 0x9eb   :  { %3459 = vmatprep.mubr.msk.bf16.mxu0 %vm454_vm1, %v1595_v35 }
 0x9ec   :  { %3460 = vmatmul.mubr.msk.bf16.vlgmr.msra.gmra.mxu0 %vm454_vm1, %v1596_v59 }
 0x9f2   :  { %v3437_v61 = vpop.f32.mrf.mxu0 }
 0x9f3   :  { %v1675_v63 = vmul.f32 0.17677669, %v3437_v61 }
 0x9f4   :  { %v1659_v62 = vpop.f32.mrf.mxu0 }
 0x9f5   :  { %v1673_v1 = vmul.f32 0.17677669, %v1659_v62  ;;  %v1678_v10 = vadd.f32 %v1675_v63, %v4089_v52 }
 0x9f6   :  { %v3438_v2 = vpop.f32.mrf.mxu0 }
 0x9f7   :  { %v1676_v3 = vadd.f32 %v1673_v1, %v4089_v52  ;;  %v1685_v6 = vsel %vm521_vm4, %v1678_v10, -inf }
 0x9f8   :  { %v1662_v4 = vpop.f32.mrf.mxu0 }
 0x9f9   :  { %v1674_v8 = vmul.f32 0.17677669, %v1662_v4  ;;  %v1679_v9 = vsel %vm521_vm4, %v1676_v3, -inf }
 0x9fa   :  { %1680 = vmax.xlane.f32.xlu0 %v1679_v9 }
 0x9fb   :  { %v1677_v14 = vadd.f32 %v1674_v8, %v4089_v52 }
 0x9fd   :  { %v1682_v15 = vsel %vm521_vm4, %v1677_v14, -inf }
 0x9fe   :  { %1686 = vmax.xlane.f32.xlu0 %v1685_v6  ;;  %1683 = vmax.xlane.f32.xlu1 %v1682_v15 }
 0xa83   :  { %v1681_v44 = vpop.xlane.xlu0 %1680 }
 0xa84   :  { %v1688_v37 = vsub.f32 %v1676_v3, %v1681_v44 }
 0xa86   :  { %v1691_v51 = vmul.f32 1.442695, %v1688_v37 }
 0xa87   :  { %v1687_v11 = vpop.xlane.xlu0 %1686  ;;  %v1684_v46 = vpop.xlane.xlu1 %1683 }
 0xa88   :  { %3702 = vpow2.f32 %v1691_v51  ;;  %v1690_v0 = vsub.f32 %v1678_v10, %v1687_v11  ;;  %v1689_v18 = vsub.f32 %v1677_v14, %v1684_v46 }
 0xa8a   :  { %v1695_v19 = vmul.f32 1.442695, %v1690_v0  ;;  %v1693_v60 = vmul.f32 1.442695, %v1689_v18 }
 0xa8c   :  { %3704 = vpow2.f32 %v1695_v19 }
 0xa8d   :  { %3706 = vpow2.f32 %v1693_v60 }
 0xa95   :  { %v3703_v17 = vpop.eup %3702 }
 0xa96   :  { %v1697_v22 = vsel %vm521_vm4, %v3703_v17, 0.0 }
 0xa97   :  { %1698 = vadd.xlane.f32.xlu0 %v1697_v22 }
 0xa99   :  { %v3705_v12 = vpop.eup %3704 }
 0xa9a   :  { %v3707_v42 = vpop.eup %3706  ;;  %v1703_v23 = vsel %vm521_vm4, %v3705_v12, 0.0 }
 0xa9b   :  { %1704 = vadd.xlane.f32.xlu1 %v1703_v23  ;;  %v1700_v47 = vsel %vm521_vm4, %v3707_v42, 0.0 }
 0xa9c   :  { %1701 = vadd.xlane.f32.xlu0 %v1700_v47 }
 0xaac   :  { %1716 = vrot.lane.b32.xlu1 %v4078_v34, %s3783_s4  ;;  %v4323_v38 = vpop.f32.mrf.mxu0 }
 0xaae   :  { %v4325_v24 = vpop.f32.mrf.mxu0 }
 0xab0   :  { %1922 = vrot.lane.b32.xlu1 %v4163_v7, %s3785_s20  ;;  %v3462_v20 = vpop.f32.mrf.mxu0 }
 0xab2   :  { %1718 = vrot.lane.b32.xlu0 %v4263_v48, %s3783_s4 }
 0xab4   :  { %1920 = vrot.lane.b32.xlu1 %v4172_v16, %s3785_s20 }
 0xab6   :  { %1916 = vrot.lane.b32.xlu0 %v4076_v33, %s3785_s20 }
 0xab8   :  { %1918 = vrot.lane.b32.xlu1 %v4185_v13, %s3785_s20 }
 0xaba   :  { %2168 = vrot.lane.b32.xlu0 %v4163_v7, %s3786_s21 }
 0xabc   :  { %2166 = vrot.lane.b32.xlu1 %v4172_v16, %s3786_s21 }
 0xabe   :  { %2162 = vrot.lane.b32.xlu0 %v4076_v33, %s3786_s21  ;;  %v3584_v33 = vld [vmem:[%s4720_s5 + $0x18] sm:$0xff]  }
 0xac0   :  { %2164 = vrot.lane.b32.xlu1 %v4185_v13, %s3786_s21 }
 0xb20   :  { %v1699_v25 = vpop.xlane.xlu0 %1698 }
 0xb21   :  { %3708 = vrcp.f32 %v1699_v25 }
 0xb24   :  { %v1705_v26 = vpop.xlane.xlu1 %1704 }
 0xb25   :  { %v1702_v21 = vpop.xlane.xlu0 %1701  ;;  %3710 = vrcp.f32 %v1705_v26 }
 0xb26   :  { %3712 = vrcp.f32 %v1702_v21 }
 0xb28   :  { %v1717_v7 = vpop.permute.xlu1 %1716 }
 0xb29   :  { %v1719_v27 = vpop.permute.xlu0 %1718 }
 0xb2a   :  { %v1728_v28 = vsel %vm563_vm2, %v1719_v27, 0  ;;  %3528 = vmatprep.subr.msk.bf16.mxu1 %vm563_vm2, %v1719_v27 }
 0xb2b   :  { %3440 = vmatpush3.bf16.msra.mxu1 %v1728_v28 }
 0xb2c   :  { %3441 = vmatprep.subr.bf16.mxu1 %v1717_v7  ;;  %v1923_v54 = vpop.permute.xlu1 %1922 }
 0xb2d   :  { %v1917_v61 = vpop.permute.xlu0 %1916  ;;  %v1934_v62 = vsel %vm454_vm1, %v1923_v54, 0 }
 0xb2e   :  { %v3709_v16 = vpop.eup %3708 }
 0xb2f   :  { %3442 = vmatpush3.bf16.msra.mxu1 %v1717_v7  ;;  %v1709_v31 = vmul.f32 %v3709_v16, %v3703_v17 }
 0xb30   :  { %3447 = vmatprep.subr.bf16.mxu1 %v3584_v33  ;;  %v1921_v63 = vpop.permute.xlu1 %1920 }
 0xb31   :  { %v1931_v1 = vsel %vm454_vm1, %v1921_v63, 0  ;;  %v2169_v2 = vpop.permute.xlu0 %2168 }
 0xb32   :  { %v3711_v13 = vpop.eup %3710  ;;  %v2180_v4 = vsel %vm454_vm1, %v2169_v2, 0 }
 0xb33   :  { %v3713_v29 = vpop.eup %3712  ;;  %v1711_v30 = vmul.f32 %v3711_v13, %v3705_v12 }
 0xb34   :  { %v1710_v32 = vmul.f32 %v3713_v29, %v3707_v42  ;;  %v1919_v3 = vpop.permute.xlu1 %1918 }
 0xb35   :  { %v1713_v36 = vpack.c.bf16 %v1711_v30, %v1711_v30  ;;  %v2163_v8 = vpop.permute.xlu0 %2162 }
 0xb36   :  { %v1712_v49 = vpack.c.bf16 %v1710_v32, %v1709_v31 }
 0xb38   :  { %3443 = vmatprep.mubr.msk.bf16.mxu1 %vm521_vm4, %v1712_v49  ;;  %v2167_v9 = vpop.permute.xlu1 %2166 }
 0xb39   :  { %3444 = vmatmul.mubr.msk.bf16.vlgmr.msra.gmra.mxu1 %vm521_vm4, %v1713_v36  ;;  %v2177_v10 = vsel %vm454_vm1, %v2167_v9, 0 }
 0xb3a   :  { %3448 = vmatpush3.bf16.msra.mxu1 %v3584_v33 }
 0xb3b   :  { %3449 = vmatprep.subr.bf16.mxu1 %v3585_v53 }
 0xb3c   :  { %v2165_v14 = vpop.permute.xlu1 %2164 }
 0xb3e   :  { %3450 = vmatpush3.bf16.msra.mxu1 %v3585_v53 }
 0xb3f   :  { %3529 = vmatprep.subr.msk.bf16.mxu1 %vm454_vm1, %v1923_v54 }
 0xbf9   :  { %v3445_v56 = vpop.f32.mrf.mxu1 }
 0xbfa   :  { %v1779_v59 = vpack.c.bf16 %v3445_v56, %v3445_v56 }
 0xbfb   :  { %v1764_v57 = vpop.f32.mrf.mxu1 }
 0xbfd   :  { %v3446_v5 = vpop.f32.mrf.mxu1 }
 0xbff   :  { %v1767_v58 = vpop.f32.mrf.mxu1 }
 0xc00   :  { %v1778_v35 = vpack.c.bf16 %v1767_v58, %v1764_v57 }
 0xc02   :  { %3451 = vmatprep.mubr.msk.bf16.mxu1 %vm454_vm1, %v1778_v35 }
 0xc03   :  { %3452 = vmatmul.mubr.msk.bf16.vlgmr.msra.gmra.mxu1 %vm454_vm1, %v1779_v59 }
 0xc04   :  { %3464 = vmatpush3.bf16.xpose.msra.mxu1 %v1934_v62  ;;  %3467 = vmatprep.mubr.msk.bf16.mxu1 %vm454_vm1, %v1917_v61 }
 0xc05   :  { %3530 = vmatprep.subr.msk.bf16.mxu1 %vm454_vm1, %v1921_v63 }
 0xc0c   :  { %3466 = vmatpush3.bf16.xpose.msra.mxu1 %v1931_v1 }
 0xc0d   :  { %3532 = vmatprep.subr.msk.bf16.mxu1 %vm454_vm1, %v2169_v2 }
 0xc13   :  { %3468 = vmatmul.mubr.msk.bf16.vlgmr.msra.gmra.mxu1 %vm454_vm1, %v1919_v3 }
 0xc14   :  { %3488 = vmatpush3.bf16.xpose.msra.mxu1 %v2180_v4  ;;  %3491 = vmatprep.mubr.msk.bf16.mxu1 %vm454_vm1, %v2163_v8 }
 0xc15   :  { %3533 = vmatprep.subr.msk.bf16.mxu1 %vm454_vm1, %v2167_v9 }
 0xc1c   :  { %3490 = vmatpush3.bf16.xpose.msra.mxu1 %v2177_v10 }
 0xc23   :  { %3492 = vmatmul.mubr.msk.bf16.vlgmr.msra.gmra.mxu1 %vm454_vm1, %v2165_v14 }
 0xc24   :  { %2671 = vmatprep.mubr.bf16.mxu1 %v3781_v45 }
 0xcc3   :  { %v4370_v6 = vpop.f32.mrf.mxu1 }
 0xcc5   :  { %v4372_v15 = vpop.f32.mrf.mxu1 }
 0xcc7   :  { %v3454_v44 = vpop.f32.mrf.mxu1 }
 0xcc9   :  { %v4374_v37 = vpop.f32.mrf.mxu1 }
 0xcd3   :  { %v3469_v51 = vpop.f32.mrf.mxu1 }
 0xcd4   :  { %v1986_v46 = vmul.f32 0.17677669, %v3469_v51 }
 0xcd5   :  { %v1970_v11 = vpop.f32.mrf.mxu1 }
 0xcd6   :  { %v1984_v0 = vmul.f32 0.17677669, %v1970_v11  ;;  %v1989_v12 = vadd.f32 %v1986_v46, %v4089_v52 }
 0xcd7   :  { %v3470_v18 = vpop.f32.mrf.mxu1 }
 0xcd8   :  { %v1987_v19 = vadd.f32 %v1984_v0, %v4089_v52  ;;  %v1996_v23 = vsel %vm521_vm4, %v1989_v12, -inf }
 0xcd9   :  { %v1973_v60 = vpop.f32.mrf.mxu1 }
 0xcda   :  { %v1985_v17 = vmul.f32 0.17677669, %v1973_v60  ;;  %v1990_v22 = vsel %vm521_vm4, %v1987_v19, -inf }
 0xcdb   :  { %1991 = vmax.xlane.f32.xlu0 %v1990_v22 }
 0xcdc   :  { %v1988_v42 = vadd.f32 %v1985_v17, %v4089_v52 }
 0xcde   :  { %v1993_v47 = vsel %vm521_vm4, %v1988_v42, -inf }
 0xcdf   :  { %1997 = vmax.xlane.f32.xlu0 %v1996_v23  ;;  %1994 = vmax.xlane.f32.xlu1 %v1993_v47 }
 0xce3   :  { %v3493_v20 = vpop.f32.mrf.mxu1 }
 0xce4   :  { %v2232_v35 = vmul.f32 0.17677669, %v3493_v20 }
 0xce5   :  { %v2216_v25 = vpop.f32.mrf.mxu1 }
 0xce6   :  { %v2230_v57 = vmul.f32 0.17677669, %v2216_v25  ;;  %v2235_v63 = vadd.f32 %v2232_v35, %v4089_v52 }
 0xce7   :  { %v3494_v26 = vpop.f32.mrf.mxu1 }
 0xce8   :  { %v2233_v58 = vadd.f32 %v2230_v57, %v4089_v52  ;;  %v2242_v1 = vsel %vm521_vm4, %v2235_v63, -inf }
 0xce9   :  { %v2219_v56 = vpop.f32.mrf.mxu1 }
 0xcea   :  { %v2231_v5 = vmul.f32 0.17677669, %v2219_v56  ;;  %v2236_v61 = vsel %vm521_vm4, %v2233_v58, -inf }
 0xcec   :  { %v2234_v59 = vadd.f32 %v2231_v5, %v4089_v52  ;;  %v3586_v52 = vld [vmem:[%s4720_s5 + $0x28] sm:$0xff]  }
 0xcee   :  { %v2239_v62 = vsel %vm521_vm4, %v2234_v59, -inf }
 0xd64   :  { %v1992_v21 = vpop.xlane.xlu0 %1991 }
 0xd65   :  { %v1999_v27 = vsub.f32 %v1987_v19, %v1992_v21 }
 0xd67   :  { %v2002_v28 = vmul.f32 1.442695, %v1999_v27 }
 0xd68   :  { %v1998_v7 = vpop.xlane.xlu0 %1997  ;;  %v1995_v33 = vpop.xlane.xlu1 %1994 }
 0xd69   :  { %3714 = vpow2.f32 %v2002_v28  ;;  %v2001_v16 = vsub.f32 %v1989_v12, %v1998_v7  ;;  %v2000_v13 = vsub.f32 %v1988_v42, %v1995_v33 }
 0xd6b   :  { %v2006_v29 = vmul.f32 1.442695, %v2001_v16  ;;  %v2004_v30 = vmul.f32 1.442695, %v2000_v13  ;;  %v3587_v16 = vld [vmem:[%s4720_s5 + $0x20] sm:$0xff]   ;;  %v3774_v13 = vld [vmem:[%s4715_s0 + $0x8] sm:$0xff] }
 0xd6d   :  { %3716 = vpow2.f32 %v2006_v29  ;;  %v2418_v29 = vadd.f32 %v3774_v13, %v4308_v55 }
 0xd6e   :  { %3718 = vpow2.f32 %v2004_v30  ;;  %v4419_v30 = vld [vmem:[%s4721_s6] ss:$0 sm:$0xff] }
 0xd76   :  { %v3715_v31 = vpop.eup %3714 }
 0xd77   :  { %v2008_v32 = vsel %vm521_vm4, %v3715_v31, 0.0 }
 0xd78   :  { %2009 = vadd.xlane.f32.xlu0 %v2008_v32  ;;  %v4426_v32 = vadd.f32 %v4419_v30, %v2418_v29  ;;  %v3778_v29 = vld [vmem:[%s4715_s0 + $0x28] sm:$0xff] }
 0xd7a   :  { %v3717_v36 = vpop.eup %3716 }
 0xd7b   :  { %v3719_v49 = vpop.eup %3718  ;;  %v2014_v53 = vsel %vm521_vm4, %v3717_v36, 0.0 }
 0xd7c   :  { %2015 = vadd.xlane.f32.xlu1 %v2014_v53  ;;  %v2011_v54 = vsel %vm521_vm4, %v3719_v49, 0.0 }
 0xd7d   :  { %2012 = vadd.xlane.f32.xlu0 %v2011_v54 }
 0xd8d   :  { %2025 = vrot.lane.b32.xlu1 %v4078_v34, %s3785_s20 }
 0xd93   :  { %2027 = vrot.lane.b32.xlu0 %v4263_v48, %s3785_s20 }
 0xdb1   :  { %2237 = vmax.xlane.f32.xlu1 %v2236_v61 }
 0xdb2   :  { %2240 = vmax.xlane.f32.xlu0 %v2239_v62 }
 0xdb6   :  { %2243 = vmax.xlane.f32.xlu0 %v2242_v1 }
 0xe01   :  { %v2010_v2 = vpop.xlane.xlu0 %2009 }
 0xe02   :  { %3720 = vrcp.f32 %v2010_v2 }
 0xe05   :  { %v2016_v3 = vpop.xlane.xlu1 %2015 }
 0xe06   :  { %v2013_v4 = vpop.xlane.xlu0 %2012  ;;  %3722 = vrcp.f32 %v2016_v3 }
 0xe07   :  { %3724 = vrcp.f32 %v2013_v4 }
 0xe09   :  { %v2026_v10 = vpop.permute.xlu1 %2025 }
 0xe0a   :  { %v2028_v8 = vpop.permute.xlu0 %2027 }
 0xe0b   :  { %v2037_v9 = vsel %vm563_vm2, %v2028_v8, 0  ;;  %3531 = vmatprep.subr.msk.bf16.mxu0 %vm563_vm2, %v2028_v8 }
 0xe0c   :  { %3472 = vmatpush3.bf16.msra.mxu0 %v2037_v9 }
 0xe0d   :  { %3473 = vmatprep.subr.bf16.mxu0 %v2026_v10 }
 0xe0f   :  { %v3721_v14 = vpop.eup %3720 }
 0xe10   :  { %3474 = vmatpush3.bf16.msra.mxu0 %v2026_v10  ;;  %v2020_v46 = vmul.f32 %v3721_v14, %v3715_v31  ;;  %v3775_v31 = vld [vmem:[%s4715_s0 + $0x10] sm:$0xff]  ;;  %v3588_v14 = vld [vmem:[%s4720_s5 + $0x38] sm:$0xff]  }
 0xe11   :  { %3479 = vmatprep.subr.bf16.mxu0 %v3586_v52 }
 0xe13   :  { %v3723_v44 = vpop.eup %3722 }
 0xe14   :  { %v3725_v51 = vpop.eup %3724  ;;  %v2022_v11 = vmul.f32 %v3723_v44, %v3717_v36  ;;  %v3589_v44 = vld [vmem:[%s4720_s5 + $0x30] sm:$0xff]  }
 0xe15   :  { %v2021_v0 = vmul.f32 %v3725_v51, %v3719_v49  ;;  %v1911_v51 = vadd.f32 %v4323_v38, %v4370_v6 }
 0xe16   :  { %v2024_v18 = vpack.c.bf16 %v2022_v11, %v2022_v11 }
 0xe17   :  { %v2023_v19 = vpack.c.bf16 %v2021_v0, %v2020_v46  ;;  %v1903_v46 = vadd.f32 %v4325_v24, %v4372_v15 }
 0xe19   :  { %3475 = vmatprep.mubr.msk.bf16.mxu0 %vm521_vm4, %v2023_v19 }
 0xe1a   :  { %3476 = vmatmul.mubr.msk.bf16.vlgmr.msra.gmra.mxu0 %vm521_vm4, %v2024_v18 }
 0xe1b   :  { %3480 = vmatpush3.bf16.msra.mxu0 %v3586_v52 }
 0xe1c   :  { %3481 = vmatprep.subr.bf16.mxu0 %v3587_v16 }
 0xe1f   :  { %3482 = vmatpush3.bf16.msra.mxu0 %v3587_v16 }
 0xe3a   :  { %v2238_v17 = vpop.xlane.xlu1 %2237 }
 0xe3b   :  { %v2241_v60 = vpop.xlane.xlu0 %2240  ;;  %v2245_v42 = vsub.f32 %v2233_v58, %v2238_v17 }
 0xe3c   :  { %v2246_v22 = vsub.f32 %v2234_v59, %v2241_v60 }
 0xe3d   :  { %v2248_v20 = vmul.f32 1.442695, %v2245_v42 }
 0xe3e   :  { %v2250_v12 = vmul.f32 1.442695, %v2246_v22 }
 0xe3f   :  { %v2244_v23 = vpop.xlane.xlu0 %2243 }
 0xe40   :  { %3726 = vpow2.f32 %v2250_v12  ;;  %v2247_v47 = vsub.f32 %v2235_v63, %v2244_v23 }
 0xe42   :  { %v2252_v25 = vmul.f32 1.442695, %v2247_v47 }
 0xe44   :  { %3728 = vpow2.f32 %v2252_v25 }
 0xe45   :  { %3730 = vpow2.f32 %v2248_v20 }
 0xe4d   :  { %v3727_v26 = vpop.eup %3726 }
 0xe4e   :  { %v2257_v21 = vsel %vm521_vm4, %v3727_v26, 0.0 }
 0xe4f   :  { %2258 = vadd.xlane.f32.xlu0 %v2257_v21 }
 0xe51   :  { %v3729_v27 = vpop.eup %3728 }
 0xe52   :  { %v2260_v28 = vsel %vm521_vm4, %v3729_v27, 0.0  ;;  %v3731_v7 = vpop.eup %3730 }
 0xe53   :  { %2261 = vadd.xlane.f32.xlu1 %v2260_v28  ;;  %v2254_v33 = vsel %vm521_vm4, %v3731_v7, 0.0 }
 0xe57   :  { %2255 = vadd.xlane.f32.xlu1 %v2254_v33 }
 0xe65   :  { %2273 = vrot.lane.b32.xlu0 %v4263_v48, %s3786_s21  ;;  %v2419_v48 = vadd.f32 %v3775_v31, %v4304_v39  ;;  %v1905_v39 = vpop.f32.mrf.mxu0 }
 0xe66   :  { %v1906_v17 = vadd.f32 %v1905_v39, %v4374_v37  ;;  %v3777_v37 = vld [vmem:[%s4715_s0 + $0x18] sm:$0xff]  ;;  %v3779_v39 = vld [vmem:[%s4715_s0 + $0x20] sm:$0xff] }
 0xe67   :  { %v4434_v36 = vadd.f32 %v4419_v30, %v2419_v48 }
 0xe68   :  { %2271 = vrot.lane.b32.xlu1 %v4078_v34, %s3786_s21  ;;  %v3776_v34 = vld [vmem:[%s4715_s0] sm:$0xff] }
 0xe69   :  { %v2417_v55 = vadd.f32 %v3776_v34, %v4306_v50 }
 0xe6b   :  { %v4438_v49 = vadd.f32 %v4419_v30, %v2417_v55 }
 0xe84   :  { %2440 = vadd.xlane.f32.xlu0 %v4426_v32 }
 0xe88   :  { %2442 = vadd.xlane.f32.xlu0 %v4434_v36 }
 0xe8c   :  { %2438 = vadd.xlane.f32.xlu1 %v4438_v49 }
 0xed8   :  { %v2259_v53 = vpop.xlane.xlu0 %2258 }
 0xeda   :  { %v3477_v54 = vpop.f32.mrf.mxu0 }
 0xedb   :  { %v2088_v61 = vpack.c.bf16 %v3477_v54, %v3477_v54 }
 0xedc   :  { %v2274_v56 = vpop.permute.xlu0 %2273  ;;  %v2073_v57 = vpop.f32.mrf.mxu0 }
 0xedd   :  { %v2262_v5 = vpop.xlane.xlu1 %2261  ;;  %3534 = vmatprep.subr.msk.bf16.mxu0 %vm563_vm2, %v2274_v56  ;;  %v2283_v62 = vsel %vm563_vm2, %v2274_v56, 0 }
 0xede   :  { %v3478_v58 = vpop.f32.mrf.mxu0  ;;  %3732 = vrcp.f32 %v2262_v5 }
 0xedf   :  { %3734 = vrcp.f32 %v2259_v53 }
 0xee0   :  { %v2076_v50 = vpop.f32.mrf.mxu0 }
 0xee1   :  { %v2087_v35 = vpack.c.bf16 %v2076_v50, %v2073_v57  ;;  %v2256_v59 = vpop.xlane.xlu1 %2255 }
 0xee2   :  { %3736 = vrcp.f32 %v2256_v59 }
 0xee3   :  { %3483 = vmatprep.mubr.msk.bf16.mxu0 %vm454_vm1, %v2087_v35 }
 0xee4   :  { %3484 = vmatmul.mubr.msk.bf16.vlgmr.msra.gmra.mxu0 %vm454_vm1, %v2088_v61 }
 0xee5   :  { %3496 = vmatpush3.bf16.msra.mxu0 %v2283_v62  ;;  %v2272_v63 = vpop.permute.xlu1 %2271  ;;  %v3590_v62 = vld [vmem:[%s4722_s9 + $0x70] ss:$8 sps:$4 sm:$0xff]  }
 0xee6   :  { %3497 = vmatprep.subr.bf16.mxu0 %v2272_v63 }
 0xee9   :  { %3498 = vmatpush3.bf16.msra.mxu0 %v2272_v63  ;;  %v3595_v63 = vld [vmem:[%s4722_s9 + $0x64] ss:$8 sps:$4 sm:$0xff]  }
 0xeea   :  { %3503 = vmatprep.subr.bf16.mxu0 %v3588_v14 }
 0xeeb   :  { %v3733_v1 = vpop.eup %3732 }
 0xeec   :  { %v3735_v2 = vpop.eup %3734  ;;  %v2268_v4 = vmul.f32 %v3733_v1, %v3729_v27  ;;  %v3593_v1 = vld [vmem:[%s4722_s9 + $0x60] ss:$8 sps:$4 sm:$0xff]  }
 0xeed   :  { %v2267_v9 = vmul.f32 %v3735_v2, %v3727_v26  ;;  %v3598_v2 = vld [vmem:[%s4722_s9 + $0x54] ss:$8 sps:$4 sm:$0xff]  }
 0xeee   :  { %v2270_v52 = vpack.c.bf16 %v2268_v4, %v2268_v4  ;;  %v3601_v4 = vld [vmem:[%s4722_s9 + $0x44] ss:$8 sps:$4 sm:$0xff]  }
 0xeef   :  { %v3737_v3 = vpop.eup %3736 }
 0xef0   :  { %v2266_v8 = vmul.f32 %v3737_v3, %v3731_v7  ;;  %v3596_v3 = vld [vmem:[%s4722_s9 + $0x50] ss:$8 sps:$4 sm:$0xff]  }
 0xef2   :  { %v2269_v10 = vpack.c.bf16 %v2267_v9, %v2266_v8  ;;  %v3599_v8 = vld [vmem:[%s4722_s9 + $0x40] ss:$8 sps:$4 sm:$0xff]   ;;  %v3602_v9 = vld [vmem:[%s4722_s9 + $0x30] ss:$8 sps:$4 sm:$0xff]  }
 0xef4   :  { %3499 = vmatprep.mubr.msk.bf16.mxu0 %vm521_vm4, %v2269_v10  ;;  %v3604_v10 = vld [vmem:[%s4722_s9 + $0x34] ss:$8 sps:$4 sm:$0xff]  }
 0xef5   :  { %3500 = vmatmul.mubr.msk.bf16.vlgmr.msra.gmra.mxu0 %vm521_vm4, %v2270_v52  ;;  %v3607_v52 = vld [vmem:[%s4722_s9 + $0x24] ss:$8 sps:$4 sm:$0xff]  }
 0xef6   :  { %3504 = vmatpush3.bf16.msra.mxu0 %v3588_v14  ;;  %v3605_v14 = vld [vmem:[%s4722_s9 + $0x20] ss:$8 sps:$4 sm:$0xff]  }
 0xef7   :  { %3505 = vmatprep.subr.bf16.mxu0 %v3589_v44 }
 0xefa   :  { %3506 = vmatpush3.bf16.msra.mxu0 %v3589_v44  ;;  %v3610_v44 = vld [vmem:[%s4722_s9 + $0x14] ss:$8 sps:$4 sm:$0xff]  }
 0xf0d   :  { %v2441_v24 = vpop.xlane.xlu0 %2440 }
 0xf0e   :  { %v2451_v33 = vmul.f32 0.0078125, %v2441_v24 }
 0xf10   :  { %v4474_v54 = vsub.f32 %v4426_v32, %v2451_v33  ;;  %v4568_v33 = vld [vmem:[%s4724_s8] ss:$0 sm:$0xff] }
 0xf11   :  { %v2443_v55 = vpop.xlane.xlu0 %2442 }
 0xf12   :  { %v2452_v56 = vmul.f32 0.0078125, %v2443_v55  ;;  %v2463_v35 = vmul.f32 %v4474_v54, %v4474_v54 }
 0xf14   :  { %v4488_v50 = vsub.f32 %v4434_v36, %v2452_v56  ;;  %v3617_v56 = vld [vmem:[%s4725_s11 + $0x30] sm:$0xff]  }
 0xf15   :  { %v2439_v27 = vpop.xlane.xlu1 %2438 }
 0xf16   :  { %v2450_v13 = vmul.f32 0.0078125, %v2439_v27  ;;  %v2464_v61 = vmul.f32 %v4488_v50, %v4488_v50 }
 0xf18   :  { %v4477_v57 = vsub.f32 %v4438_v49, %v2450_v13 }
 0xf1a   :  { %v2462_v59 = vmul.f32 %v4477_v57, %v4477_v57 }
 0xfa4   :  { %v3485_v11 = vpop.f32.mrf.mxu0 }
 0xfa5   :  { %v2161_v0 = vadd.f32 %v3485_v11, %v1911_v51  ;;  %v3608_v51 = vld [vmem:[%s4722_s9 + $0x10] ss:$8 sps:$4 sm:$0xff]   ;;  %v3613_v11 = vld [vmem:[%s4722_s9 + $0x4] ss:$8 sps:$4 sm:$0xff]  }
 0xfa6   :  { %v2145_v18 = vpop.f32.mrf.mxu0 }
 0xfa7   :  { %v2159_v19 = vadd.f32 %v2145_v18, %v1903_v46  ;;  %v3611_v46 = vld [vmem:[%s4722_s9] ss:$8 sps:$4 sm:$0xff]  }
 0xfa8   :  { %v3486_v60 = vpop.f32.mrf.mxu0 }
 0xfaa   :  { %v2148_v22 = vpop.f32.mrf.mxu0 }
 0xfab   :  { %v2160_v12 = vadd.f32 %v2148_v22, %v1906_v17 }
 0xfb5   :  { %v3501_v42 = vpop.f32.mrf.mxu0 }
 0xfb6   :  { %v2334_v26 = vpack.c.bf16 %v3501_v42, %v3501_v42 }
 0xfb7   :  { %v2319_v23 = vpop.f32.mrf.mxu0 }
 0xfb9   :  { %v3502_v47 = vpop.f32.mrf.mxu0 }
 0xfbb   :  { %v2322_v20 = vpop.f32.mrf.mxu0 }
 0xfbc   :  { %v2333_v25 = vpack.c.bf16 %v2322_v20, %v2319_v23 }
 0xfbe   :  { %3507 = vmatprep.mubr.msk.bf16.mxu0 %vm454_vm1, %v2333_v25 }
 0xfbf   :  { %3508 = vmatmul.mubr.msk.bf16.vlgmr.msra.gmra.mxu0 %vm454_vm1, %v2334_v26 }
0x107f   :  { %v3509_v38 = vpop.f32.mrf.mxu0 }
0x1080   :  { %v2407_v15 = vadd.f32 %v3509_v38, %v2161_v0 }
0x1081   :  { %v2391_v6 = vpop.f32.mrf.mxu0 }
0x1082   :  { %v2405_v21 = vadd.f32 %v2391_v6, %v2159_v19  ;;  %v2422_v31 = vadd.f32 %v3778_v29, %v2407_v15 }
0x1083   :  { %v3510_v28 = vpop.f32.mrf.mxu0 }
0x1084   :  { %v2420_v7 = vadd.f32 %v3777_v37, %v2405_v21  ;;  %v4480_v5 = vadd.f32 %v4419_v30, %v2422_v31  ;;  %v4562_v28 = vld [vmem:[%s4723_s7] ss:$0 sm:$0xff] }
0x1085   :  { %v2394_v16 = vpop.f32.mrf.mxu0 }
0x1086   :  { %v2406_v48 = vadd.f32 %v2394_v16, %v2160_v12  ;;  %v4467_v34 = vadd.f32 %v4419_v30, %v2420_v7 }
0x1088   :  { %v2421_v53 = vadd.f32 %v3779_v39, %v2406_v48  ;;  %2444 = vadd.xlane.f32.xlu1 %v4467_v34  ;;  %v3614_v39 = vld [vmem:[%s4725_s11 + $0x78] sm:$0xff]  }
0x1089   :  { %3257 = vmatprep.subr.bf16.mxu0 %v3614_v39 }
0x108a   :  { %v4483_v58 = vadd.f32 %v4419_v30, %v2421_v53  ;;  %v3592_v30 = vld [vmem:[%s4722_s9 + $0x74] ss:$8 sps:$4 sm:$0xff]  }
0x108b   :  { %2639 = vmatprep.subr.bf16.mxu1 %v3592_v30  ;;  %v3615_v53 = vld [vmem:[%s4725_s11 + $0x38] sm:$0xff]  }
0x108c   :  { %2448 = vadd.xlane.f32.xlu1 %v4480_v5  ;;  %2446 = vadd.xlane.f32.xlu0 %v4483_v58  ;;  %v3622_v30 = vld [vmem:[%s4725_s11 + $0x58] sm:$0xff]  }
0x108d   :  { %2640 = vmatpush1.bf16.msra.mxu1 %v3590_v62  ;;  %3258 = vmatpush3.bf16.msra.mxu0 %v3615_v53  ;;  %v3623_v62 = vld [vmem:[%s4725_s11 + $0x18] sm:$0xff]  }
0x108e   :  { %2641 = vmatprep.subr.bf16.mxu1 %v3595_v63  ;;  %v3624_v63 = vld [vmem:[%s4725_s11 + $0x50] sm:$0xff]  }
0x1090   :  { %2470 = vadd.xlane.f32.xlu1 %v2463_v35  ;;  %2468 = vadd.xlane.f32.xlu0 %v2462_v59  ;;  %v3619_v35 = vld [vmem:[%s4725_s11 + $0x28] sm:$0xff]   ;;  %v3620_v59 = vld [vmem:[%s4725_s11 + $0x60] sm:$0xff]  }
0x1091   :  { %2642 = vmatpush1.bf16.msra.mxu1 %v3593_v1  ;;  %v3625_v1 = vld [vmem:[%s4725_s11 + $0x10] sm:$0xff]  }
0x1092   :  { %2643 = vmatprep.subr.bf16.mxu1 %v3598_v2  ;;  %v3626_v2 = vld [vmem:[%s4725_s11 + $0x48] sm:$0xff]  }
0x1094   :  { %2472 = vadd.xlane.f32.xlu0 %v2464_v61  ;;  %v3621_v61 = vld [vmem:[%s4725_s11 + $0x20] sm:$0xff]  }
0x1095   :  { %2644 = vmatpush1.bf16.msra.mxu1 %v3596_v3  ;;  %v3627_v3 = vld [vmem:[%s4725_s11 + $0x8] sm:$0xff]  }
0x1096   :  { %2645 = vmatprep.subr.bf16.mxu1 %v3601_v4  ;;  %v3628_v4 = vld [vmem:[%s4725_s11 + $0x40] sm:$0xff]  }
0x1099   :  { %2646 = vmatpush1.bf16.msra.mxu1 %v3599_v8 }
0x109a   :  { %2647 = vmatprep.subr.bf16.mxu1 %v3604_v10 }
0x109d   :  { %2648 = vmatpush1.bf16.msra.mxu1 %v3602_v9  ;;  %v3629_v9 = vld [vmem:[%s4725_s11] sm:$0xff]  }
0x109e   :  { %2649 = vmatprep.subr.bf16.mxu1 %v3607_v52 }
0x10a1   :  { %2650 = vmatpush1.bf16.msra.mxu1 %v3605_v14 }
0x10a2   :  { %2651 = vmatprep.subr.bf16.mxu1 %v3610_v44 }
0x10a5   :  { %2652 = vmatpush1.bf16.msra.mxu1 %v3608_v51 }
0x10a6   :  { %2653 = vmatprep.subr.bf16.mxu1 %v3613_v11 }
0x10a9   :  { %2654 = vmatpush1.bf16.msra.mxu1 %v3611_v46 }
0x1111   :  { %v2445_v0 = vpop.xlane.xlu1 %2444 }
0x1112   :  { %v2453_v18 = vmul.f32 0.0078125, %v2445_v0 }
0x1114   :  { %v4545_v19 = vsub.f32 %v4467_v34, %v2453_v18 }
0x1115   :  { %v2447_v60 = vpop.xlane.xlu0 %2446  ;;  %v2449_v17 = vpop.xlane.xlu1 %2448 }
0x1116   :  { %v2454_v22 = vmul.f32 0.0078125, %v2447_v60  ;;  %v2455_v12 = vmul.f32 0.0078125, %v2449_v17  ;;  %v2465_v42 = vmul.f32 %v4545_v19, %v4545_v19 }
0x1118   :  { %v4550_v23 = vsub.f32 %v4483_v58, %v2454_v22  ;;  %v4553_v47 = vsub.f32 %v4480_v5, %v2455_v12  ;;  %2474 = vadd.xlane.f32.xlu1 %v2465_v42 }
0x1119   :  { %v2469_v20 = vpop.xlane.xlu0 %2468  ;;  %v2471_v25 = vpop.xlane.xlu1 %2470 }
0x111a   :  { %v2480_v26 = vmul.f32 0.0078125, %v2469_v20  ;;  %v2481_v38 = vmul.f32 0.0078125, %v2471_v25  ;;  %v2466_v24 = vmul.f32 %v4550_v23, %v4550_v23  ;;  %v2467_v6 = vmul.f32 %v4553_v47, %v4553_v47 }
0x111c   :  { %v2486_v15 = vadd.f32 1e-05, %v2480_v26  ;;  %v2487_v21 = vadd.f32 1e-05, %v2481_v38  ;;  %2476 = vadd.xlane.f32.xlu0 %v2466_v24  ;;  %2478 = vadd.xlane.f32.xlu1 %v2467_v6 }
0x111d   :  { %v2473_v8 = vpop.xlane.xlu0 %2472 }
0x111e   :  { %3738 = vrsqrt.f32 %v2486_v15  ;;  %v2482_v10 = vmul.f32 0.0078125, %v2473_v8 }
0x111f   :  { %3740 = vrsqrt.f32 %v2487_v21 }
0x1120   :  { %v2488_v52 = vadd.f32 1e-05, %v2482_v10 }
0x1122   :  { %3742 = vrsqrt.f32 %v2488_v52 }
0x112b   :  { %v3739_v27 = vpop.eup %3738 }
0x112c   :  { %v3741_v37 = vpop.eup %3740  ;;  %v2498_v7 = vmul.f32 %v3739_v27, %v4477_v57  ;;  %v3618_v57 = vld [vmem:[%s4725_s11 + $0x68] sm:$0xff]  }
0x112d   :  { %v2499_v16 = vmul.f32 %v3741_v37, %v4474_v54  ;;  %v3616_v54 = vld [vmem:[%s4725_s11 + $0x70] sm:$0xff]  }
0x112e   :  { %v2510_v13 = vmul.f32 %v4562_v28, %v2498_v7  ;;  %3259 = vmatprep.subr.bf16.mxu0 %v3616_v54 }
0x112f   :  { %v2511_v29 = vmul.f32 %v4562_v28, %v2499_v16  ;;  %3260 = vmatpush3.bf16.msra.mxu0 %v3617_v56  ;;  %v3743_v22 = vpop.eup %3742 }
0x1130   :  { %v2522_v31 = vadd.f32 %v4568_v33, %v2510_v13  ;;  %3261 = vmatprep.subr.bf16.mxu0 %v3618_v57  ;;  %v2500_v12 = vmul.f32 %v3743_v22, %v4488_v50 }
0x1131   :  { %v2523_v48 = vadd.f32 %v4568_v33, %v2511_v29 }
0x1132   :  { %v2512_v25 = vmul.f32 %v4562_v28, %v2500_v12 }
0x1133   :  { %v2528_v55 = vpack.c.bf16 %v2523_v48, %v2522_v31  ;;  %3262 = vmatpush3.bf16.msra.mxu0 %v3619_v35 }
0x1134   :  { %3263 = vmatprep.subr.bf16.mxu0 %v3620_v59  ;;  %v2524_v6 = vadd.f32 %v4568_v33, %v2512_v25 }
0x1135   :  { %2672 = vmatmul.mubr.bf16.vlgmr.msra.gmra.mxu1 %v2528_v55 }
0x1136   :  { %2681 = vmatprep.mubr.bf16.mxu1 %v3781_v45 }
0x1137   :  { %3264 = vmatpush3.bf16.msra.mxu0 %v3621_v61 }
0x1138   :  { %3265 = vmatprep.subr.bf16.mxu0 %v3622_v30 }
0x113b   :  { %3266 = vmatpush3.bf16.msra.mxu0 %v3623_v62 }
0x113c   :  { %3267 = vmatprep.subr.bf16.mxu0 %v3624_v63 }
0x113f   :  { %3268 = vmatpush3.bf16.msra.mxu0 %v3625_v1 }
0x1140   :  { %3269 = vmatprep.subr.bf16.mxu0 %v3626_v2 }
0x1143   :  { %3270 = vmatpush3.bf16.msra.mxu0 %v3627_v3 }
0x1144   :  { %3271 = vmatprep.subr.bf16.mxu0 %v3628_v4 }
0x1147   :  { %3272 = vmatpush3.bf16.msra.mxu0 %v3629_v9 }
0x11a1   :  { %v2475_v14 = vpop.xlane.xlu1 %2474 }
0x11a2   :  { %v2483_v44 = vmul.f32 0.0078125, %v2475_v14 }
0x11a4   :  { %v2489_v51 = vadd.f32 1e-05, %v2483_v44 }
0x11a5   :  { %v2477_v11 = vpop.xlane.xlu0 %2476  ;;  %v2479_v46 = vpop.xlane.xlu1 %2478 }
0x11a6   :  { %3744 = vrsqrt.f32 %v2489_v51  ;;  %v2484_v0 = vmul.f32 0.0078125, %v2477_v11  ;;  %v2485_v18 = vmul.f32 0.0078125, %v2479_v46 }
0x11a8   :  { %v2490_v60 = vadd.f32 1e-05, %v2484_v0  ;;  %v2491_v17 = vadd.f32 1e-05, %v2485_v18 }
0x11aa   :  { %3746 = vrsqrt.f32 %v2490_v60 }
0x11ab   :  { %3748 = vrsqrt.f32 %v2491_v17 }
0x11b3   :  { %v3745_v42 = vpop.eup %3744 }
0x11b4   :  { %v2501_v20 = vmul.f32 %v3745_v42, %v4545_v19 }
0x11b6   :  { %v2513_v26 = vmul.f32 %v4562_v28, %v2501_v20 }
0x11b7   :  { %v3747_v38 = vpop.eup %3746 }
0x11b8   :  { %v3749_v24 = vpop.eup %3748  ;;  %v2525_v15 = vadd.f32 %v4568_v33, %v2513_v26  ;;  %v2502_v21 = vmul.f32 %v3747_v38, %v4550_v23  ;;  %v2547_v23 = vld [vmem:[%s4726_s10] sm:$0x3] }
0x11b9   :  { %v2503_v27 = vmul.f32 %v3749_v24, %v4553_v47  ;;  %v4642_v47 = vrot.slane %v2547_v23, %v183_v41 }
0x11ba   :  { %v2529_v37 = vpack.c.bf16 %v2525_v15, %v2524_v6  ;;  %v2514_v50 = vmul.f32 %v4562_v28, %v2502_v21 }
0x11bb   :  { %v2515_v7 = vmul.f32 %v4562_v28, %v2503_v27  ;;  %v4646_v28 = vrot.slane %v2547_v23, %v187_v43 }
0x11bc   :  { %2682 = vmatmul.mubr.bf16.gmra.mxu1 %v2529_v37  ;;  %v2526_v19 = vadd.f32 %v4568_v33, %v2514_v50 }
0x11bd   :  { %2691 = vmatprep.mubr.bf16.mxu1 %v3781_v45  ;;  %v2527_v16 = vadd.f32 %v4568_v33, %v2515_v7 }
0x11bf   :  { %v2530_v13 = vpack.c.bf16 %v2527_v16, %v2526_v19 }
0x11c4   :  { %2692 = vmatmul.mubr.bf16.gmra.mxu1 %v2530_v13 }
0x11f5   :  { %v2673_v29 = vpop.f32.mrf.mxu1 }
0x11f6   :  { %v2674_v45 = vadd.f32 %v2673_v29, %v4642_v47 }
0x11f7   :  { %v2675_v31 = vpop.f32.mrf.mxu1 }
0x11f8   :  { %v2714_v48 = vmul.f32 0.044715, %v2674_v45  ;;  %v2676_v33 = vadd.f32 %v2675_v31, %v4646_v28  ;;  %v2702_v42 = vmul.f32 0.5, %v2674_v45 }
0x11f9   :  { %v2677_v55 = vpop.f32.mrf.mxu1 }
0x11fa   :  { %v2726_v39 = vmul.f32 %v2714_v48, %v2674_v45  ;;  %v2715_v53 = vmul.f32 0.044715, %v2676_v33  ;;  %v2678_v54 = vadd.f32 %v2677_v55, %v4642_v47  ;;  %v2703_v17 = vmul.f32 0.5, %v2676_v33 }
0x11fb   :  { %v2679_v56 = vpop.f32.mrf.mxu1 }
0x11fc   :  { %v2738_v57 = vmul.f32 %v2726_v39, %v2674_v45  ;;  %v2727_v41 = vmul.f32 %v2715_v53, %v2676_v33  ;;  %v2716_v35 = vmul.f32 0.044715, %v2678_v54  ;;  %v2680_v40 = vadd.f32 %v2679_v56, %v4646_v28 }
0x11fd   :  { %v2704_v18 = vmul.f32 0.5, %v2678_v54 }
0x11fe   :  { %v2750_v43 = vadd.f32 %v2738_v57, %v2674_v45  ;;  %v2739_v59 = vmul.f32 %v2727_v41, %v2676_v33  ;;  %v2728_v61 = vmul.f32 %v2716_v35, %v2678_v54  ;;  %v2717_v30 = vmul.f32 0.044715, %v2680_v40 }
0x11ff   :  { %v2705_v22 = vmul.f32 0.5, %v2680_v40 }
0x1200   :  { %v2740_v62 = vmul.f32 %v2728_v61, %v2678_v54  ;;  %v2729_v63 = vmul.f32 %v2717_v30, %v2680_v40  ;;  %v2751_v1 = vadd.f32 %v2739_v59, %v2676_v33  ;;  %v2762_v2 = vmul.f32 0.7978846, %v2750_v43 }
0x1202   :  { %v2752_v3 = vadd.f32 %v2740_v62, %v2678_v54  ;;  %v2741_v4 = vmul.f32 %v2729_v63, %v2680_v40  ;;  %v2763_v8 = vmul.f32 0.7978846, %v2751_v1 }
0x1204   :  { %v2764_v9 = vmul.f32 0.7978846, %v2752_v3  ;;  %v2753_v10 = vadd.f32 %v2741_v4, %v2680_v40  ;;  %3750 = vtanh.f32 %v2763_v8 }
0x1205   :  { %3752 = vtanh.f32 %v2762_v2 }
0x1206   :  { %3754 = vtanh.f32 %v2764_v9  ;;  %v2765_v52 = vmul.f32 0.7978846, %v2753_v10 }
0x1208   :  { %3756 = vtanh.f32 %v2765_v52 }
0x1211   :  { %v3751_v14 = vpop.eup %3750 }
0x1212   :  { %v3753_v44 = vpop.eup %3752  ;;  %v2787_v11 = vadd.f32 1.0, %v3751_v14 }
0x1213   :  { %v3755_v51 = vpop.eup %3754  ;;  %v2786_v60 = vadd.f32 1.0, %v3753_v44 }
0x1214   :  { %v2788_v46 = vadd.f32 1.0, %v3755_v51  ;;  %v2799_v25 = vmul.f32 %v2787_v11, %v2703_v17 }
0x1215   :  { %v3757_v0 = vpop.eup %3756  ;;  %v2798_v38 = vmul.f32 %v2786_v60, %v2702_v42 }
0x1216   :  { %v2789_v12 = vadd.f32 1.0, %v3757_v0  ;;  %v2800_v20 = vmul.f32 %v2788_v46, %v2704_v18 }
0x1218   :  { %v2801_v26 = vmul.f32 %v2789_v12, %v2705_v22  ;;  %v2810_v6 = vpack.c.bf16 %v2800_v20, %v2798_v38 }
0x121a   :  { %v2811_v24 = vpack.c.bf16 %v2801_v26, %v2799_v25 }
0x121c   :  { %2983 = vmatprep.mubr.bf16.mxu0 %v2811_v24 }
0x121d   :  { %2984 = vmatmul.mubr.bf16.vlgmr.msra.gmra.mxu0 %v2810_v6 }
0x127c   :  { %v2683_v15 = vpop.f32.mrf.mxu1 }
0x127d   :  { %v4653_v21 = vadd.f32 %v2683_v15, %v4642_v47 }
0x127e   :  { %v2685_v27 = vpop.f32.mrf.mxu1 }
0x127f   :  { %v2718_v37 = vmul.f32 0.044715, %v4653_v21  ;;  %v4657_v50 = vadd.f32 %v2685_v27, %v4646_v28 }
0x1280   :  { %v2687_v7 = vpop.f32.mrf.mxu1 }
0x1281   :  { %v2730_v19 = vmul.f32 %v2718_v37, %v4653_v21  ;;  %v2719_v16 = vmul.f32 0.044715, %v4657_v50  ;;  %v2688_v13 = vadd.f32 %v2687_v7, %v4642_v47 }
0x1282   :  { %v2689_v23 = vpop.f32.mrf.mxu1 }
0x1283   :  { %v2742_v29 = vmul.f32 %v2730_v19, %v4653_v21  ;;  %v2731_v45 = vmul.f32 %v2719_v16, %v4657_v50  ;;  %v2720_v31 = vmul.f32 0.044715, %v2688_v13  ;;  %v2690_v48 = vadd.f32 %v2689_v23, %v4646_v28 }
0x1284   :  { %v2693_v33 = vpop.f32.mrf.mxu1  ;;  %v2708_v19 = vmul.f32 0.5, %v2688_v13  ;;  %v2707_v23 = vmul.f32 0.5, %v4657_v50 }
0x1285   :  { %v2743_v55 = vmul.f32 %v2731_v45, %v4657_v50  ;;  %v2732_v39 = vmul.f32 %v2720_v31, %v2688_v13  ;;  %v2721_v53 = vmul.f32 0.044715, %v2690_v48  ;;  %v4667_v54 = vadd.f32 %v2693_v33, %v4642_v47 }
0x1286   :  { %v2695_v56 = vpop.f32.mrf.mxu1  ;;  %v2754_v57 = vadd.f32 %v2742_v29, %v4653_v21  ;;  %v2709_v29 = vmul.f32 0.5, %v2690_v48  ;;  %v2706_v31 = vmul.f32 0.5, %v4653_v21 }
0x1287   :  { %v2744_v41 = vmul.f32 %v2732_v39, %v2688_v13  ;;  %v2733_v35 = vmul.f32 %v2721_v53, %v2690_v48  ;;  %v2722_v40 = vmul.f32 0.044715, %v4667_v54  ;;  %v4672_v43 = vadd.f32 %v2695_v56, %v4646_v28 }
0x1288   :  { %v2697_v59 = vpop.f32.mrf.mxu1  ;;  %v2755_v61 = vadd.f32 %v2743_v55, %v4657_v50  ;;  %v2766_v30 = vmul.f32 0.7978846, %v2754_v57 }
0x1289   :  { %v2745_v62 = vmul.f32 %v2733_v35, %v2690_v48  ;;  %v2734_v63 = vmul.f32 %v2722_v40, %v4667_v54  ;;  %v2723_v1 = vmul.f32 0.044715, %v4672_v43  ;;  %v2698_v2 = vadd.f32 %v2697_v59, %v4642_v47 }
0x128a   :  { %v2699_v3 = vpop.f32.mrf.mxu1  ;;  %v2767_v4 = vmul.f32 0.7978846, %v2755_v61  ;;  %v2756_v8 = vadd.f32 %v2744_v41, %v2688_v13  ;;  %v2711_v13 = vmul.f32 0.5, %v4672_v43 }
0x128b   :  { %v2746_v9 = vmul.f32 %v2734_v63, %v4667_v54  ;;  %v2735_v10 = vmul.f32 %v2723_v1, %v4672_v43  ;;  %v2724_v52 = vmul.f32 0.044715, %v2698_v2  ;;  %v2700_v14 = vadd.f32 %v2699_v3, %v4646_v28 }
0x128c   :  { %v2757_v44 = vadd.f32 %v2745_v62, %v2690_v48  ;;  %3758 = vtanh.f32 %v2767_v4  ;;  %v2768_v51 = vmul.f32 0.7978846, %v2756_v8  ;;  %v2712_v62 = vmul.f32 0.5, %v2698_v2 }
0x128d   :  { %v2747_v11 = vmul.f32 %v2735_v10, %v4672_v43  ;;  %v2736_v46 = vmul.f32 %v2724_v52, %v2698_v2  ;;  %v2725_v0 = vmul.f32 0.044715, %v2700_v14  ;;  %3760 = vtanh.f32 %v2766_v30 }
0x128e   :  { %v2769_v18 = vmul.f32 0.7978846, %v2757_v44  ;;  %3762 = vtanh.f32 %v2768_v51  ;;  %v2758_v47 = vadd.f32 %v2746_v9, %v4667_v54  ;;  %v2713_v50 = vmul.f32 0.5, %v2700_v14 }
0x128f   :  { %v2748_v60 = vmul.f32 %v2736_v46, %v2698_v2  ;;  %v2737_v17 = vmul.f32 %v2725_v0, %v2700_v14  ;;  %v2759_v22 = vadd.f32 %v2747_v11, %v4672_v43  ;;  %v2710_v3 = vmul.f32 0.5, %v4667_v54  ;;  %v3133_v43 = vld [vmem:[%s4727_s12] ss:$0 sm:$0xff] }
0x1290   :  { %3764 = vtanh.f32 %v2769_v18  ;;  %v2770_v12 = vmul.f32 0.7978846, %v2758_v47 }
0x1291   :  { %v2749_v42 = vmul.f32 %v2737_v17, %v2700_v14  ;;  %v2771_v28 = vmul.f32 0.7978846, %v2759_v22  ;;  %v2760_v20 = vadd.f32 %v2748_v60, %v2698_v2 }
0x1293   :  { %v2761_v25 = vadd.f32 %v2749_v42, %v2700_v14  ;;  %3766 = vtanh.f32 %v2771_v28  ;;  %v2772_v26 = vmul.f32 0.7978846, %v2760_v20 }
0x1294   :  { %3768 = vtanh.f32 %v2770_v12 }
0x1295   :  { %v2773_v38 = vmul.f32 0.7978846, %v2761_v25  ;;  %3770 = vtanh.f32 %v2772_v26 }
0x1297   :  { %3772 = vtanh.f32 %v2773_v38 }
0x1299   :  { %v3759_v24 = vpop.eup %3758 }
0x129a   :  { %v3761_v6 = vpop.eup %3760  ;;  %v2791_v27 = vadd.f32 1.0, %v3759_v24 }
0x129b   :  { %v3763_v15 = vpop.eup %3762  ;;  %v2790_v16 = vadd.f32 1.0, %v3761_v6 }
0x129c   :  { %v2792_v37 = vadd.f32 1.0, %v3763_v15  ;;  %v2803_v39 = vmul.f32 %v2791_v27, %v2707_v23 }
0x129d   :  { %v3765_v7 = vpop.eup %3764  ;;  %v2802_v57 = vmul.f32 %v2790_v16, %v2706_v31 }
0x129e   :  { %v2793_v45 = vadd.f32 1.0, %v3765_v7  ;;  %v2804_v33 = vmul.f32 %v2792_v37, %v2708_v19 }
0x12a0   :  { %v3767_v55 = vpop.eup %3766  ;;  %v2805_v53 = vmul.f32 %v2793_v45, %v2709_v29  ;;  %v2812_v40 = vpack.c.bf16 %v2804_v33, %v2802_v57 }
0x12a1   :  { %v3769_v56 = vpop.eup %3768  ;;  %v2795_v59 = vadd.f32 1.0, %v3767_v55 }
0x12a2   :  { %v3771_v41 = vpop.eup %3770  ;;  %v2813_v35 = vpack.c.bf16 %v2805_v53, %v2803_v39  ;;  %v2794_v21 = vadd.f32 1.0, %v3769_v56 }
0x12a3   :  { %v2796_v61 = vadd.f32 1.0, %v3771_v41  ;;  %v2807_v63 = vmul.f32 %v2795_v59, %v2711_v13 }
0x12a4   :  { %v3773_v30 = vpop.eup %3772  ;;  %2991 = vmatprep.mubr.bf16.mxu0 %v2813_v35  ;;  %v2806_v9 = vmul.f32 %v2794_v21, %v2710_v3 }
0x12a5   :  { %2992 = vmatmul.mubr.bf16.gmra.mxu0 %v2812_v40  ;;  %v2797_v48 = vadd.f32 1.0, %v3773_v30  ;;  %v2808_v4 = vmul.f32 %v2796_v61, %v2712_v62 }
0x12a7   :  { %v2809_v1 = vmul.f32 %v2797_v48, %v2713_v50  ;;  %v2814_v10 = vpack.c.bf16 %v2808_v4, %v2806_v9 }
0x12a9   :  { %v2815_v8 = vpack.c.bf16 %v2809_v1, %v2807_v63 }
0x12ab   :  { %2999 = vmatprep.mubr.bf16.mxu0 %v2815_v8 }
0x12ad   :  { %3000 = vmatmul.mubr.bf16.gmra.mxu0 %v2814_v10 }
0x12dd   :  { %v3273_v52 = vpop.f32.mrf.mxu0 }
0x12df   :  { %v3274_v44 = vpop.f32.mrf.mxu0 }
0x12e0   :  { %v3275_v14 = vadd.f32 %v3274_v44, %v3273_v52 }
0x12e1   :  { %v3276_v51 = vpop.f32.mrf.mxu0 }
0x12e2   :  { %v2986_v2 = vadd.f32 %v3275_v14, %v3133_v43 }
0x12e3   :  { %v3277_v11 = vpop.f32.mrf.mxu0 }
0x12e4   :  { %v3008_v46 = vadd.f32 %v2986_v2, %v4438_v49  ;;  %v3278_v0 = vadd.f32 %v3277_v11, %v3276_v51 }
0x12e6   :  { %3014 = vst [vmem:[%s4728_s13] sm:$0xff] %v3008_v46  ;;  %v2989_v54 = vadd.f32 %v3278_v0, %v3133_v43 }
0x12e8   :  { %v3009_v18 = vadd.f32 %v2989_v54, %v4426_v32 }
0x12ea   :  { %3015 = vst [vmem:[%s4728_s13 + $0x8] sm:$0xff] %v3009_v18 }
0x1365   :  { %v3279_v47 = vpop.f32.mrf.mxu0 }
0x1367   :  { %v3280_v60 = vpop.f32.mrf.mxu0 }
0x1368   :  { %v3281_v17 = vadd.f32 %v3280_v60, %v3279_v47 }
0x1369   :  { %v3282_v22 = vpop.f32.mrf.mxu0 }
0x136a   :  { %v2994_v12 = vadd.f32 %v3281_v17, %v3133_v43 }
0x136b   :  { %v3283_v42 = vpop.f32.mrf.mxu0 }
0x136c   :  { %v3010_v49 = vadd.f32 %v2994_v12, %v4434_v36  ;;  %v3284_v28 = vadd.f32 %v3283_v42, %v3282_v22 }
0x136d   :  { %v3285_v20 = vpop.f32.mrf.mxu0 }
0x136e   :  { %3016 = vst [vmem:[%s4728_s13 + $0x10] sm:$0xff] %v3010_v49  ;;  %v2997_v25 = vadd.f32 %v3284_v28, %v3133_v43 }
0x136f   :  { %v3286_v32 = vpop.f32.mrf.mxu0 }
0x1370   :  { %v3011_v26 = vadd.f32 %v2997_v25, %v4467_v34  ;;  %v3287_v38 = vadd.f32 %v3286_v32, %v3285_v20 }
0x1371   :  { %v3288_v24 = vpop.f32.mrf.mxu0 }
0x1372   :  { %3017 = vst [vmem:[%s4728_s13 + $0x18] sm:$0xff] %v3011_v26  ;;  %v3002_v6 = vadd.f32 %v3287_v38, %v3133_v43 }
0x1373   :  { %v3289_v15 = vpop.f32.mrf.mxu0 }
0x1374   :  { %v3012_v36 = vadd.f32 %v3002_v6, %v4483_v58  ;;  %v3290_v27 = vadd.f32 %v3289_v15, %v3288_v24 }
0x1376   :  { %3018 = vst [vmem:[%s4728_s13 + $0x20] sm:$0xff] %v3012_v36  ;;  %v3005_v37 = vadd.f32 %v3290_v27, %v3133_v43 }
0x1378   :  { %v3013_v7 = vadd.f32 %v3005_v37, %v4480_v5 }
0x137a   :  { %3019 = vst [vmem:[%s4728_s13 + $0x28] sm:$0xff] %v3013_v7 }

</bundles_post_ra>
